<compile_context>
chip_gen: v5e
topology: v5e:2x2
jax: 0.10.0
libtpu: 0.0.40
codegen_flags: <defaults>
</compile_context>

<pallas_src>
import functools

import jax
import jax.numpy as jnp
import numpy as np
from jax.experimental import pallas as pl
from jax.experimental.pallas import tpu as pltpu


# ----------------------------------------------------------------------------
# Fused kernel: ConvTranspose3d + BatchNorm(training) + ReLU
# ----------------------------------------------------------------------------
def _fused_convt_bn_relu_kernel(x_ref, w_ref, mask_ref, gamma_ref, beta_ref,
                                o_ref,
                                y_scr, sum_scr, ssq_scr, ref_scr, xcol_scr,
                                *, D, H, W, CIN, CP, COUT, N, eps):
    """Grid = (2, N): axis 0 = phase (0: conv+stats, 1: BN affine + ReLU).

    x_ref    : (1, CIN, M)      f32  one sample, spatial flattened (NCDHW order)
    w_ref    : (3, COUT, 9*CP)  bf16 flipped conv-transpose weights, chunked by 9 taps
    mask_ref : (27, M)          bf16 {0,1} per-tap halo validity masks
    gamma_ref: (COUT, 1)        f32  BN weight
    beta_ref : (COUT, 1)        f32  BN bias
    o_ref    : (1, COUT, M)     f32  final output (written only in phase 1)
    y_scr    : (N, COUT, M)     f32  resident conv output (persists across grid)
    sum_scr  : (COUT, 1)        f32  global per-channel sum
    ssq_scr  : (COUT, 1)        f32  global per-channel shifted sum of squares
    ref_scr  : (COUT, 1)        f32  per-channel shift reference (BN stability)
    xcol_scr : (2*9*CP, M)      bf16 double-buffered im2col chunk
    """
    M = D * H * W
    HW = H * W
    KC = 9 * CP                              # K rows per chunk (9 taps)
    phase = pl.program_id(0)
    n = pl.program_id(1)

    # ---------------- phase 0: conv + BN partial statistics ----------------
    @pl.when(phase == 0)
    def _conv_phase():
        # One-time init: stat accumulators and (if CIN < CP) the pad rows of the
        # im2col scratch.  Scratch persists across grid steps, so the pad rows
        # are never touched again -> stay exactly zero (no NaN/Inf can leak in).
        @pl.when(n == 0)
        def _():
            sum_scr[...] = jnp.zeros_like(sum_scr)
            ssq_scr[...] = jnp.zeros_like(ssq_scr)
            if CP != CIN:
                xcol_scr[...] = jnp.zeros_like(xcol_scr)

        # Cast once in-kernel (no padded bf16 copy of x materialized in HBM).
        x = x_ref[0].astype(jnp.bfloat16)                    # (CIN, M)

        acc = jnp.zeros((COUT, M), jnp.float32)
        # 3 chunks x 9 taps; build chunk c into slot c%2, matmul it immediately.
        # Double-buffering lets the MXU work on chunk c while chunk c+1 is built.
        for c in range(3):
            slot = c % 2
            base = slot * KC
            for j in range(9):
                t = c * 9 + j
                kd, kh, kw = t // 9, (t // 3) % 3, t % 3
                delta = (kd - 1) * HW + (kh - 1) * W + (kw - 1)
                # shifted[m] = x[m + delta] (wrapped lanes are masked to zero).
                shifted = x if delta == 0 else jnp.roll(x, -delta, axis=1)
                tap = shifted * mask_ref[pl.ds(t, 1), :]      # bf16 * bf16 -> bf16
                xcol_scr[pl.ds(base + j * CP, CIN), :] = tap
            acc = acc + jnp.dot(w_ref[c], xcol_scr[pl.ds(base, KC), :],
                                preferred_element_type=jnp.float32)

        # Conv output stays resident in VMEM for phase 1 (no HBM round-trip).
        y_scr[n] = acc

        # Fused BN partial statistics (shifted ssq for numerical stability).
        @pl.when(n == 0)
        def _():
            ref_scr[...] = jnp.sum(acc, axis=1, keepdims=True) * (1.0 / M)
        centered = acc - ref_scr[...]
        sum_scr[...] += jnp.sum(acc, axis=1, keepdims=True)
        ssq_scr[...] += jnp.sum(centered * centered, axis=1, keepdims=True)

    # ---------------- phase 1: global BN affine + ReLU ----------------
    @pl.when(phase == 1)
    def _bn_relu_phase():
        inv_count = 1.0 / float(N * M)
        mean = sum_scr[...] * inv_count                       # (COUT, 1)
        dm = mean - ref_scr[...]
        var = jnp.maximum(ssq_scr[...] * inv_count - dm * dm, 0.0)   # biased var
        scale = gamma_ref[...] * jax.lax.rsqrt(var + eps)
        shift = beta_ref[...] - mean * scale
        y = y_scr[n]                                          # (COUT, M) f32
        o_ref[...] = jnp.maximum(y * scale + shift, 0.0)[None]


# ----------------------------------------------------------------------------
# Wrapper (layout plumbing / parameter prep in plain JAX; all tiny)
# ----------------------------------------------------------------------------
def _build_tap_masks(D, H, W):
    """(27, D*H*W) {0,1} masks: tap (kd,kh,kw) valid where the shifted voxel exists."""
    d = np.arange(D)[:, None, None]
    h = np.arange(H)[None, :, None]
    w = np.arange(W)[None, None, :]
    masks = []
    for kd in range(3):
        for kh in range(3):
            for kw in range(3):
                od, oh, ow = kd - 1, kh - 1, kw - 1
                valid = ((d + od >= 0) & (d + od < D) &
                         (h + oh >= 0) & (h + oh < H) &
                         (w + ow >= 0) & (w + ow < W))
                masks.append(valid.reshape(-1))
    return np.stack(masks, axis=0).astype(np.float32)


@functools.partial(jax.jit, static_argnames=("eps",))
def conv_transpose3d_block(x, weight, bias, gamma, beta, eps=1e-5):
    """x: (N, CIN, D, H, W); weight: (CIN, COUT, 3, 3, 3) (PyTorch layouts).

    NOTE: `bias` is intentionally unused: a per-channel constant cancels exactly
    under training-mode BatchNorm ((y+b) - mean(y+b) == y - mean(y)).
    """
    N, CIN, D, H, W = x.shape
    COUT = weight.shape[1]
    assert weight.shape[2:] == (3, 3, 3)
    M = D * H * W
    CP = ((CIN + 15) // 16) * 16            # per-tap channel stride: bf16 sublane tile
    KC = 9 * CP                             # K rows per 9-tap chunk
    K = 27 * CP                             # total contraction (no 128-pad, no tail)

    # Input: free reshape only (cast to bf16 happens inside the kernel).
    x_flat = x.reshape(N, CIN, M)

    # Weights: conv-transpose -> flipped-correlation matrix, col = tap*CP + cin,
    # pre-split into 3 chunks of 9 taps so the kernel never slices across lanes.
    wf = jnp.flip(weight.astype(jnp.float32), axis=(2, 3, 4))       # (CIN, COUT, 3,3,3)
    wf = jnp.transpose(wf, (2, 3, 4, 0, 1))                         # (kd,kh,kw,CIN,COUT)
    wf = jnp.pad(wf, ((0, 0), (0, 0), (0, 0), (0, CP - CIN), (0, 0)))
    w2 = jnp.transpose(wf, (4, 0, 1, 2, 3)).reshape(COUT, K)        # (COUT, 27*CP)
    w3 = jnp.transpose(w2.reshape(COUT, 3, KC), (1, 0, 2)).astype(jnp.bfloat16)

    # Per-tap halo validity masks, bf16 so the tap path stays bf16 end to end.
    masks = jnp.asarray(_build_tap_masks(D, H, W), dtype=jnp.bfloat16)   # (27, M)

    gamma2 = gamma.astype(jnp.float32).reshape(COUT, 1)
    beta2 = beta.astype(jnp.float32).reshape(COUT, 1)

    kern = functools.partial(_fused_convt_bn_relu_kernel,
                             D=D, H=H, W=W, CIN=CIN, CP=CP, COUT=COUT, N=N, eps=eps)

    out_flat = pl.pallas_call(
        kern,
        out_shape=jax.ShapeDtypeStruct((N, COUT, M), jnp.float32),
        grid=(2, N),    # (phase, sample); phase must be outer (global BN stats)
        in_specs=[
            # x: per-sample block in phase 0; pinned to block 0 in phase 1 (unused).
            pl.BlockSpec((1, CIN, M), lambda p, n: (n * (1 - p), 0, 0)),
            pl.BlockSpec((3, COUT, KC), lambda p, n: (0, 0, 0)),
            pl.BlockSpec((27, M), lambda p, n: (0, 0)),
            pl.BlockSpec((COUT, 1), lambda p, n: (0, 0)),
            pl.BlockSpec((COUT, 1), lambda p, n: (0, 0)),
        ],
        # Output block only advances during phase 1, so only phase-1-written
        # (final) data is ever written back to HBM.
        out_specs=pl.BlockSpec((1, COUT, M), lambda p, n: (n * p, 0, 0)),
        scratch_shapes=[
            pltpu.VMEM((N, COUT, M), jnp.float32),   # resident conv output
            pltpu.VMEM((COUT, 1), jnp.float32),      # BN sum
            pltpu.VMEM((COUT, 1), jnp.float32),      # BN shifted sum of squares
            pltpu.VMEM((COUT, 1), jnp.float32),      # BN shift reference
            pltpu.VMEM((2 * KC, M), jnp.bfloat16),   # double-buffered im2col chunk
        ],
        compiler_params=pltpu.CompilerParams(
            dimension_semantics=("arbitrary", "arbitrary")),
    )(x_flat, w3, masks, gamma2, beta2)

    # (N, COUT, M) is already NCDHW element order -> free reshape back.
    return out_flat.reshape(N, COUT, D, H, W)


# ----------------------------------------------------------------------------
# Pure-JAX reference (conv inputs cast to bf16 to mirror the kernel's MXU input
# precision; accumulation is f32 in both).
# ----------------------------------------------------------------------------
def _reference(x, weight, bias, gamma, beta, eps=1e-5):
    wf = jnp.flip(weight, axis=(2, 3, 4))
    wf = jnp.transpose(wf, (1, 0, 2, 3, 4))               # (COUT, CIN, 3, 3, 3)
    y = jax.lax.conv_general_dilated(
        x.astype(jnp.bfloat16), wf.astype(jnp.bfloat16),
        window_strides=(1, 1, 1), padding=[(1, 1)] * 3,
        dimension_numbers=("NCDHW", "OIDHW", "NCDHW"),
        preferred_element_type=jnp.float32)
    y = y + bias.reshape(1, -1, 1, 1, 1)
    mean = y.mean(axis=(0, 2, 3, 4), keepdims=True)
    var = y.var(axis=(0, 2, 3, 4), keepdims=True)          # biased, like training BN
    yn = (y - mean) * jax.lax.rsqrt(var + eps)
    yn = yn * gamma.reshape(1, -1, 1, 1, 1) + beta.reshape(1, -1, 1, 1, 1)
    return jnp.maximum(yn, 0.0)


if __name__ == "__main__":
    N, CIN, COUT, D, H, W = 2, 4, 8, 8, 8, 8

    key = jax.random.PRNGKey(0)
    k1, k2, k3, k4, k5 = jax.random.split(key, 5)
    x = jax.random.normal(k1, (N, CIN, D, H, W), jnp.float32)
    weight = 0.1 * jax.random.normal(k2, (CIN, COUT, 3, 3, 3), jnp.float32)
    bias = 0.1 * jax.random.normal(k3, (COUT,), jnp.float32)
    gamma = 1.0 + 0.1 * jax.random.normal(k4, (COUT,), jnp.float32)
    beta = 0.1 * jax.random.normal(k5, (COUT,), jnp.float32)

    out = conv_transpose3d_block(x, weight, bias, gamma, beta)
    out = jax.block_until_ready(out)
    assert out.shape == (N, COUT, D, H, W), out.shape

    ref = _reference(x, weight, bias, gamma, beta)
    if not jnp.allclose(out, ref, atol=2e-2, rtol=2e-2):
        max_err = float(jnp.max(jnp.abs(out - ref)))
        raise AssertionError(f"Pallas result mismatch vs reference, max abs err = {max_err}")

    print("KERNEL_OK")
</pallas_src>

<mosaic_0001>
module attributes {stable_mosaic.version = 11 : i64} {
  func.func @_fused_convt_bn_relu_kernel(%arg0: i32, %arg1: i32, %arg2: memref<1x4x512xf32, #tpu.memory_space<vmem>>, %arg3: memref<3x8x144xbf16, #tpu.memory_space<vmem>>, %arg4: memref<27x512xbf16, #tpu.memory_space<vmem>>, %arg5: memref<8x1xf32, #tpu.memory_space<vmem>>, %arg6: memref<8x1xf32, #tpu.memory_space<vmem>>, %arg7: memref<1x8x512xf32, #tpu.memory_space<vmem>>, %arg8: memref<2x8x512xf32, #tpu.memory_space<vmem>>, %arg9: memref<8x1xf32, #tpu.memory_space<vmem>>, %arg10: memref<8x1xf32, #tpu.memory_space<vmem>>, %arg11: memref<8x1xf32, #tpu.memory_space<vmem>>, %arg12: memref<288x512xbf16, #tpu.memory_space<vmem>>) attributes {dimension_semantics = [#tpu.dimension_semantics<arbitrary>, #tpu.dimension_semantics<arbitrary>], iteration_bounds = array<i64: 2, 2>, scalar_prefetch = 0 : i64, scratch_operands = 5 : i64, tpu.core_type = #tpu.core_type<tc>, window_params = [{transform_indices = @transform_0, window_bounds = array<i64: 1, 4, 512>}, {pipeline_mode = #tpu.pipeline_mode<synchronous>, transform_indices = @transform_1, window_bounds = array<i64: 3, 8, 144>}, {pipeline_mode = #tpu.pipeline_mode<synchronous>, transform_indices = @transform_2, window_bounds = array<i64: 27, 512>}, {pipeline_mode = #tpu.pipeline_mode<synchronous>, transform_indices = @transform_3, window_bounds = array<i64: 8, 1>}, {pipeline_mode = #tpu.pipeline_mode<synchronous>, transform_indices = @transform_4, window_bounds = array<i64: 8, 1>}, {transform_indices = @transform_5, window_bounds = array<i64: 1, 8, 512>}]} {
    %c0_i32 = arith.constant 0 : i32
    %0 = arith.cmpi eq, %arg0, %c0_i32 : i32
    %1 = arith.extui %0 : i1 to i32
    %c0_i32_0 = arith.constant 0 : i32
    %2 = arith.cmpi ne, %1, %c0_i32_0 : i32
    scf.if %2 {
      %c0_i32_2 = arith.constant 0 : i32
      %6 = arith.cmpi eq, %arg1, %c0_i32_2 : i32
      %7 = arith.extui %6 : i1 to i32
      %c0_i32_3 = arith.constant 0 : i32
      %8 = arith.cmpi ne, %7, %c0_i32_3 : i32
      scf.if %8 {
        %cst_106 = arith.constant 0.000000e+00 : f32
        %235 = vector.broadcast %cst_106 : f32 to vector<8x1xf32>
        %c0_107 = arith.constant 0 : index
        %c0_108 = arith.constant 0 : index
        %236 = vector.load %arg9[%c0_107, %c0_108] : memref<8x1xf32, #tpu.memory_space<vmem>>, vector<8x1xf32>
        tpu.vector_store %arg9[%c0_107, %c0_108], %235 {strides = array<i32>} : memref<8x1xf32, #tpu.memory_space<vmem>>, vector<8x1xf32>,
        %cst_109 = arith.constant 0.000000e+00 : f32
        %237 = vector.broadcast %cst_109 : f32 to vector<8x1xf32>
        %c0_110 = arith.constant 0 : index
        %c0_111 = arith.constant 0 : index
        %238 = vector.load %arg10[%c0_110, %c0_111] : memref<8x1xf32, #tpu.memory_space<vmem>>, vector<8x1xf32>
        tpu.vector_store %arg10[%c0_110, %c0_111], %237 {strides = array<i32>} : memref<8x1xf32, #tpu.memory_space<vmem>>, vector<8x1xf32>,
        %cst_112 = arith.constant 0.000000e+00 : bf16
        %239 = vector.broadcast %cst_112 : bf16 to vector<288x512xbf16>
        %c0_113 = arith.constant 0 : index
        %c0_114 = arith.constant 0 : index
        %240 = vector.load %arg12[%c0_113, %c0_114] : memref<288x512xbf16, #tpu.memory_space<vmem>>, vector<288x512xbf16>
        tpu.vector_store %arg12[%c0_113, %c0_114], %239 {strides = array<i32>} : memref<288x512xbf16, #tpu.memory_space<vmem>>, vector<288x512xbf16>,
      } else {
      }
      %c0 = arith.constant 0 : index
      %c0_4 = arith.constant 0 : index
      %c0_5 = arith.constant 0 : index
      %9 = vector.load %arg2[%c0, %c0_4, %c0_5] : memref<1x4x512xf32, #tpu.memory_space<vmem>>, vector<1x4x512xf32>
      %10 = vector.shape_cast %9 : vector<1x4x512xf32> to vector<4x512xf32>
      %11 = arith.truncf %10 : vector<4x512xf32> to vector<4x512xbf16>
      %cst = arith.constant 0.000000e+00 : f32
      %12 = vector.broadcast %cst : f32 to vector<8x512xf32>
      %13 = vector.extract_strided_slice %11 {offsets = [0, 439], sizes = [4, 73], strides = [1, 1]} : vector<4x512xbf16> to vector<4x73xbf16>
      %14 = vector.extract_strided_slice %11 {offsets = [0, 0], sizes = [4, 439], strides = [1, 1]} : vector<4x512xbf16> to vector<4x439xbf16>
      %15 = tpu.concatenate %13, %14 in 1 : vector<4x73xbf16>, vector<4x439xbf16> -> vector<4x512xbf16>
      %c0_6 = arith.constant 0 : index
      %c0_7 = arith.constant 0 : index
      %16 = vector.load %arg4[%c0_6, %c0_7] : memref<27x512xbf16, #tpu.memory_space<vmem>>, vector<1x512xbf16>
      %17 = vector.broadcast %16 : vector<1x512xbf16> to vector<4x512xbf16>
      %18 = arith.mulf %15, %17 : vector<4x512xbf16>
      %c0_8 = arith.constant 0 : index
      %c0_9 = arith.constant 0 : index
      %19 = vector.load %arg12[%c0_8, %c0_9] : memref<288x512xbf16, #tpu.memory_space<vmem>>, vector<4x512xbf16>
      tpu.vector_store %arg12[%c0_8, %c0_9], %18 {strides = array<i32>} : memref<288x512xbf16, #tpu.memory_space<vmem>>, vector<4x512xbf16>,
      %20 = vector.extract_strided_slice %11 {offsets = [0, 440], sizes = [4, 72], strides = [1, 1]} : vector<4x512xbf16> to vector<4x72xbf16>
      %21 = vector.extract_strided_slice %11 {offsets = [0, 0], sizes = [4, 440], strides = [1, 1]} : vector<4x512xbf16> to vector<4x440xbf16>
      %22 = tpu.concatenate %20, %21 in 1 : vector<4x72xbf16>, vector<4x440xbf16> -> vector<4x512xbf16>
      %c1 = arith.constant 1 : index
      %c0_10 = arith.constant 0 : index
      %23 = vector.load %arg4[%c1, %c0_10] : memref<27x512xbf16, #tpu.memory_space<vmem>>, vector<1x512xbf16>
      %24 = vector.broadcast %23 : vector<1x512xbf16> to vector<4x512xbf16>
      %25 = arith.mulf %22, %24 : vector<4x512xbf16>
      %c16 = arith.constant 16 : index
      %c0_11 = arith.constant 0 : index
      %26 = vector.load %arg12[%c16, %c0_11] : memref<288x512xbf16, #tpu.memory_space<vmem>>, vector<4x512xbf16>
      tpu.vector_store %arg12[%c16, %c0_11], %25 {strides = array<i32>} : memref<288x512xbf16, #tpu.memory_space<vmem>>, vector<4x512xbf16>,
      %27 = vector.extract_strided_slice %11 {offsets = [0, 441], sizes = [4, 71], strides = [1, 1]} : vector<4x512xbf16> to vector<4x71xbf16>
      %28 = vector.extract_strided_slice %11 {offsets = [0, 0], sizes = [4, 441], strides = [1, 1]} : vector<4x512xbf16> to vector<4x441xbf16>
      %29 = tpu.concatenate %27, %28 in 1 : vector<4x71xbf16>, vector<4x441xbf16> -> vector<4x512xbf16>
      %c2 = arith.constant 2 : index
      %c0_12 = arith.constant 0 : index
      %30 = vector.load %arg4[%c2, %c0_12] : memref<27x512xbf16, #tpu.memory_space<vmem>>, vector<1x512xbf16>
      %31 = vector.broadcast %30 : vector<1x512xbf16> to vector<4x512xbf16>
      %32 = arith.mulf %29, %31 : vector<4x512xbf16>
      %c32 = arith.constant 32 : index
      %c0_13 = arith.constant 0 : index
      %33 = vector.load %arg12[%c32, %c0_13] : memref<288x512xbf16, #tpu.memory_space<vmem>>, vector<4x512xbf16>
      tpu.vector_store %arg12[%c32, %c0_13], %32 {strides = array<i32>} : memref<288x512xbf16, #tpu.memory_space<vmem>>, vector<4x512xbf16>,
      %34 = vector.extract_strided_slice %11 {offsets = [0, 447], sizes = [4, 65], strides = [1, 1]} : vector<4x512xbf16> to vector<4x65xbf16>
      %35 = vector.extract_strided_slice %11 {offsets = [0, 0], sizes = [4, 447], strides = [1, 1]} : vector<4x512xbf16> to vector<4x447xbf16>
      %36 = tpu.concatenate %34, %35 in 1 : vector<4x65xbf16>, vector<4x447xbf16> -> vector<4x512xbf16>
      %c3 = arith.constant 3 : index
      %c0_14 = arith.constant 0 : index
      %37 = vector.load %arg4[%c3, %c0_14] : memref<27x512xbf16, #tpu.memory_space<vmem>>, vector<1x512xbf16>
      %38 = vector.broadcast %37 : vector<1x512xbf16> to vector<4x512xbf16>
      %39 = arith.mulf %36, %38 : vector<4x512xbf16>
      %c48 = arith.constant 48 : index
      %c0_15 = arith.constant 0 : index
      %40 = vector.load %arg12[%c48, %c0_15] : memref<288x512xbf16, #tpu.memory_space<vmem>>, vector<4x512xbf16>
      tpu.vector_store %arg12[%c48, %c0_15], %39 {strides = array<i32>} : memref<288x512xbf16, #tpu.memory_space<vmem>>, vector<4x512xbf16>,
      %41 = vector.extract_strided_slice %11 {offsets = [0, 448], sizes = [4, 64], strides = [1, 1]} : vector<4x512xbf16> to vector<4x64xbf16>
      %42 = vector.extract_strided_slice %11 {offsets = [0, 0], sizes = [4, 448], strides = [1, 1]} : vector<4x512xbf16> to vector<4x448xbf16>
      %43 = tpu.concatenate %41, %42 in 1 : vector<4x64xbf16>, vector<4x448xbf16> -> vector<4x512xbf16>
      %c4 = arith.constant 4 : index
      %c0_16 = arith.constant 0 : index
      %44 = vector.load %arg4[%c4, %c0_16] : memref<27x512xbf16, #tpu.memory_space<vmem>>, vector<1x512xbf16>
      %45 = vector.broadcast %44 : vector<1x512xbf16> to vector<4x512xbf16>
      %46 = arith.mulf %43, %45 : vector<4x512xbf16>
      %c64 = arith.constant 64 : index
      %c0_17 = arith.constant 0 : index
      %47 = vector.load %arg12[%c64, %c0_17] : memref<288x512xbf16, #tpu.memory_space<vmem>>, vector<4x512xbf16>
      tpu.vector_store %arg12[%c64, %c0_17], %46 {strides = array<i32>} : memref<288x512xbf16, #tpu.memory_space<vmem>>, vector<4x512xbf16>,
      %48 = vector.extract_strided_slice %11 {offsets = [0, 449], sizes = [4, 63], strides = [1, 1]} : vector<4x512xbf16> to vector<4x63xbf16>
      %49 = vector.extract_strided_slice %11 {offsets = [0, 0], sizes = [4, 449], strides = [1, 1]} : vector<4x512xbf16> to vector<4x449xbf16>
      %50 = tpu.concatenate %48, %49 in 1 : vector<4x63xbf16>, vector<4x449xbf16> -> vector<4x512xbf16>
      %c5 = arith.constant 5 : index
      %c0_18 = arith.constant 0 : index
      %51 = vector.load %arg4[%c5, %c0_18] : memref<27x512xbf16, #tpu.memory_space<vmem>>, vector<1x512xbf16>
      %52 = vector.broadcast %51 : vector<1x512xbf16> to vector<4x512xbf16>
      %53 = arith.mulf %50, %52 : vector<4x512xbf16>
      %c80 = arith.constant 80 : index
      %c0_19 = arith.constant 0 : index
      %54 = vector.load %arg12[%c80, %c0_19] : memref<288x512xbf16, #tpu.memory_space<vmem>>, vector<4x512xbf16>
      tpu.vector_store %arg12[%c80, %c0_19], %53 {strides = array<i32>} : memref<288x512xbf16, #tpu.memory_space<vmem>>, vector<4x512xbf16>,
      %55 = vector.extract_strided_slice %11 {offsets = [0, 455], sizes = [4, 57], strides = [1, 1]} : vector<4x512xbf16> to vector<4x57xbf16>
      %56 = vector.extract_strided_slice %11 {offsets = [0, 0], sizes = [4, 455], strides = [1, 1]} : vector<4x512xbf16> to vector<4x455xbf16>
      %57 = tpu.concatenate %55, %56 in 1 : vector<4x57xbf16>, vector<4x455xbf16> -> vector<4x512xbf16>
      %c6 = arith.constant 6 : index
      %c0_20 = arith.constant 0 : index
      %58 = vector.load %arg4[%c6, %c0_20] : memref<27x512xbf16, #tpu.memory_space<vmem>>, vector<1x512xbf16>
      %59 = vector.broadcast %58 : vector<1x512xbf16> to vector<4x512xbf16>
      %60 = arith.mulf %57, %59 : vector<4x512xbf16>
      %c96 = arith.constant 96 : index
      %c0_21 = arith.constant 0 : index
      %61 = vector.load %arg12[%c96, %c0_21] : memref<288x512xbf16, #tpu.memory_space<vmem>>, vector<4x512xbf16>
      tpu.vector_store %arg12[%c96, %c0_21], %60 {strides = array<i32>} : memref<288x512xbf16, #tpu.memory_space<vmem>>, vector<4x512xbf16>,
      %62 = vector.extract_strided_slice %11 {offsets = [0, 456], sizes = [4, 56], strides = [1, 1]} : vector<4x512xbf16> to vector<4x56xbf16>
      %63 = vector.extract_strided_slice %11 {offsets = [0, 0], sizes = [4, 456], strides = [1, 1]} : vector<4x512xbf16> to vector<4x456xbf16>
      %64 = tpu.concatenate %62, %63 in 1 : vector<4x56xbf16>, vector<4x456xbf16> -> vector<4x512xbf16>
      %c7 = arith.constant 7 : index
      %c0_22 = arith.constant 0 : index
      %65 = vector.load %arg4[%c7, %c0_22] : memref<27x512xbf16, #tpu.memory_space<vmem>>, vector<1x512xbf16>
      %66 = vector.broadcast %65 : vector<1x512xbf16> to vector<4x512xbf16>
      %67 = arith.mulf %64, %66 : vector<4x512xbf16>
      %c112 = arith.constant 112 : index
      %c0_23 = arith.constant 0 : index
      %68 = vector.load %arg12[%c112, %c0_23] : memref<288x512xbf16, #tpu.memory_space<vmem>>, vector<4x512xbf16>
      tpu.vector_store %arg12[%c112, %c0_23], %67 {strides = array<i32>} : memref<288x512xbf16, #tpu.memory_space<vmem>>, vector<4x512xbf16>,
      %69 = vector.extract_strided_slice %11 {offsets = [0, 457], sizes = [4, 55], strides = [1, 1]} : vector<4x512xbf16> to vector<4x55xbf16>
      %70 = vector.extract_strided_slice %11 {offsets = [0, 0], sizes = [4, 457], strides = [1, 1]} : vector<4x512xbf16> to vector<4x457xbf16>
      %71 = tpu.concatenate %69, %70 in 1 : vector<4x55xbf16>, vector<4x457xbf16> -> vector<4x512xbf16>
      %c8 = arith.constant 8 : index
      %c0_24 = arith.constant 0 : index
      %72 = vector.load %arg4[%c8, %c0_24] : memref<27x512xbf16, #tpu.memory_space<vmem>>, vector<1x512xbf16>
      %73 = vector.broadcast %72 : vector<1x512xbf16> to vector<4x512xbf16>
      %74 = arith.mulf %71, %73 : vector<4x512xbf16>
      %c128 = arith.constant 128 : index
      %c0_25 = arith.constant 0 : index
      %75 = vector.load %arg12[%c128, %c0_25] : memref<288x512xbf16, #tpu.memory_space<vmem>>, vector<4x512xbf16>
      tpu.vector_store %arg12[%c128, %c0_25], %74 {strides = array<i32>} : memref<288x512xbf16, #tpu.memory_space<vmem>>, vector<4x512xbf16>,
      %c0_26 = arith.constant 0 : index
      %c0_27 = arith.constant 0 : index
      %c0_28 = arith.constant 0 : index
      %76 = vector.load %arg3[%c0_26, %c0_27, %c0_28] : memref<3x8x144xbf16, #tpu.memory_space<vmem>>, vector<1x8x144xbf16>
      %77 = vector.shape_cast %76 : vector<1x8x144xbf16> to vector<8x144xbf16>
      %c0_29 = arith.constant 0 : index
      %c0_30 = arith.constant 0 : index
      %78 = vector.load %arg12[%c0_29, %c0_30] : memref<288x512xbf16, #tpu.memory_space<vmem>>, vector<144x512xbf16>
      %cst_31 = arith.constant dense<0.000000e+00> : vector<8x512xf32>
      %79 = tpu.matmul %77, %78, %cst_31 {dimension_numbers = #tpu.dot_dimension_numbers<[1], [0], [0], [1], [0, 0, 1, 1], [], []>} : vector<8x144xbf16>, vector<144x512xbf16>, vector<8x512xf32> -> vector<8x512xf32>
      %80 = arith.addf %12, %79 : vector<8x512xf32>
      %81 = vector.extract_strided_slice %11 {offsets = [0, 503], sizes = [4, 9], strides = [1, 1]} : vector<4x512xbf16> to vector<4x9xbf16>
      %82 = vector.extract_strided_slice %11 {offsets = [0, 0], sizes = [4, 503], strides = [1, 1]} : vector<4x512xbf16> to vector<4x503xbf16>
      %83 = tpu.concatenate %81, %82 in 1 : vector<4x9xbf16>, vector<4x503xbf16> -> vector<4x512xbf16>
      %c9 = arith.constant 9 : index
      %c0_32 = arith.constant 0 : index
      %84 = vector.load %arg4[%c9, %c0_32] : memref<27x512xbf16, #tpu.memory_space<vmem>>, vector<1x512xbf16>
      %85 = vector.broadcast %84 : vector<1x512xbf16> to vector<4x512xbf16>
      %86 = arith.mulf %83, %85 : vector<4x512xbf16>
      %c144 = arith.constant 144 : index
      %c0_33 = arith.constant 0 : index
      %87 = vector.load %arg12[%c144, %c0_33] : memref<288x512xbf16, #tpu.memory_space<vmem>>, vector<4x512xbf16>
      tpu.vector_store %arg12[%c144, %c0_33], %86 {strides = array<i32>} : memref<288x512xbf16, #tpu.memory_space<vmem>>, vector<4x512xbf16>,
      %88 = vector.extract_strided_slice %11 {offsets = [0, 504], sizes = [4, 8], strides = [1, 1]} : vector<4x512xbf16> to vector<4x8xbf16>
      %89 = vector.extract_strided_slice %11 {offsets = [0, 0], sizes = [4, 504], strides = [1, 1]} : vector<4x512xbf16> to vector<4x504xbf16>
      %90 = tpu.concatenate %88, %89 in 1 : vector<4x8xbf16>, vector<4x504xbf16> -> vector<4x512xbf16>
      %c10 = arith.constant 10 : index
      %c0_34 = arith.constant 0 : index
      %91 = vector.load %arg4[%c10, %c0_34] : memref<27x512xbf16, #tpu.memory_space<vmem>>, vector<1x512xbf16>
      %92 = vector.broadcast %91 : vector<1x512xbf16> to vector<4x512xbf16>
      %93 = arith.mulf %90, %92 : vector<4x512xbf16>
      %c160 = arith.constant 160 : index
      %c0_35 = arith.constant 0 : index
      %94 = vector.load %arg12[%c160, %c0_35] : memref<288x512xbf16, #tpu.memory_space<vmem>>, vector<4x512xbf16>
      tpu.vector_store %arg12[%c160, %c0_35], %93 {strides = array<i32>} : memref<288x512xbf16, #tpu.memory_space<vmem>>, vector<4x512xbf16>,
      %95 = vector.extract_strided_slice %11 {offsets = [0, 505], sizes = [4, 7], strides = [1, 1]} : vector<4x512xbf16> to vector<4x7xbf16>
      %96 = vector.extract_strided_slice %11 {offsets = [0, 0], sizes = [4, 505], strides = [1, 1]} : vector<4x512xbf16> to vector<4x505xbf16>
      %97 = tpu.concatenate %95, %96 in 1 : vector<4x7xbf16>, vector<4x505xbf16> -> vector<4x512xbf16>
      %c11 = arith.constant 11 : index
      %c0_36 = arith.constant 0 : index
      %98 = vector.load %arg4[%c11, %c0_36] : memref<27x512xbf16, #tpu.memory_space<vmem>>, vector<1x512xbf16>
      %99 = vector.broadcast %98 : vector<1x512xbf16> to vector<4x512xbf16>
      %100 = arith.mulf %97, %99 : vector<4x512xbf16>
      %c176 = arith.constant 176 : index
      %c0_37 = arith.constant 0 : index
      %101 = vector.load %arg12[%c176, %c0_37] : memref<288x512xbf16, #tpu.memory_space<vmem>>, vector<4x512xbf16>
      tpu.vector_store %arg12[%c176, %c0_37], %100 {strides = array<i32>} : memref<288x512xbf16, #tpu.memory_space<vmem>>, vector<4x512xbf16>,
      %102 = vector.extract_strided_slice %11 {offsets = [0, 511], sizes = [4, 1], strides = [1, 1]} : vector<4x512xbf16> to vector<4x1xbf16>
      %103 = vector.extract_strided_slice %11 {offsets = [0, 0], sizes = [4, 511], strides = [1, 1]} : vector<4x512xbf16> to vector<4x511xbf16>
      %104 = tpu.concatenate %102, %103 in 1 : vector<4x1xbf16>, vector<4x511xbf16> -> vector<4x512xbf16>
      %c12 = arith.constant 12 : index
      %c0_38 = arith.constant 0 : index
      %105 = vector.load %arg4[%c12, %c0_38] : memref<27x512xbf16, #tpu.memory_space<vmem>>, vector<1x512xbf16>
      %106 = vector.broadcast %105 : vector<1x512xbf16> to vector<4x512xbf16>
      %107 = arith.mulf %104, %106 : vector<4x512xbf16>
      %c192 = arith.constant 192 : index
      %c0_39 = arith.constant 0 : index
      %108 = vector.load %arg12[%c192, %c0_39] : memref<288x512xbf16, #tpu.memory_space<vmem>>, vector<4x512xbf16>
      tpu.vector_store %arg12[%c192, %c0_39], %107 {strides = array<i32>} : memref<288x512xbf16, #tpu.memory_space<vmem>>, vector<4x512xbf16>,
      %c13 = arith.constant 13 : index
      %c0_40 = arith.constant 0 : index
      %109 = vector.load %arg4[%c13, %c0_40] : memref<27x512xbf16, #tpu.memory_space<vmem>>, vector<1x512xbf16>
      %110 = vector.broadcast %109 : vector<1x512xbf16> to vector<4x512xbf16>
      %111 = arith.mulf %11, %110 : vector<4x512xbf16>
      %c208 = arith.constant 208 : index
      %c0_41 = arith.constant 0 : index
      %112 = vector.load %arg12[%c208, %c0_41] : memref<288x512xbf16, #tpu.memory_space<vmem>>, vector<4x512xbf16>
      tpu.vector_store %arg12[%c208, %c0_41], %111 {strides = array<i32>} : memref<288x512xbf16, #tpu.memory_space<vmem>>, vector<4x512xbf16>,
      %113 = vector.extract_strided_slice %11 {offsets = [0, 1], sizes = [4, 511], strides = [1, 1]} : vector<4x512xbf16> to vector<4x511xbf16>
      %114 = vector.extract_strided_slice %11 {offsets = [0, 0], sizes = [4, 1], strides = [1, 1]} : vector<4x512xbf16> to vector<4x1xbf16>
      %115 = tpu.concatenate %113, %114 in 1 : vector<4x511xbf16>, vector<4x1xbf16> -> vector<4x512xbf16>
      %c14 = arith.constant 14 : index
      %c0_42 = arith.constant 0 : index
      %116 = vector.load %arg4[%c14, %c0_42] : memref<27x512xbf16, #tpu.memory_space<vmem>>, vector<1x512xbf16>
      %117 = vector.broadcast %116 : vector<1x512xbf16> to vector<4x512xbf16>
      %118 = arith.mulf %115, %117 : vector<4x512xbf16>
      %c224 = arith.constant 224 : index
      %c0_43 = arith.constant 0 : index
      %119 = vector.load %arg12[%c224, %c0_43] : memref<288x512xbf16, #tpu.memory_space<vmem>>, vector<4x512xbf16>
      tpu.vector_store %arg12[%c224, %c0_43], %118 {strides = array<i32>} : memref<288x512xbf16, #tpu.memory_space<vmem>>, vector<4x512xbf16>,
      %120 = vector.extract_strided_slice %11 {offsets = [0, 7], sizes = [4, 505], strides = [1, 1]} : vector<4x512xbf16> to vector<4x505xbf16>
      %121 = vector.extract_strided_slice %11 {offsets = [0, 0], sizes = [4, 7], strides = [1, 1]} : vector<4x512xbf16> to vector<4x7xbf16>
      %122 = tpu.concatenate %120, %121 in 1 : vector<4x505xbf16>, vector<4x7xbf16> -> vector<4x512xbf16>
      %c15 = arith.constant 15 : index
      %c0_44 = arith.constant 0 : index
      %123 = vector.load %arg4[%c15, %c0_44] : memref<27x512xbf16, #tpu.memory_space<vmem>>, vector<1x512xbf16>
      %124 = vector.broadcast %123 : vector<1x512xbf16> to vector<4x512xbf16>
      %125 = arith.mulf %122, %124 : vector<4x512xbf16>
      %c240 = arith.constant 240 : index
      %c0_45 = arith.constant 0 : index
      %126 = vector.load %arg12[%c240, %c0_45] : memref<288x512xbf16, #tpu.memory_space<vmem>>, vector<4x512xbf16>
      tpu.vector_store %arg12[%c240, %c0_45], %125 {strides = array<i32>} : memref<288x512xbf16, #tpu.memory_space<vmem>>, vector<4x512xbf16>,
      %127 = vector.extract_strided_slice %11 {offsets = [0, 8], sizes = [4, 504], strides = [1, 1]} : vector<4x512xbf16> to vector<4x504xbf16>
      %128 = vector.extract_strided_slice %11 {offsets = [0, 0], sizes = [4, 8], strides = [1, 1]} : vector<4x512xbf16> to vector<4x8xbf16>
      %129 = tpu.concatenate %127, %128 in 1 : vector<4x504xbf16>, vector<4x8xbf16> -> vector<4x512xbf16>
      %c16_46 = arith.constant 16 : index
      %c0_47 = arith.constant 0 : index
      %130 = vector.load %arg4[%c16_46, %c0_47] : memref<27x512xbf16, #tpu.memory_space<vmem>>, vector<1x512xbf16>
      %131 = vector.broadcast %130 : vector<1x512xbf16> to vector<4x512xbf16>
      %132 = arith.mulf %129, %131 : vector<4x512xbf16>
      %c256 = arith.constant 256 : index
      %c0_48 = arith.constant 0 : index
      %133 = vector.load %arg12[%c256, %c0_48] : memref<288x512xbf16, #tpu.memory_space<vmem>>, vector<4x512xbf16>
      tpu.vector_store %arg12[%c256, %c0_48], %132 {strides = array<i32>} : memref<288x512xbf16, #tpu.memory_space<vmem>>, vector<4x512xbf16>,
      %134 = vector.extract_strided_slice %11 {offsets = [0, 9], sizes = [4, 503], strides = [1, 1]} : vector<4x512xbf16> to vector<4x503xbf16>
      %135 = vector.extract_strided_slice %11 {offsets = [0, 0], sizes = [4, 9], strides = [1, 1]} : vector<4x512xbf16> to vector<4x9xbf16>
      %136 = tpu.concatenate %134, %135 in 1 : vector<4x503xbf16>, vector<4x9xbf16> -> vector<4x512xbf16>
      %c17 = arith.constant 17 : index
      %c0_49 = arith.constant 0 : index
      %137 = vector.load %arg4[%c17, %c0_49] : memref<27x512xbf16, #tpu.memory_space<vmem>>, vector<1x512xbf16>
      %138 = vector.broadcast %137 : vector<1x512xbf16> to vector<4x512xbf16>
      %139 = arith.mulf %136, %138 : vector<4x512xbf16>
      %c272 = arith.constant 272 : index
      %c0_50 = arith.constant 0 : index
      %140 = vector.load %arg12[%c272, %c0_50] : memref<288x512xbf16, #tpu.memory_space<vmem>>, vector<4x512xbf16>
      tpu.vector_store %arg12[%c272, %c0_50], %139 {strides = array<i32>} : memref<288x512xbf16, #tpu.memory_space<vmem>>, vector<4x512xbf16>,
      %c1_51 = arith.constant 1 : index
      %c0_52 = arith.constant 0 : index
      %c0_53 = arith.constant 0 : index
      %141 = vector.load %arg3[%c1_51, %c0_52, %c0_53] : memref<3x8x144xbf16, #tpu.memory_space<vmem>>, vector<1x8x144xbf16>
      %142 = vector.shape_cast %141 : vector<1x8x144xbf16> to vector<8x144xbf16>
      %c144_54 = arith.constant 144 : index
      %c0_55 = arith.constant 0 : index
      %143 = vector.load %arg12[%c144_54, %c0_55] : memref<288x512xbf16, #tpu.memory_space<vmem>>, vector<144x512xbf16>
      %cst_56 = arith.constant dense<0.000000e+00> : vector<8x512xf32>
      %144 = tpu.matmul %142, %143, %cst_56 {dimension_numbers = #tpu.dot_dimension_numbers<[1], [0], [0], [1], [0, 0, 1, 1], [], []>} : vector<8x144xbf16>, vector<144x512xbf16>, vector<8x512xf32> -> vector<8x512xf32>
      %145 = arith.addf %80, %144 : vector<8x512xf32>
      %146 = vector.extract_strided_slice %11 {offsets = [0, 55], sizes = [4, 457], strides = [1, 1]} : vector<4x512xbf16> to vector<4x457xbf16>
      %147 = vector.extract_strided_slice %11 {offsets = [0, 0], sizes = [4, 55], strides = [1, 1]} : vector<4x512xbf16> to vector<4x55xbf16>
      %148 = tpu.concatenate %146, %147 in 1 : vector<4x457xbf16>, vector<4x55xbf16> -> vector<4x512xbf16>
      %c18 = arith.constant 18 : index
      %c0_57 = arith.constant 0 : index
      %149 = vector.load %arg4[%c18, %c0_57] : memref<27x512xbf16, #tpu.memory_space<vmem>>, vector<1x512xbf16>
      %150 = vector.broadcast %149 : vector<1x512xbf16> to vector<4x512xbf16>
      %151 = arith.mulf %148, %150 : vector<4x512xbf16>
      %c0_58 = arith.constant 0 : index
      %c0_59 = arith.constant 0 : index
      %152 = vector.load %arg12[%c0_58, %c0_59] : memref<288x512xbf16, #tpu.memory_space<vmem>>, vector<4x512xbf16>
      tpu.vector_store %arg12[%c0_58, %c0_59], %151 {strides = array<i32>} : memref<288x512xbf16, #tpu.memory_space<vmem>>, vector<4x512xbf16>,
      %153 = vector.extract_strided_slice %11 {offsets = [0, 56], sizes = [4, 456], strides = [1, 1]} : vector<4x512xbf16> to vector<4x456xbf16>
      %154 = vector.extract_strided_slice %11 {offsets = [0, 0], sizes = [4, 56], strides = [1, 1]} : vector<4x512xbf16> to vector<4x56xbf16>
      %155 = tpu.concatenate %153, %154 in 1 : vector<4x456xbf16>, vector<4x56xbf16> -> vector<4x512xbf16>
      %c19 = arith.constant 19 : index
      %c0_60 = arith.constant 0 : index
      %156 = vector.load %arg4[%c19, %c0_60] : memref<27x512xbf16, #tpu.memory_space<vmem>>, vector<1x512xbf16>
      %157 = vector.broadcast %156 : vector<1x512xbf16> to vector<4x512xbf16>
      %158 = arith.mulf %155, %157 : vector<4x512xbf16>
      %c16_61 = arith.constant 16 : index
      %c0_62 = arith.constant 0 : index
      %159 = vector.load %arg12[%c16_61, %c0_62] : memref<288x512xbf16, #tpu.memory_space<vmem>>, vector<4x512xbf16>
      tpu.vector_store %arg12[%c16_61, %c0_62], %158 {strides = array<i32>} : memref<288x512xbf16, #tpu.memory_space<vmem>>, vector<4x512xbf16>,
      %160 = vector.extract_strided_slice %11 {offsets = [0, 57], sizes = [4, 455], strides = [1, 1]} : vector<4x512xbf16> to vector<4x455xbf16>
      %161 = vector.extract_strided_slice %11 {offsets = [0, 0], sizes = [4, 57], strides = [1, 1]} : vector<4x512xbf16> to vector<4x57xbf16>
      %162 = tpu.concatenate %160, %161 in 1 : vector<4x455xbf16>, vector<4x57xbf16> -> vector<4x512xbf16>
      %c20 = arith.constant 20 : index
      %c0_63 = arith.constant 0 : index
      %163 = vector.load %arg4[%c20, %c0_63] : memref<27x512xbf16, #tpu.memory_space<vmem>>, vector<1x512xbf16>
      %164 = vector.broadcast %163 : vector<1x512xbf16> to vector<4x512xbf16>
      %165 = arith.mulf %162, %164 : vector<4x512xbf16>
      %c32_64 = arith.constant 32 : index
      %c0_65 = arith.constant 0 : index
      %166 = vector.load %arg12[%c32_64, %c0_65] : memref<288x512xbf16, #tpu.memory_space<vmem>>, vector<4x512xbf16>
      tpu.vector_store %arg12[%c32_64, %c0_65], %165 {strides = array<i32>} : memref<288x512xbf16, #tpu.memory_space<vmem>>, vector<4x512xbf16>,
      %167 = vector.extract_strided_slice %11 {offsets = [0, 63], sizes = [4, 449], strides = [1, 1]} : vector<4x512xbf16> to vector<4x449xbf16>
      %168 = vector.extract_strided_slice %11 {offsets = [0, 0], sizes = [4, 63], strides = [1, 1]} : vector<4x512xbf16> to vector<4x63xbf16>
      %169 = tpu.concatenate %167, %168 in 1 : vector<4x449xbf16>, vector<4x63xbf16> -> vector<4x512xbf16>
      %c21 = arith.constant 21 : index
      %c0_66 = arith.constant 0 : index
      %170 = vector.load %arg4[%c21, %c0_66] : memref<27x512xbf16, #tpu.memory_space<vmem>>, vector<1x512xbf16>
      %171 = vector.broadcast %170 : vector<1x512xbf16> to vector<4x512xbf16>
      %172 = arith.mulf %169, %171 : vector<4x512xbf16>
      %c48_67 = arith.constant 48 : index
      %c0_68 = arith.constant 0 : index
      %173 = vector.load %arg12[%c48_67, %c0_68] : memref<288x512xbf16, #tpu.memory_space<vmem>>, vector<4x512xbf16>
      tpu.vector_store %arg12[%c48_67, %c0_68], %172 {strides = array<i32>} : memref<288x512xbf16, #tpu.memory_space<vmem>>, vector<4x512xbf16>,
      %174 = vector.extract_strided_slice %11 {offsets = [0, 64], sizes = [4, 448], strides = [1, 1]} : vector<4x512xbf16> to vector<4x448xbf16>
      %175 = vector.extract_strided_slice %11 {offsets = [0, 0], sizes = [4, 64], strides = [1, 1]} : vector<4x512xbf16> to vector<4x64xbf16>
      %176 = tpu.concatenate %174, %175 in 1 : vector<4x448xbf16>, vector<4x64xbf16> -> vector<4x512xbf16>
      %c22 = arith.constant 22 : index
      %c0_69 = arith.constant 0 : index
      %177 = vector.load %arg4[%c22, %c0_69] : memref<27x512xbf16, #tpu.memory_space<vmem>>, vector<1x512xbf16>
      %178 = vector.broadcast %177 : vector<1x512xbf16> to vector<4x512xbf16>
      %179 = arith.mulf %176, %178 : vector<4x512xbf16>
      %c64_70 = arith.constant 64 : index
      %c0_71 = arith.constant 0 : index
      %180 = vector.load %arg12[%c64_70, %c0_71] : memref<288x512xbf16, #tpu.memory_space<vmem>>, vector<4x512xbf16>
      tpu.vector_store %arg12[%c64_70, %c0_71], %179 {strides = array<i32>} : memref<288x512xbf16, #tpu.memory_space<vmem>>, vector<4x512xbf16>,
      %181 = vector.extract_strided_slice %11 {offsets = [0, 65], sizes = [4, 447], strides = [1, 1]} : vector<4x512xbf16> to vector<4x447xbf16>
      %182 = vector.extract_strided_slice %11 {offsets = [0, 0], sizes = [4, 65], strides = [1, 1]} : vector<4x512xbf16> to vector<4x65xbf16>
      %183 = tpu.concatenate %181, %182 in 1 : vector<4x447xbf16>, vector<4x65xbf16> -> vector<4x512xbf16>
      %c23 = arith.constant 23 : index
      %c0_72 = arith.constant 0 : index
      %184 = vector.load %arg4[%c23, %c0_72] : memref<27x512xbf16, #tpu.memory_space<vmem>>, vector<1x512xbf16>
      %185 = vector.broadcast %184 : vector<1x512xbf16> to vector<4x512xbf16>
      %186 = arith.mulf %183, %185 : vector<4x512xbf16>
      %c80_73 = arith.constant 80 : index
      %c0_74 = arith.constant 0 : index
      %187 = vector.load %arg12[%c80_73, %c0_74] : memref<288x512xbf16, #tpu.memory_space<vmem>>, vector<4x512xbf16>
      tpu.vector_store %arg12[%c80_73, %c0_74], %186 {strides = array<i32>} : memref<288x512xbf16, #tpu.memory_space<vmem>>, vector<4x512xbf16>,
      %188 = vector.extract_strided_slice %11 {offsets = [0, 71], sizes = [4, 441], strides = [1, 1]} : vector<4x512xbf16> to vector<4x441xbf16>
      %189 = vector.extract_strided_slice %11 {offsets = [0, 0], sizes = [4, 71], strides = [1, 1]} : vector<4x512xbf16> to vector<4x71xbf16>
      %190 = tpu.concatenate %188, %189 in 1 : vector<4x441xbf16>, vector<4x71xbf16> -> vector<4x512xbf16>
      %c24 = arith.constant 24 : index
      %c0_75 = arith.constant 0 : index
      %191 = vector.load %arg4[%c24, %c0_75] : memref<27x512xbf16, #tpu.memory_space<vmem>>, vector<1x512xbf16>
      %192 = vector.broadcast %191 : vector<1x512xbf16> to vector<4x512xbf16>
      %193 = arith.mulf %190, %192 : vector<4x512xbf16>
      %c96_76 = arith.constant 96 : index
      %c0_77 = arith.constant 0 : index
      %194 = vector.load %arg12[%c96_76, %c0_77] : memref<288x512xbf16, #tpu.memory_space<vmem>>, vector<4x512xbf16>
      tpu.vector_store %arg12[%c96_76, %c0_77], %193 {strides = array<i32>} : memref<288x512xbf16, #tpu.memory_space<vmem>>, vector<4x512xbf16>,
      %195 = vector.extract_strided_slice %11 {offsets = [0, 72], sizes = [4, 440], strides = [1, 1]} : vector<4x512xbf16> to vector<4x440xbf16>
      %196 = vector.extract_strided_slice %11 {offsets = [0, 0], sizes = [4, 72], strides = [1, 1]} : vector<4x512xbf16> to vector<4x72xbf16>
      %197 = tpu.concatenate %195, %196 in 1 : vector<4x440xbf16>, vector<4x72xbf16> -> vector<4x512xbf16>
      %c25 = arith.constant 25 : index
      %c0_78 = arith.constant 0 : index
      %198 = vector.load %arg4[%c25, %c0_78] : memref<27x512xbf16, #tpu.memory_space<vmem>>, vector<1x512xbf16>
      %199 = vector.broadcast %198 : vector<1x512xbf16> to vector<4x512xbf16>
      %200 = arith.mulf %197, %199 : vector<4x512xbf16>
      %c112_79 = arith.constant 112 : index
      %c0_80 = arith.constant 0 : index
      %201 = vector.load %arg12[%c112_79, %c0_80] : memref<288x512xbf16, #tpu.memory_space<vmem>>, vector<4x512xbf16>
      tpu.vector_store %arg12[%c112_79, %c0_80], %200 {strides = array<i32>} : memref<288x512xbf16, #tpu.memory_space<vmem>>, vector<4x512xbf16>,
      %202 = vector.extract_strided_slice %11 {offsets = [0, 73], sizes = [4, 439], strides = [1, 1]} : vector<4x512xbf16> to vector<4x439xbf16>
      %203 = vector.extract_strided_slice %11 {offsets = [0, 0], sizes = [4, 73], strides = [1, 1]} : vector<4x512xbf16> to vector<4x73xbf16>
      %204 = tpu.concatenate %202, %203 in 1 : vector<4x439xbf16>, vector<4x73xbf16> -> vector<4x512xbf16>
      %c26 = arith.constant 26 : index
      %c0_81 = arith.constant 0 : index
      %205 = vector.load %arg4[%c26, %c0_81] : memref<27x512xbf16, #tpu.memory_space<vmem>>, vector<1x512xbf16>
      %206 = vector.broadcast %205 : vector<1x512xbf16> to vector<4x512xbf16>
      %207 = arith.mulf %204, %206 : vector<4x512xbf16>
      %c128_82 = arith.constant 128 : index
      %c0_83 = arith.constant 0 : index
      %208 = vector.load %arg12[%c128_82, %c0_83] : memref<288x512xbf16, #tpu.memory_space<vmem>>, vector<4x512xbf16>
      tpu.vector_store %arg12[%c128_82, %c0_83], %207 {strides = array<i32>} : memref<288x512xbf16, #tpu.memory_space<vmem>>, vector<4x512xbf16>,
      %c2_84 = arith.constant 2 : index
      %c0_85 = arith.constant 0 : index
      %c0_86 = arith.constant 0 : index
      %209 = vector.load %arg3[%c2_84, %c0_85, %c0_86] : memref<3x8x144xbf16, #tpu.memory_space<vmem>>, vector<1x8x144xbf16>
      %210 = vector.shape_cast %209 : vector<1x8x144xbf16> to vector<8x144xbf16>
      %c0_87 = arith.constant 0 : index
      %c0_88 = arith.constant 0 : index
      %211 = vector.load %arg12[%c0_87, %c0_88] : memref<288x512xbf16, #tpu.memory_space<vmem>>, vector<144x512xbf16>
      %cst_89 = arith.constant dense<0.000000e+00> : vector<8x512xf32>
      %212 = tpu.matmul %210, %211, %cst_89 {dimension_numbers = #tpu.dot_dimension_numbers<[1], [0], [0], [1], [0, 0, 1, 1], [], []>} : vector<8x144xbf16>, vector<144x512xbf16>, vector<8x512xf32> -> vector<8x512xf32>
      %213 = arith.addf %145, %212 : vector<8x512xf32>
      %214 = arith.index_cast %arg1 : i32 to index
      %c0_90 = arith.constant 0 : index
      %c0_91 = arith.constant 0 : index
      %215 = vector.load %arg8[%214, %c0_90, %c0_91] : memref<2x8x512xf32, #tpu.memory_space<vmem>>, vector<1x8x512xf32>
      %216 = vector.shape_cast %215 : vector<1x8x512xf32> to vector<8x512xf32>
      %217 = vector.shape_cast %213 : vector<8x512xf32> to vector<1x8x512xf32>
      tpu.vector_store %arg8[%214, %c0_90, %c0_91], %217 {strides = array<i32>} : memref<2x8x512xf32, #tpu.memory_space<vmem>>, vector<1x8x512xf32>,
      %c0_i32_92 = arith.constant 0 : i32
      %218 = arith.cmpi eq, %arg1, %c0_i32_92 : i32
      %219 = arith.extui %218 : i1 to i32
      %c0_i32_93 = arith.constant 0 : i32
      %220 = arith.cmpi ne, %219, %c0_i32_93 : i32
      scf.if %220 {
        %cst_106 = arith.constant dense<0.000000e+00> : vector<8xf32>
        %235 = vector.multi_reduction <add>, %213, %cst_106 [1] : vector<8x512xf32> to vector<8xf32>
        %236 = vector.shape_cast %235 : vector<8xf32> to vector<8x1xf32>
        %cst_107 = arith.constant 0.001953125 : f32
        %237 = vector.broadcast %cst_107 : f32 to vector<8x1xf32>
        %238 = arith.mulf %236, %237 : vector<8x1xf32>
        %c0_108 = arith.constant 0 : index
        %c0_109 = arith.constant 0 : index
        %239 = vector.load %arg11[%c0_108, %c0_109] : memref<8x1xf32, #tpu.memory_space<vmem>>, vector<8x1xf32>
        tpu.vector_store %arg11[%c0_108, %c0_109], %238 {strides = array<i32>} : memref<8x1xf32, #tpu.memory_space<vmem>>, vector<8x1xf32>,
      } else {
      }
      %c0_94 = arith.constant 0 : index
      %c0_95 = arith.constant 0 : index
      %221 = vector.load %arg11[%c0_94, %c0_95] : memref<8x1xf32, #tpu.memory_space<vmem>>, vector<8x1xf32>
      %222 = vector.broadcast %221 : vector<8x1xf32> to vector<8x512xf32>
      %223 = arith.subf %213, %222 : vector<8x512xf32>
      %c0_96 = arith.constant 0 : index
      %c0_97 = arith.constant 0 : index
      %224 = vector.load %arg9[%c0_96, %c0_97] : memref<8x1xf32, #tpu.memory_space<vmem>>, vector<8x1xf32>
      %cst_98 = arith.constant dense<0.000000e+00> : vector<8xf32>
      %225 = vector.multi_reduction <add>, %213, %cst_98 [1] : vector<8x512xf32> to vector<8xf32>
      %226 = vector.shape_cast %225 : vector<8xf32> to vector<8x1xf32>
      %227 = arith.addf %224, %226 : vector<8x1xf32>
      %c0_99 = arith.constant 0 : index
      %c0_100 = arith.constant 0 : index
      %228 = vector.load %arg9[%c0_99, %c0_100] : memref<8x1xf32, #tpu.memory_space<vmem>>, vector<8x1xf32>
      tpu.vector_store %arg9[%c0_99, %c0_100], %227 {strides = array<i32>} : memref<8x1xf32, #tpu.memory_space<vmem>>, vector<8x1xf32>,
      %c0_101 = arith.constant 0 : index
      %c0_102 = arith.constant 0 : index
      %229 = vector.load %arg10[%c0_101, %c0_102] : memref<8x1xf32, #tpu.memory_space<vmem>>, vector<8x1xf32>
      %230 = arith.mulf %223, %223 : vector<8x512xf32>
      %cst_103 = arith.constant dense<0.000000e+00> : vector<8xf32>
      %231 = vector.multi_reduction <add>, %230, %cst_103 [1] : vector<8x512xf32> to vector<8xf32>
      %232 = vector.shape_cast %231 : vector<8xf32> to vector<8x1xf32>
      %233 = arith.addf %229, %232 : vector<8x1xf32>
      %c0_104 = arith.constant 0 : index
      %c0_105 = arith.constant 0 : index
      %234 = vector.load %arg10[%c0_104, %c0_105] : memref<8x1xf32, #tpu.memory_space<vmem>>, vector<8x1xf32>
      tpu.vector_store %arg10[%c0_104, %c0_105], %233 {strides = array<i32>} : memref<8x1xf32, #tpu.memory_space<vmem>>, vector<8x1xf32>,
    } else {
    }
    %c1_i32 = arith.constant 1 : i32
    %3 = arith.cmpi eq, %arg0, %c1_i32 : i32
    %4 = arith.extui %3 : i1 to i32
    %c0_i32_1 = arith.constant 0 : i32
    %5 = arith.cmpi ne, %4, %c0_i32_1 : i32
    scf.if %5 {
      %c0 = arith.constant 0 : index
      %c0_2 = arith.constant 0 : index
      %6 = vector.load %arg9[%c0, %c0_2] : memref<8x1xf32, #tpu.memory_space<vmem>>, vector<8x1xf32>
      %cst = arith.constant 9.765625E-4 : f32
      %7 = vector.broadcast %cst : f32 to vector<8x1xf32>
      %8 = arith.mulf %6, %7 : vector<8x1xf32>
      %c0_3 = arith.constant 0 : index
      %c0_4 = arith.constant 0 : index
      %9 = vector.load %arg11[%c0_3, %c0_4] : memref<8x1xf32, #tpu.memory_space<vmem>>, vector<8x1xf32>
      %10 = arith.subf %8, %9 : vector<8x1xf32>
      %c0_5 = arith.constant 0 : index
      %c0_6 = arith.constant 0 : index
      %11 = vector.load %arg10[%c0_5, %c0_6] : memref<8x1xf32, #tpu.memory_space<vmem>>, vector<8x1xf32>
      %cst_7 = arith.constant 9.765625E-4 : f32
      %12 = vector.broadcast %cst_7 : f32 to vector<8x1xf32>
      %13 = arith.mulf %11, %12 : vector<8x1xf32>
      %14 = arith.mulf %10, %10 : vector<8x1xf32>
      %15 = arith.subf %13, %14 : vector<8x1xf32>
      %cst_8 = arith.constant 0.000000e+00 : f32
      %16 = vector.broadcast %cst_8 : f32 to vector<8x1xf32>
      %17 = arith.maximumf %15, %16 : vector<8x1xf32>
      %c0_9 = arith.constant 0 : index
      %c0_10 = arith.constant 0 : index
      %18 = vector.load %arg5[%c0_9, %c0_10] : memref<8x1xf32, #tpu.memory_space<vmem>>, vector<8x1xf32>
      %cst_11 = arith.constant 9.99999974E-6 : f32
      %19 = vector.broadcast %cst_11 : f32 to vector<8x1xf32>
      %20 = arith.addf %17, %19 : vector<8x1xf32>
      %21 = math.rsqrt %20 : vector<8x1xf32>
      %22 = arith.mulf %18, %21 : vector<8x1xf32>
      %c0_12 = arith.constant 0 : index
      %c0_13 = arith.constant 0 : index
      %23 = vector.load %arg6[%c0_12, %c0_13] : memref<8x1xf32, #tpu.memory_space<vmem>>, vector<8x1xf32>
      %24 = arith.mulf %8, %22 : vector<8x1xf32>
      %25 = arith.subf %23, %24 : vector<8x1xf32>
      %26 = arith.index_cast %arg1 : i32 to index
      %c0_14 = arith.constant 0 : index
      %c0_15 = arith.constant 0 : index
      %27 = vector.load %arg8[%26, %c0_14, %c0_15] : memref<2x8x512xf32, #tpu.memory_space<vmem>>, vector<1x8x512xf32>
      %28 = vector.shape_cast %27 : vector<1x8x512xf32> to vector<8x512xf32>
      %29 = vector.broadcast %22 : vector<8x1xf32> to vector<8x512xf32>
      %30 = arith.mulf %28, %29 : vector<8x512xf32>
      %31 = vector.broadcast %25 : vector<8x1xf32> to vector<8x512xf32>
      %32 = arith.addf %30, %31 : vector<8x512xf32>
      %cst_16 = arith.constant 0.000000e+00 : f32
      %33 = vector.broadcast %cst_16 : f32 to vector<8x512xf32>
      %34 = arith.maximumf %32, %33 : vector<8x512xf32>
      %35 = vector.shape_cast %34 : vector<8x512xf32> to vector<1x8x512xf32>
      %c0_17 = arith.constant 0 : index
      %c0_18 = arith.constant 0 : index
      %c0_19 = arith.constant 0 : index
      %36 = vector.load %arg7[%c0_17, %c0_18, %c0_19] : memref<1x8x512xf32, #tpu.memory_space<vmem>>, vector<1x8x512xf32>
      tpu.vector_store %arg7[%c0_17, %c0_18, %c0_19], %35 {strides = array<i32>} : memref<1x8x512xf32, #tpu.memory_space<vmem>>, vector<1x8x512xf32>,
    } else {
    }
    return
  }
  func.func @transform_0(%arg0: i32, %arg1: i32) -> (i32, i32, i32) {
    %c1_i32 = arith.constant 1 : i32
    %0 = arith.subi %c1_i32, %arg0 : i32
    %1 = arith.muli %arg1, %0 : i32
    %c0_i32 = arith.constant 0 : i32
    %c0_i32_0 = arith.constant 0 : i32
    %c0_i32_1 = arith.constant 0 : i32
    return %1, %c0_i32, %c0_i32_0 : i32, i32, i32
  }
  func.func @transform_1(%arg0: i32, %arg1: i32) -> (i32, i32, i32) {
    %c0_i32 = arith.constant 0 : i32
    %c0_i32_0 = arith.constant 0 : i32
    %c0_i32_1 = arith.constant 0 : i32
    %c0_i32_2 = arith.constant 0 : i32
    return %c0_i32, %c0_i32_0, %c0_i32_1 : i32, i32, i32
  }
  func.func @transform_2(%arg0: i32, %arg1: i32) -> (i32, i32) {
    %c0_i32 = arith.constant 0 : i32
    %c0_i32_0 = arith.constant 0 : i32
    %c0_i32_1 = arith.constant 0 : i32
    return %c0_i32, %c0_i32_0 : i32, i32
  }
  func.func @transform_3(%arg0: i32, %arg1: i32) -> (i32, i32) {
    %c0_i32 = arith.constant 0 : i32
    %c0_i32_0 = arith.constant 0 : i32
    %c0_i32_1 = arith.constant 0 : i32
    return %c0_i32, %c0_i32_0 : i32, i32
  }
  func.func @transform_4(%arg0: i32, %arg1: i32) -> (i32, i32) {
    %c0_i32 = arith.constant 0 : i32
    %c0_i32_0 = arith.constant 0 : i32
    %c0_i32_1 = arith.constant 0 : i32
    return %c0_i32, %c0_i32_0 : i32, i32
  }
  func.func @transform_5(%arg0: i32, %arg1: i32) -> (i32, i32, i32) {
    %0 = arith.muli %arg1, %arg0 : i32
    %c0_i32 = arith.constant 0 : i32
    %c0_i32_0 = arith.constant 0 : i32
    %c0_i32_1 = arith.constant 0 : i32
    return %0, %c0_i32, %c0_i32_0 : i32, i32, i32
  }
}

</mosaic_0001>

<bundles_post_ra>
// kernel: conv_transpose3d_block.1
= control target key start
LH: loop header
LB: loop body
LE: loop exit
PB: predicated region body
PF: predicated region fallthrough
CT: control target
= control target key end

     0   :  { %s3829_s18 = smov 0   ;;  %s3831_s19 = smov 0   ;;  %s5172_s0 = inlined_call_operand.vmem [shape: f32[2,4,512], index: 0, kind: input, shape index: {}]   ;;  %s5173_s1 = inlined_call_operand.vmem [shape: bf16[3,8,144], index: 1, kind: input, shape index: {}]   ;;  %s5174_s2 = inlined_call_operand.vmem [shape: bf16[27,512], index: 2, kind: input, shape index: {}]   ;;  %s5175_s3 = inlined_call_operand.vmem [shape: f32[8,1], index: 3, kind: input, shape index: {}]   ;;  %s5176_s4 = inlined_call_operand.vmem [shape: f32[8,1], index: 4, kind: input, shape index: {}]   ;;  %s5177_s5 = inlined_call_operand.vmem [shape: f32[2,8,512], index: 5, kind: output, shape index: {}]  }
   0x1   :  { %s3833_s20 = smov 0   ;;  %s3835_s21 = smov 0  }
   0x2   :  { %s3837_s22 = smov 0  }
   0x3 LB: > { %s24_s23 = sadd.s32 1, %s3768_s20  ;;  %s27_s24 = sadd.s32 1, %s3772_s21  ;;  %s3776_s22 = sphi %s3837_s22, %s15_s22   ;;  %s3772_s21 = sphi %s3835_s21, %s5218_s21   ;;  %s3768_s20 = sphi %s3833_s20, %s5217_s20   ;;  %s3764_s19 = sphi %s3831_s19, %s5216_s19   ;;  %s3760_s18 = sphi %s3829_s18, %s5215_s18  }
   0x4   : > { %p25_p0 = scmp.ge.s32.totalorder %s24_s23, 2  ;;  %p3095_p1 = scmp.ge.s32.totalorder %s3776_s22, 1 }
   0x5   : > { %p209_p2 = scmp.lt.s32.totalorder %s3776_s22, 5 }
   0x6   : > { %s5220_s23 = smov (%p25_p0, %s24_s23), 0  ;;  %s5222_s24 = smov (!%p25_p0, %s27_s24), %s3772_s21 }
   0x7   : > { %p210_p3 = pnand %p3095_p1, %p209_p2  ;;  %p29_p4 = scmp.ge.s32.totalorder %s5222_s24, 2 }
   0x8   : > { %s240_s25 = ssub.s32 (!%p210_p3), 1, %s3764_s19  ;;  %s249_s26 = smul.u32 (!%p210_p3), %s3760_s18, %s3764_s19 }
   0x9   : > { %s5224_s24 = smov (%p29_p4, %s5222_s24), 0  ;;  %213 = sbr.rel (%p210_p3) target bundleno = 1205 (0x4b5), region = 40 }
   0xa   : > { %s241_s27 = smul.u32 (!%p210_p3), %s3760_s18, %s240_s25  ;;  %p250_p5 = scmp.lt.s32.totalorder (!%p210_p3), %s249_s26, 1 }
   0xb   : > { %p3100_p7 = scmp.ne.s32.totalorder (!%p210_p3), %s3764_s19, 0 }
   0xc   : > { %p242_p6 = scmp.lt.s32.totalorder (!%p210_p3), %s241_s27, 1 }
   0xe   : > { %s5226_s26 = smov (!%p250_p5, %s249_s26), 1  ;;  %s5228_s27 = smov (!%p242_p6, %s241_s27), 1 }
   0xf   : > { %s3557_s28 = sshll.u32 %s5226_s26, 5  ;;  %s3556_s29 = sshll.u32 %s5228_s27, 4 }
  0x10   : > { %s3870_s7 = scalar_lea.vmem %s5177_s5, %s3557_s28  ;;  %s3875_s10 = scalar_lea.vmem %s5172_s0, %s3556_s29 }
  0x11   : > { %260 = sbr.rel (%p3100_p7) target bundleno = 1034 (0x40a), region = 44 }
  0x16   : > { %p3101_p8 = scmp.ne.s32.totalorder %s3760_s18, 0 }
  0x18   : > { %264 = sbr.rel (%p3101_p8) target bundleno = 104 (0x68), region = 48 }
  0x1d   : > { %vm265_vm0 = vcmask 7168   ;;  %v3778_v0 = vmov 0.0   ;;  %v3779_v1 = vmov 0  }
  0x1e   : > { %266 = vst.msk [vmem:[#allocation3] sm:$0xff] %vm265_vm0, %v3778_v0 }
  0x1f   : > { %267 = vst.msk [vmem:[#allocation4] sm:$0xff] %vm265_vm0, %v3778_v0 }
  0x20   : > { %268 = vst [vmem:[#allocation6] sm:$0xff] %v3779_v1 }
  0x21   : > { %269 = vst [vmem:[#allocation6 + $0x8] sm:$0xff] %v3779_v1 }
  0x22   : > { %270 = vst [vmem:[#allocation6 + $0x10] sm:$0xff] %v3779_v1 }
  0x23   : > { %271 = vst [vmem:[#allocation6 + $0x18] sm:$0xff] %v3779_v1 }
  0x24   : > { %272 = vst [vmem:[#allocation6 + $0x20] sm:$0xff] %v3779_v1 }
  0x25   : > { %273 = vst [vmem:[#allocation6 + $0x28] sm:$0xff] %v3779_v1 }
  0x26   : > { %274 = vst [vmem:[#allocation6 + $0x30] sm:$0xff] %v3779_v1 }
  0x27   : > { %275 = vst [vmem:[#allocation6 + $0x38] sm:$0xff] %v3779_v1 }
  0x28   : > { %276 = vst [vmem:[#allocation6 + $0x40] sm:$0xff] %v3779_v1 }
  0x29   : > { %277 = vst [vmem:[#allocation6 + $0x48] sm:$0xff] %v3779_v1 }
  0x2a   : > { %278 = vst [vmem:[#allocation6 + $0x50] sm:$0xff] %v3779_v1 }
  0x2b   : > { %279 = vst [vmem:[#allocation6 + $0x58] sm:$0xff] %v3779_v1 }
  0x2c   : > { %280 = vst [vmem:[#allocation6 + $0x60] sm:$0xff] %v3779_v1 }
  0x2d   : > { %281 = vst [vmem:[#allocation6 + $0x68] sm:$0xff] %v3779_v1 }
  0x2e   : > { %282 = vst [vmem:[#allocation6 + $0x70] sm:$0xff] %v3779_v1 }
  0x2f   : > { %283 = vst [vmem:[#allocation6 + $0x78] sm:$0xff] %v3779_v1 }
  0x30   : > { %284 = vst [vmem:[#allocation6 + $0x80] sm:$0xff] %v3779_v1 }
  0x31   : > { %285 = vst [vmem:[#allocation6 + $0x88] sm:$0xff] %v3779_v1 }
  0x32   : > { %286 = vst [vmem:[#allocation6 + $0x90] sm:$0xff] %v3779_v1 }
  0x33   : > { %287 = vst [vmem:[#allocation6 + $0x98] sm:$0xff] %v3779_v1 }
  0x34   : > { %288 = vst [vmem:[#allocation6 + $0xa0] sm:$0xff] %v3779_v1 }
  0x35   : > { %289 = vst [vmem:[#allocation6 + $0xa8] sm:$0xff] %v3779_v1 }
  0x36   : > { %290 = vst [vmem:[#allocation6 + $0xb0] sm:$0xff] %v3779_v1 }
  0x37   : > { %291 = vst [vmem:[#allocation6 + $0xb8] sm:$0xff] %v3779_v1 }
  0x38   : > { %292 = vst [vmem:[#allocation6 + $0xc0] sm:$0xff] %v3779_v1 }
  0x39   : > { %293 = vst [vmem:[#allocation6 + $0xc8] sm:$0xff] %v3779_v1 }
  0x3a   : > { %294 = vst [vmem:[#allocation6 + $0xd0] sm:$0xff] %v3779_v1 }
  0x3b   : > { %295 = vst [vmem:[#allocation6 + $0xd8] sm:$0xff] %v3779_v1 }
  0x3c   : > { %296 = vst [vmem:[#allocation6 + $0xe0] sm:$0xff] %v3779_v1 }
  0x3d   : > { %297 = vst [vmem:[#allocation6 + $0xe8] sm:$0xff] %v3779_v1 }
  0x3e   : > { %298 = vst [vmem:[#allocation6 + $0xf0] sm:$0xff] %v3779_v1 }
  0x3f   : > { %299 = vst [vmem:[#allocation6 + $0xf8] sm:$0xff] %v3779_v1 }
  0x40   : > { %300 = vst [vmem:[#allocation6 + $0x100] sm:$0xff] %v3779_v1 }
  0x41   : > { %301 = vst [vmem:[#allocation6 + $0x108] sm:$0xff] %v3779_v1 }
  0x42   : > { %302 = vst [vmem:[#allocation6 + $0x110] sm:$0xff] %v3779_v1 }
  0x43   : > { %303 = vst [vmem:[#allocation6 + $0x118] sm:$0xff] %v3779_v1 }
  0x44   : > { %304 = vst [vmem:[#allocation6 + $0x120] sm:$0xff] %v3779_v1 }
  0x45   : > { %305 = vst [vmem:[#allocation6 + $0x128] sm:$0xff] %v3779_v1 }
  0x46   : > { %306 = vst [vmem:[#allocation6 + $0x130] sm:$0xff] %v3779_v1 }
  0x47   : > { %307 = vst [vmem:[#allocation6 + $0x138] sm:$0xff] %v3779_v1 }
  0x48   : > { %308 = vst [vmem:[#allocation6 + $0x140] sm:$0xff] %v3779_v1 }
  0x49   : > { %309 = vst [vmem:[#allocation6 + $0x148] sm:$0xff] %v3779_v1 }
  0x4a   : > { %310 = vst [vmem:[#allocation6 + $0x150] sm:$0xff] %v3779_v1 }
  0x4b   : > { %311 = vst [vmem:[#allocation6 + $0x158] sm:$0xff] %v3779_v1 }
  0x4c   : > { %312 = vst [vmem:[#allocation6 + $0x160] sm:$0xff] %v3779_v1 }
  0x4d   : > { %313 = vst [vmem:[#allocation6 + $0x168] sm:$0xff] %v3779_v1 }
  0x4e   : > { %314 = vst [vmem:[#allocation6 + $0x170] sm:$0xff] %v3779_v1 }
  0x4f   : > { %315 = vst [vmem:[#allocation6 + $0x178] sm:$0xff] %v3779_v1 }
  0x50   : > { %316 = vst [vmem:[#allocation6 + $0x180] sm:$0xff] %v3779_v1 }
  0x51   : > { %317 = vst [vmem:[#allocation6 + $0x188] sm:$0xff] %v3779_v1 }
  0x52   : > { %318 = vst [vmem:[#allocation6 + $0x190] sm:$0xff] %v3779_v1 }
  0x53   : > { %319 = vst [vmem:[#allocation6 + $0x198] sm:$0xff] %v3779_v1 }
  0x54   : > { %320 = vst [vmem:[#allocation6 + $0x1a0] sm:$0xff] %v3779_v1 }
  0x55   : > { %321 = vst [vmem:[#allocation6 + $0x1a8] sm:$0xff] %v3779_v1 }
  0x56   : > { %322 = vst [vmem:[#allocation6 + $0x1b0] sm:$0xff] %v3779_v1 }
  0x57   : > { %323 = vst [vmem:[#allocation6 + $0x1b8] sm:$0xff] %v3779_v1 }
  0x58   : > { %324 = vst [vmem:[#allocation6 + $0x1c0] sm:$0xff] %v3779_v1 }
  0x59   : > { %325 = vst [vmem:[#allocation6 + $0x1c8] sm:$0xff] %v3779_v1 }
  0x5a   : > { %326 = vst [vmem:[#allocation6 + $0x1d0] sm:$0xff] %v3779_v1 }
  0x5b   : > { %327 = vst [vmem:[#allocation6 + $0x1d8] sm:$0xff] %v3779_v1 }
  0x5c   : > { %328 = vst [vmem:[#allocation6 + $0x1e0] sm:$0xff] %v3779_v1 }
  0x5d   : > { %329 = vst [vmem:[#allocation6 + $0x1e8] sm:$0xff] %v3779_v1 }
  0x5e   : > { %330 = vst [vmem:[#allocation6 + $0x1f0] sm:$0xff] %v3779_v1 }
  0x5f   : > { %331 = vst [vmem:[#allocation6 + $0x1f8] sm:$0xff] %v3779_v1 }
  0x60   : > { %332 = vst [vmem:[#allocation6 + $0x200] sm:$0xff] %v3779_v1 }
  0x61   : > { %333 = vst [vmem:[#allocation6 + $0x208] sm:$0xff] %v3779_v1 }
  0x62   : > { %334 = vst [vmem:[#allocation6 + $0x210] sm:$0xff] %v3779_v1 }
  0x63   : > { %335 = vst [vmem:[#allocation6 + $0x218] sm:$0xff] %v3779_v1 }
  0x64   : > { %336 = vst [vmem:[#allocation6 + $0x220] sm:$0xff] %v3779_v1 }
  0x65   : > { %337 = vst [vmem:[#allocation6 + $0x228] sm:$0xff] %v3779_v1 }
  0x66   : > { %338 = vst [vmem:[#allocation6 + $0x230] sm:$0xff] %v3779_v1 }
  0x67   : > { %339 = vst [vmem:[#allocation6 + $0x238] sm:$0xff] %v3779_v1 }
  0x68 PF: > { %v341_v2 = vld [vmem:[%s3875_s10 + $0x8] sm:$0xff]  ;;  %v340_v3 = vld [vmem:[%s3875_s10] sm:$0xff]  ;;  %s3780_s11 = smov 120   ;;  %s3781_s12 = smov 121   ;;  %v1392_v18 = vld [vmem:[%s5174_s2 + $0x10] sm:$0x88] }
  0x69   : > { %346 = vst [vmem:[#allocation1 + $0x10] ss:$2 sm:$0xff] %v341_v2  ;;  %s3782_s13 = smov 127   ;;  %s3783_s14 = smov 1   ;;  %v1396_v19 = vunpack.c.l.b16 %v1392_v18  ;;  %v4021_v20 = vld [vmem:[%s5174_s2 + $0x18] sm:$0x88]  ;;  %v1397_v35 = vunpack.c.h.b16 %v1392_v18 }
  0x6a   : > { %344 = vst [vmem:[#allocation1] ss:$2 sm:$0xff] %v340_v3  ;;  %s3784_s15 = smov 7   ;;  %s3785_s16 = smov 119   ;;  %v1335_v23 = vunpack.c.h.b16 %v4021_v20  ;;  %v1461_v24 = vld [vmem:[%s5174_s2 + $0x28] sm:$0x11]  ;;  %v1334_v61 = vunpack.c.l.b16 %v4021_v20 }
  0x6b   : > { %s3786_s17 = smov 8   ;;  %s3787_s25 = smov 56   ;;  %v1400_v22 = vpack.c.b16 %v1396_v19, %v1396_v19  ;;  %v1460_v25 = vld [vmem:[%s5174_s2 + $0x20] sm:$0x11]  ;;  %v1393_v26 = vld [vmem:[%s5174_s2 + $0x18] sm:$0x88]  ;;  %v1466_v29 = vunpack.c.l.b16 %v1461_v24  ;;  %v1467_v30 = vunpack.c.h.b16 %v1461_v24  ;;  %v1401_v45 = vpack.c.b16 %v1397_v35, %v1397_v35 }
  0x6c   : > { %s3788_s26 = smov 9   ;;  %s3789_s29 = smov 57   ;;  %v1339_v28 = vpack.c.b16 %v1335_v23, %v1335_v23  ;;  %v1464_v32 = vunpack.c.l.b16 %v1460_v25  ;;  %v1465_v33 = vunpack.c.h.b16 %v1460_v25  ;;  %v1399_v34 = vunpack.c.h.b16 %v1393_v26  ;;  %v1260_v44 = vld [vmem:[%s5174_s2 + $0x10] sm:$0x44]  ;;  %v1328_v52 = vld [vmem:[%s5174_s2 + $0x10] sm:$0x88] }
  0x6d   : > { %s3790_s10 = smov 63   ;;  %v1405_v27 = vshrl.u32 %v1400_v22, 16  ;;  %v1470_v38 = vpack.c.b16 %v1466_v29, %v1466_v29  ;;  %v1471_v39 = vpack.c.b16 %v1467_v30, %v1467_v30  ;;  %v1398_v43 = vunpack.c.l.b16 %v1393_v26  ;;  %v1261_v22 = vld [vmem:[%s5174_s2 + $0x18] sm:$0x44]  ;;  %s3794_s30 = smov 71  }
  0x6e   : > { %v1353_v37 = vpack.i.b16 %v1339_v28, %v1339_v28  ;;  %v1468_v40 = vpack.c.b16 %v1464_v32, %v1464_v32  ;;  %v1469_v41 = vpack.c.b16 %v1465_v33, %v1465_v33  ;;  %v1403_v42 = vpack.c.b16 %v1399_v34, %v1399_v34 }
  0x6f   : > { %v1406_v36 = vpack.i.b16 %v1405_v27, %v1405_v27  ;;  %v1264_v46 = vunpack.c.l.b16 %v1260_v44  ;;  %v1265_v47 = vunpack.c.h.b16 %v1260_v44  ;;  %v1481_v50 = vpack.i.b16 %v1470_v38, %v1470_v38 }
  0x70   : > { %v349_v4 = vld.sshfl [vmem:[#allocation1 + $0x10] sm:$0xff pattern:$0x75316420]  ;;  %v350_v5 = vld.sshfl [vmem:[#allocation1 + $0x18] sm:$0xff pattern:$0x75316420]  ;;  %v1485_v51 = vpack.i.b16 %v1471_v39, %v1471_v39  ;;  %v1473_v56 = vpack.i.b16 %v1468_v40, %v1468_v40  ;;  %v1477_v57 = vpack.i.b16 %v1469_v41, %v1469_v41  ;;  %v1402_v59 = vpack.c.b16 %v1398_v43, %v1398_v43 }
  0x71   : > { %v3955_v6 = vpack.c.bf16 %v350_v5, %v349_v4  ;;  %v347_v7 = vld.sshfl [vmem:[#allocation1] sm:$0xff pattern:$0x75316420]  ;;  %v348_v8 = vld.sshfl [vmem:[#allocation1 + $0x8] sm:$0xff pattern:$0x75316420]  ;;  %v1268_v53 = vpack.c.b16 %v1264_v46, %v1264_v46  ;;  %v1269_v54 = vpack.c.b16 %v1265_v47, %v1265_v47  ;;  %v1332_v0 = vunpack.c.l.b16 %v1328_v52 }
  0x72   : > { %v3957_v9 = vpack.c.bf16 %v348_v8, %v347_v7  ;;  %v1408_v48 = vperm.slane %v1406_v36, 3  ;;  %v4052_v49 = vperm.slane %v1353_v37, 3  ;;  %v1420_v58 = vshrl.u32 %v1403_v42, 16  ;;  %v4094_v43 = vld [vmem:[%s5174_s2 + $0x10] sm:$0x22] }
  0x73   : > { %v365_v10 = vunpack.c.l.b16 %v3955_v6  ;;  %v358_v14 = vunpack.c.h.b16 %v3955_v6  ;;  %v1410_v60 = vshrl.u32 %v1401_v45, 16  ;;  %v1273_v62 = vshrl.u32 %v1268_v53, 16 }
  0x74   : > { %v363_v11 = vunpack.c.l.b16 %v3957_v9  ;;  %v364_v15 = vunpack.c.h.b16 %v3957_v9  ;;  %v1278_v63 = vshrl.u32 %v1269_v54, 16  ;;  %vm1380_vm1 = vcmask 990208  }
  0x75   : > { %v3961_v12 = vpack.c.b16 %v365_v10, %v365_v10  ;;  %v3970_v16 = vpack.c.b16 %v358_v14, %v358_v14  ;;  %v1333_v1 = vunpack.c.h.b16 %v1328_v52  ;;  %v4060_v2 = vunpack.c.l.bf16 %v1408_v48  ;;  %v1216_v10 = vld [vmem:[%s5174_s2 + $0x10] sm:$0x44] }
  0x76   : > { %v3963_v13 = vpack.c.b16 %v363_v11, %v363_v11  ;;  %v3972_v17 = vpack.c.b16 %v364_v15, %v364_v15  ;;  %v1363_v3 = vunpack.c.l.bf16 %v4052_v49  ;;  %v4063_v4 = vperm.slane %v1481_v50, 0 }
  0x77   : > { %1444 = vrot.lane.b32.xlu1 %v3961_v12, %s3780_s11  ;;  %v4065_v5 = vperm.slane %v1485_v51, 0  ;;  %v4067_v7 = vperm.slane %v1473_v56, 0  ;;  %v4069_v8 = vperm.slane %v1477_v57, 0  ;;  %v1274_v11 = vpack.i.b16 %v1273_v62, %v1273_v62 }
  0x78   : > { %1372 = vrot.lane.b32.xlu2 %v3963_v13, %s3781_s12  ;;  %1440 = vrot.lane.b32.xlu0 %v3963_v13, %s3780_s11  ;;  %v1279_v14 = vpack.i.b16 %v1278_v63, %v1278_v63  ;;  %vm1448_vm2 = vcmask 982016   ;;  %v1421_v15 = vpack.i.b16 %v1420_v58, %v1420_v58  ;;  %v1411_v18 = vpack.i.b16 %v1410_v60, %v1410_v60 }
  0x79   : > { %v1415_v19 = vshrl.u32 %v1402_v59, 16  ;;  %v1338_v20 = vpack.c.b16 %v1334_v61, %v1334_v61  ;;  %v1336_v23 = vpack.c.b16 %v1332_v0, %v1332_v0  ;;  %v1337_v24 = vpack.c.b16 %v1333_v1, %v1333_v1 }
  0x7a   : > { %v1276_v25 = vperm.slane %v1274_v11, 2  ;;  %v1281_v26 = vperm.slane %v1279_v14, 2  ;;  %vm1316_vm3 = vcmask 1039360   ;;  %v1221_v28 = vunpack.c.h.b16 %v1216_v10 }
  0x7b   : > { %v1220_v29 = vunpack.c.l.b16 %v1216_v10  ;;  %v1292_v30 = vunpack.c.l.bf16 %v3957_v9  ;;  %v1293_v32 = vunpack.c.h.bf16 %v3957_v9  ;;  %v1494_v35 = vunpack.c.l.bf16 %v4063_v4 }
  0x7c   : > { %v1296_v36 = vunpack.c.l.bf16 %v1276_v25  ;;  %v1297_v37 = vunpack.c.l.bf16 %v1281_v26  ;;  %v1266_v38 = vunpack.c.l.b16 %v1261_v22  ;;  %v1423_v40 = vperm.slane %v1421_v15, 3 }
  0x7d   : > { %v1413_v41 = vperm.slane %v1411_v18, 3  ;;  %v1416_v42 = vpack.i.b16 %v1415_v19, %v1415_v19  ;;  %v1349_v9 = vpack.i.b16 %v1338_v20, %v1338_v20  ;;  %v1267_v46 = vunpack.c.h.b16 %v1261_v22  ;;  %v1217_v19 = vld [vmem:[%s5174_s2 + $0x18] sm:$0x44] }
  0x7e   : > { %v1300_v44 = vmul.f32 %v1296_v36, %v1292_v30  ;;  %v1301_v45 = vmul.f32 %v1297_v37, %v1293_v32  ;;  %v1341_v47 = vpack.i.b16 %v1336_v23, %v1336_v23  ;;  %v1345_v48 = vpack.i.b16 %v1337_v24, %v1337_v24 }
  0x7f   : > { %1446 = vrot.lane.b32.xlu1 %v3970_v16, %s3780_s11  ;;  %v1225_v50 = vpack.c.b16 %v1221_v28, %v1221_v28  ;;  %v1224_v51 = vpack.c.b16 %v1220_v29, %v1220_v29  ;;  %v1495_v52 = vunpack.c.l.bf16 %v4065_v5  ;;  %v1492_v53 = vunpack.c.l.bf16 %v4067_v7 }
  0x80   : > { %1374 = vrot.lane.b32.xlu2 %v3972_v17, %s3781_s12  ;;  %1442 = vrot.lane.b32.xlu0 %v3972_v17, %s3780_s11  ;;  %s3792_s11 = smov 65   ;;  %v1152_v54 = vunpack.c.l.b16 %v4094_v43  ;;  %v1270_v56 = vpack.c.b16 %v1266_v38, %v1266_v38  ;;  %v1493_v58 = vunpack.c.l.bf16 %v4069_v8  ;;  %v1418_v59 = vperm.slane %v1416_v42, 3 }
  0x81   : > { %v1304_v60 = vpack.c.bf16 %v1301_v45, %v1300_v44  ;;  %v4106_v61 = vunpack.c.l.bf16 %v1423_v40  ;;  %v4108_v62 = vunpack.c.l.bf16 %v1413_v41  ;;  %v4110_v63 = vperm.slane %v1349_v9, 3 }
  0x82   : > { %v1271_v0 = vpack.c.b16 %v1267_v46, %v1267_v46  ;;  %v4112_v4 = vperm.slane %v1341_v47, 3  ;;  %v4114_v5 = vperm.slane %v1345_v48, 3  ;;  %v1233_v7 = vpack.i.b16 %v1225_v50, %v1225_v50 }
  0x83   : > { %v1229_v8 = vpack.i.b16 %v1224_v51, %v1224_v51  ;;  %1306 = vst [vmem:[#allocation6 + $0x1a0] sm:$0x33] %v1304_v60  ;;  %v1156_v18 = vpack.c.b16 %v1152_v54, %v1152_v54  ;;  %v1283_v20 = vshrl.u32 %v1270_v56, 16  ;;  %v1222_v38 = vunpack.c.l.b16 %v1217_v19 }
  0x84   : > { %v1288_v30 = vshrl.u32 %v1271_v0, 16  ;;  %v4128_v37 = vperm.slane %v1233_v7, 2  ;;  %v1430_v9 = vunpack.c.l.bf16 %v1418_v59  ;;  %v1362_v44 = vunpack.c.l.bf16 %v4110_v63  ;;  %v4159_v59 = vld [vmem:[%s5174_s2 + $0x18] sm:$0x22] }
  0x85   : > { %v1161_v41 = vshrl.u32 %v1156_v18, 16  ;;  %v1284_v42 = vpack.i.b16 %v1283_v20, %v1283_v20  ;;  %v1360_v46 = vunpack.c.l.bf16 %v4112_v4  ;;  %v1361_v50 = vunpack.c.l.bf16 %v4114_v5 }
  0x86   : > { %v1289_v47 = vpack.i.b16 %v1288_v30, %v1288_v30  ;;  %v1249_v51 = vunpack.c.l.bf16 %v4128_v37  ;;  %v4161_v60 = vpack.c.b16 %v1222_v38, %v1222_v38  ;;  %v1091_v20 = vunpack.c.h.b16 %v4159_v59 }
  0x87   : > { %1378 = vrot.lane.b32.xlu1 %v3970_v16, %s3781_s12  ;;  %v1286_v0 = vperm.slane %v1284_v42, 2  ;;  %vm1204_vm4 = vcmask 7168   ;;  %vm1136_vm5 = vcmask 56320   ;;  %vm1072_vm6 = vcmask 64512  }
  0x88   : > { %1308 = vrot.lane.b32.xlu2 %v3963_v13, %s3782_s13  ;;  %1376 = vrot.lane.b32.xlu0 %v3961_v12, %s3781_s12  ;;  %v1291_v18 = vperm.slane %v1289_v47, 2  ;;  %v1095_v42 = vpack.c.b16 %v1091_v20, %v1091_v20  ;;  %v1084_v20 = vld [vmem:[%s5174_s2 + $0x10] sm:$0x22]  ;;  %s3795_s12 = smov 72   ;;  %vm1512_vm7 = vcmask 973824   ;;  %vm835_vm8 = vcmask 457728  }
  0x89   : > { %vm1004_vm9 = vcmask 72704   ;;  %vm771_vm10 = vcmask 465920   ;;  %vm1796_vm11 = vcmask 130048   ;;  %vm703_vm12 = vcmask 515072  }
  0x8a   : > { %v1299_v38 = vunpack.c.l.bf16 %v1291_v18  ;;  %vm639_vm13 = vcmask 523264   ;;  %vm571_vm14 = vcmask 531456   ;;  %vm903_vm15 = vcmask 449536  }
  0x8b   : > { %vm507_vm0 = vcmask 580608  }
  0x8f   : > { %1312 = vrot.lane.b32.xlu1 %v3961_v12, %s3782_s13 }
  0x90   : > { %1314 = vrot.lane.b32.xlu2 %v3970_v16, %s3782_s13  ;;  %1310 = vrot.lane.b32.xlu0 %v3972_v17, %s3782_s13 }
  0x97   : > { %1198 = vrot.lane.b32.xlu1 %v3963_v13, %s3783_s14 }
  0x98   : > { %1200 = vrot.lane.b32.xlu2 %v3972_v17, %s3783_s14  ;;  %1196 = vrot.lane.b32.xlu0 %v3970_v16, %s3783_s14 }
  0x9f   : > { %1128 = vrot.lane.b32.xlu1 %v3970_v16, %s3784_s15 }
  0xa0   : > { %1130 = vrot.lane.b32.xlu2 %v3963_v13, %s3784_s15  ;;  %1202 = vrot.lane.b32.xlu0 %v3961_v12, %s3783_s14  ;;  %s3793_s14 = smov 55  }
  0xa7   : > { %1134 = vrot.lane.b32.xlu1 %v3961_v12, %s3784_s15 }
  0xa8   : > { %1504 = vrot.lane.b32.xlu2 %v3963_v13, %s3785_s16  ;;  %1132 = vrot.lane.b32.xlu0 %v3972_v17, %s3784_s15 }
  0xaf   : > { %1508 = vrot.lane.b32.xlu1 %v3961_v12, %s3785_s16 }
  0xb0   : > { %1064 = vrot.lane.b32.xlu2 %v3970_v16, %s3786_s17  ;;  %1506 = vrot.lane.b32.xlu0 %v3972_v17, %s3785_s16 }
  0xb7   : > { %1068 = vrot.lane.b32.xlu1 %v3972_v17, %s3786_s17 }
  0xb8   : > { %1070 = vrot.lane.b32.xlu2 %v3961_v12, %s3786_s17  ;;  %1066 = vrot.lane.b32.xlu0 %v3963_v13, %s3786_s17  ;;  %s3796_s17 = smov 73  }
  0xbf   : > { %829 = vrot.lane.b32.xlu1 %v3963_v13, %s3787_s25 }
  0xc0   : > { %831 = vrot.lane.b32.xlu2 %v3972_v17, %s3787_s25  ;;  %827 = vrot.lane.b32.xlu0 %v3970_v16, %s3787_s25 }
  0xc7   : > { %998 = vrot.lane.b32.xlu1 %v3963_v13, %s3788_s26 }
  0xc8   : > { %1000 = vrot.lane.b32.xlu2 %v3972_v17, %s3788_s26  ;;  %996 = vrot.lane.b32.xlu0 %v3970_v16, %s3788_s26 }
  0xcf   : > { %763 = vrot.lane.b32.xlu1 %v3970_v16, %s3789_s29 }
  0xd0   : > { %765 = vrot.lane.b32.xlu2 %v3963_v13, %s3789_s29  ;;  %1002 = vrot.lane.b32.xlu0 %v3961_v12, %s3788_s26  ;;  %s3791_s26 = smov 64  }
  0xd2   : > { %v4023_v21 = vpop.permute.xlu2 %1372 }
  0xd7   : > { %695 = vrot.lane.b32.xlu1 %v3970_v16, %s3790_s10 }
  0xd8   : > { %697 = vrot.lane.b32.xlu2 %v3963_v13, %s3790_s10  ;;  %767 = vrot.lane.b32.xlu0 %v3972_v17, %s3789_s29 }
  0xda   : > { %v4041_v31 = vpop.permute.xlu2 %1374 }
  0xdb   : > { %v1381_v39 = vsel %vm1380_vm1, %v4023_v21, %v4041_v31 }
  0xdc   : > { %v1424_v57 = vunpack.c.l.bf16 %v1381_v39 }
  0xdf   : > { %631 = vrot.lane.b32.xlu1 %v3970_v16, %s3791_s26 }
  0xe0   : > { %633 = vrot.lane.b32.xlu2 %v3963_v13, %s3791_s26  ;;  %699 = vrot.lane.b32.xlu0 %v3972_v17, %s3790_s10 }
  0xe2   : > { %v4057_v55 = vpop.permute.xlu2 %1308 }
  0xe7   : > { %1510 = vrot.lane.b32.xlu1 %v3970_v16, %s3785_s16 }
  0xe8   : > { %563 = vrot.lane.b32.xlu2 %v3970_v16, %s3792_s11  ;;  %635 = vrot.lane.b32.xlu0 %v3972_v17, %s3791_s26 }
  0xe9   : > { %v1445_v27 = vpop.permute.xlu1 %1444 }
  0xea   : > { %v4085_v33 = vpop.permute.xlu2 %1314  ;;  %v1441_v34 = vpop.permute.xlu0 %1440 }
  0xeb   : > { %v1326_v26 = vsel %vm1316_vm3, %v4085_v33, %v4057_v55 }
  0xef   : > { %567 = vrot.lane.b32.xlu1 %v3972_v17, %s3792_s11 }
  0xf0   : > { %833 = vrot.lane.b32.xlu2 %v3961_v12, %s3787_s25  ;;  %565 = vrot.lane.b32.xlu0 %v3963_v13, %s3792_s11 }
  0xf1   : > { %v1447_v1 = vpop.permute.xlu1 %1446 }
  0xf2   : > { %v1451_v10 = vsel %vm1448_vm2, %v1445_v27, %v1447_v1  ;;  %v1458_v11 = vsel %vm1448_vm2, %v1447_v1, %v1441_v34  ;;  %v4118_v14 = vpop.permute.xlu2 %1200  ;;  %v1443_v15 = vpop.permute.xlu0 %1442 }
  0xf3   : > { %v1490_v22 = vunpack.c.l.bf16 %v1451_v10  ;;  %v1491_v23 = vunpack.c.l.bf16 %v1458_v11  ;;  %v1449_v24 = vsel %vm1448_vm2, %v1441_v34, %v1443_v15  ;;  %v1450_v25 = vsel %vm1448_vm2, %v1443_v15, %v1445_v27 }
  0xf4   : > { %v1488_v28 = vunpack.c.l.bf16 %v1449_v24  ;;  %v1489_v29 = vunpack.c.l.bf16 %v1450_v25  ;;  %v4131_v34 = vmul.f32 %v4060_v2, %v1424_v57  ;;  %v4144_v2 = vld [vmem:[%s5174_s2 + $0x18] sm:$0x22]  ;;  %vm375_vm2 = vcmask 596992  }
  0xf5   : > { %v1498_v32 = vmul.f32 %v1494_v35, %v1490_v22  ;;  %v1499_v36 = vmul.f32 %v1495_v52, %v1491_v23  ;;  %v1359_v35 = vunpack.c.l.bf16 %v1326_v26  ;;  %v4148_v52 = vperm.slane %v1229_v8, 2  ;;  %v3625_v25 = vld [vmem:[#allocation6 + $0x214] sm:$0xf0] }
  0xf6   : > { %v1496_v39 = vmul.f32 %v1492_v53, %v1488_v28  ;;  %v1497_v40 = vmul.f32 %v1493_v58, %v1489_v29  ;;  %v1223_v53 = vunpack.c.h.b16 %v1217_v19  ;;  %v4154_v58 = vpack.i.b16 %v1161_v41, %v1161_v41 }
  0xf7   : > { %v1501_v27 = vpack.c.bf16 %v1499_v36, %v1498_v32  ;;  %897 = vrot.lane.b32.xlu1 %v3963_v13, %s3793_s14  ;;  %v4169_v10 = vmul.f32 %v1363_v3, %v1359_v35  ;;  %v1153_v22 = vunpack.c.h.b16 %v4094_v43  ;;  %v1294_v23 = vunpack.c.l.bf16 %v3955_v6  ;;  %v3624_v3 = vld [vmem:[#allocation6 + $0x20c] sm:$0xf0] }
  0xf8   : > { %v1500_v45 = vpack.c.bf16 %v1497_v40, %v1496_v39  ;;  %899 = vrot.lane.b32.xlu2 %v3972_v17, %s3793_s14  ;;  %895 = vrot.lane.b32.xlu0 %v3970_v16, %s3793_s14  ;;  %v1164_v26 = vperm.slane %v4154_v58, 1  ;;  %v4177_v49 = vpack.c.b16 %v1223_v53, %v1223_v53  ;;  %v1295_v28 = vunpack.c.h.bf16 %v3955_v6 }
  0xf9   : > { %1503 = vst [vmem:[#allocation6 + $0x208] sm:$0x33] %v1501_v27  ;;  %v1379_v48 = vpop.permute.xlu1 %1378  ;;  %v1298_v29 = vunpack.c.l.bf16 %v1286_v0  ;;  %v1154_v36 = vunpack.c.l.b16 %v4144_v2  ;;  %v1157_v27 = vpack.c.b16 %v1153_v22, %v1153_v22  ;;  %v1248_v18 = vunpack.c.l.bf16 %v4148_v52  ;;  %v3621_v52 = vld [vmem:[#allocation6 + $0x1f4] sm:$0xf0] }
  0xfa   : > { %1502 = vst [vmem:[#allocation6 + $0x200] sm:$0x33] %v1500_v45  ;;  %v1390_v54 = vsel %vm1380_vm1, %v1379_v48, %v4023_v21  ;;  %v4152_v56 = vpop.permute.xlu2 %1130  ;;  %v1377_v57 = vpop.permute.xlu0 %1376  ;;  %v1155_v21 = vunpack.c.h.b16 %v4144_v2  ;;  %v1241_v47 = vpack.i.b16 %v4177_v49, %v4177_v49  ;;  %v1524_v2 = vld [vmem:[%s5174_s2 + $0x20] sm:$0x11]  ;;  %v4215_v4 = vunpack.c.l.bf16 %v1164_v26 }
  0xfb   : > { %v1427_v1 = vunpack.c.l.bf16 %v1390_v54  ;;  %v1382_v7 = vsel %vm1380_vm1, %v4041_v31, %v1377_v57  ;;  %v1383_v8 = vsel %vm1380_vm1, %v1377_v57, %v1379_v48  ;;  %v1302_v6 = vmul.f32 %v1298_v29, %v1294_v23 }
  0xfc   : > { %v1425_v11 = vunpack.c.l.bf16 %v1382_v7  ;;  %v1426_v15 = vunpack.c.l.bf16 %v1383_v8  ;;  %v1159_v43 = vpack.c.b16 %v1155_v21, %v1155_v21  ;;  %v1303_v48 = vmul.f32 %v1299_v38, %v1295_v28 }
  0xfd   : > { %v1435_v19 = vmul.f32 %v4106_v61, %v1427_v1  ;;  %v1237_v61 = vpack.i.b16 %v4161_v60, %v4161_v60  ;;  %v1158_v0 = vpack.c.b16 %v1154_v36, %v1154_v36  ;;  %v1109_v8 = vpack.i.b16 %v1095_v42, %v1095_v42  ;;  %v4238_v42 = vld [vmem:[#allocation6 + $0x1a0] sm:$0xf] }
  0xfe   : > { %v1433_v31 = vmul.f32 %v4108_v62, %v1425_v11  ;;  %v1434_v24 = vmul.f32 %v1430_v9, %v1426_v15  ;;  %v1305_v1 = vpack.c.bf16 %v1303_v48, %v1302_v6  ;;  %v1166_v21 = vshrl.u32 %v1157_v27, 16  ;;  %v4240_v27 = vld [vmem:[#allocation6 + $0x1ac] sm:$0xf0] }
  0xff   : > { %501 = vrot.lane.b32.xlu1 %v3963_v13, %s3794_s30  ;;  %v1528_v11 = vunpack.c.l.b16 %v1524_v2  ;;  %v1171_v22 = vshrl.u32 %v1158_v0, 16  ;;  %v1090_v23 = vunpack.c.l.b16 %v4159_v59  ;;  %v4226_v26 = vperm.slane %v1241_v47, 2 }
 0x100   : > { %v1436_v62 = vpack.c.bf16 %v1433_v31, %v4131_v34  ;;  %v1437_v30 = vpack.c.bf16 %v1435_v19, %v1434_v24  ;;  %503 = vrot.lane.b32.xlu2 %v3972_v17, %s3794_s30  ;;  %499 = vrot.lane.b32.xlu0 %v3970_v16, %s3794_s30  ;;  %v3225_v32 = vld [vmem:[#allocation6 + $0x208] sm:$0xf]  ;;  %1307 = vst [vmem:[#allocation6 + $0x1a8] sm:$0x33] %v1305_v1  ;;  %v1529_v19 = vunpack.c.h.b16 %v1524_v2  ;;  %vm439_vm1 = vcmask 588800  }
 0x101   : > { %v1313_v39 = vpop.permute.xlu1 %1312  ;;  %v3217_v40 = vld [vmem:[#allocation6 + $0x200] sm:$0xf]  ;;  %v3226_v41 = vor.u32 %v3625_v25, %v3225_v32  ;;  %v4224_v25 = vperm.slane %v1109_v8, 1  ;;  %v1167_v49 = vpack.i.b16 %v1166_v21, %v1166_v21  ;;  %v1172_v6 = vpack.i.b16 %v1171_v22, %v1171_v22  ;;  %v4259_v8 = vld [vmem:[%s5174_s2 + $0x30] sm:$0x11] }
 0x102   : > { %1438 = vst [vmem:[#allocation6 + $0x1e0] sm:$0x33] %v1436_v62  ;;  %v1319_v34 = vsel %vm1316_vm3, %v1313_v39, %v4085_v33  ;;  %v4192_v9 = vpop.permute.xlu2 %1504  ;;  %v1311_v35 = vpop.permute.xlu0 %1310  ;;  %v3218_v45 = vor.u32 %v3624_v3, %v3217_v40  ;;  %v1176_v33 = vshrl.u32 %v1159_v43, 16  ;;  %v1088_v3 = vunpack.c.l.b16 %v1084_v20  ;;  %v4236_v40 = vld [vmem:[%s5174_s2] sm:$0x88] }
 0x103   : > { %1439 = vst [vmem:[#allocation6 + $0x1e8] sm:$0x33] %v1437_v30  ;;  %v1358_v53 = vunpack.c.l.bf16 %v1319_v34  ;;  %v1317_v54 = vsel %vm1316_vm3, %v4057_v55, %v1311_v35  ;;  %v1318_v57 = vsel %vm1316_vm3, %v1311_v35, %v1313_v39  ;;  %1852 = vmatpush.bf16.msra.mxu1 %v3226_v41  ;;  %v1533_v59 = vpack.c.b16 %v1529_v19, %v1529_v19 }
 0x104   : > { %v1356_v58 = vunpack.c.l.bf16 %v1317_v54  ;;  %v1357_v60 = vunpack.c.l.bf16 %v1318_v57  ;;  %1800 = vmatpush.bf16.msra.mxu0 %v3218_v45  ;;  %v1177_v5 = vpack.i.b16 %v1176_v33, %v1176_v33  ;;  %v1089_v30 = vunpack.c.h.b16 %v1084_v20  ;;  %v3617_v57 = vld [vmem:[#allocation6 + $0x1d4] sm:$0xf0] }
 0x105   : > { %v1366_v7 = vmul.f32 %v1362_v44, %v1358_v53  ;;  %v3620_v44 = vld [vmem:[#allocation6 + $0x1ec] sm:$0xf0]  ;;  %v1094_v35 = vpack.c.b16 %v1090_v23, %v1090_v23  ;;  %v1169_v47 = vperm.slane %v1167_v49, 1  ;;  %v4244_v48 = vpack.c.b16 %v1088_v3, %v1088_v3 }
 0x106   : > { %v1364_v15 = vmul.f32 %v1360_v46, %v1356_v58  ;;  %v1365_v55 = vmul.f32 %v1361_v50, %v1357_v60  ;;  %v4217_v46 = vperm.slane %v1237_v61, 2  ;;  %v1179_v39 = vperm.slane %v1177_v5, 1 }
 0x107   : > { %v1369_v63 = vpack.c.bf16 %v4169_v10, %v1366_v7  ;;  %431 = vrot.lane.b32.xlu1 %v3970_v16, %s3795_s12  ;;  %v1532_v10 = vpack.c.b16 %v1528_v11, %v1528_v11  ;;  %v852_v2 = vunpack.c.h.b16 %v4236_v40  ;;  %v1542_v33 = vshrl.u32 %v1533_v59, 16  ;;  %v3613_v7 = vld [vmem:[#allocation6 + $0x1b4] sm:$0xf0] }
 0x108   : > { %v1368_v50 = vpack.c.bf16 %v1365_v55, %v1364_v15  ;;  %433 = vrot.lane.b32.xlu2 %v3963_v13, %s3795_s12  ;;  %769 = vrot.lane.b32.xlu0 %v3961_v12, %s3789_s29  ;;  %v1250_v54 = vunpack.c.l.bf16 %v4217_v46  ;;  %v1093_v58 = vpack.c.b16 %v1089_v30, %v1089_v30  ;;  %v1119_v60 = vunpack.c.l.bf16 %v4224_v25  ;;  %v3177_v55 = vld [vmem:[#allocation6 + $0x1a8] sm:$0xf] }
 0x109   : > { %1371 = vst [vmem:[#allocation6 + $0x1c8] sm:$0x33] %v1369_v63  ;;  %v1199_v31 = vpop.permute.xlu1 %1198  ;;  %v3201_v24 = vld [vmem:[#allocation6 + $0x1e0] sm:$0xf]  ;;  %v1537_v34 = vshrl.u32 %v1532_v10, 16  ;;  %v1251_v37 = vunpack.c.l.bf16 %v4226_v26  ;;  %v3170_v0 = vor.u32 %v4240_v27, %v4238_v42  ;;  %v4254_v1 = vunpack.c.l.bf16 %v1179_v39 }
 0x10a   : > { %1370 = vst [vmem:[#allocation6 + $0x1c0] sm:$0x33] %v1368_v50  ;;  %v1205_v61 = vsel %vm1204_vm4, %v1199_v31, %v4118_v14  ;;  %v4230_v43 = vpop.permute.xlu2 %1064  ;;  %v1197_v28 = vpop.permute.xlu0 %1196  ;;  %v3202_v29 = vor.u32 %v3620_v44, %v3201_v24  ;;  %v3209_v62 = vld [vmem:[#allocation6 + $0x1e8] sm:$0xf]  ;;  %v1174_v15 = vperm.slane %v1172_v6, 1  ;;  %v1105_v19 = vpack.i.b16 %v1094_v35, %v1094_v35 }
 0x10b   : > { %v1245_v32 = vunpack.c.l.bf16 %v1205_v61  ;;  %v1214_v36 = vsel %vm1204_vm4, %v1197_v28, %v1199_v31  ;;  %v3210_v38 = vor.u32 %v3621_v52, %v3209_v62  ;;  %v4265_v46 = vunpack.c.l.bf16 %v1169_v47  ;;  %v4277_v24 = vld [vmem:[%s5174_s2 + $0x38] sm:$0x11]  ;;  %v4285_v62 = vld [vmem:[#allocation6 + $0x210] sm:$0xf0]  ;;  %v3608_v35 = vld [vmem:[#allocation6 + $0x18c] sm:$0xf0] }
 0x10c   : > { %v1244_v41 = vunpack.c.l.bf16 %v1214_v36  ;;  %1801 = vmatpush.bf16.msra.mxu0 %v3202_v29  ;;  %v1097_v5 = vpack.i.b16 %v4244_v48, %v4244_v48  ;;  %v856_v50 = vpack.c.b16 %v852_v2, %v852_v2  ;;  %v4271_v10 = vpack.i.b16 %v1542_v33, %v1542_v33  ;;  %v4283_v29 = vld [vmem:[#allocation6 + $0x204] sm:$0xf]  ;;  %v1016_v33 = vld [vmem:[%s5174_s2 + $0x10] sm:$0x11] }
 0x10d   : > { %v1253_v45 = vmul.f32 %v1249_v51, %v1245_v32  ;;  %1853 = vmatpush.bf16.msra.mxu1 %v3210_v38  ;;  %v3616_v51 = vld [vmem:[#allocation6 + $0x1cc] sm:$0xf0]  ;;  %v1101_v23 = vpack.i.b16 %v1093_v58, %v1093_v58  ;;  %v2493_v31 = vunpack.c.l.b16 %v4259_v8  ;;  %v3178_v3 = vor.u32 %v3613_v7, %v3177_v55 }
 0x10e   : > { %v1252_v53 = vmul.f32 %v1248_v18, %v1244_v41  ;;  %v1538_v18 = vpack.i.b16 %v1537_v34, %v1537_v34  ;;  %v851_v61 = vunpack.c.l.b16 %v4236_v40  ;;  %v4287_v36 = vperm.slane %v1105_v19, 1 }
 0x10f   : > { %701 = vrot.lane.b32.xlu1 %v3961_v12, %s3790_s10  ;;  %v865_v39 = vshrl.u32 %v856_v50, 16  ;;  %v2497_v40 = vpack.c.b16 %v2493_v31, %v2493_v31  ;;  %v3222_v34 = vor.u32 %v4283_v29, %v4285_v62  ;;  %v4297_v47 = vperm.slane %v1097_v5, 1 }
 0x110   : > { %v1256_v21 = vpack.c.bf16 %v1253_v45, %v1252_v53  ;;  %360 = vrot.lane.b32.xlu2 %v3970_v16, %s3796_s17  ;;  %435 = vrot.lane.b32.xlu0 %v3972_v17, %s3795_s12  ;;  %v3193_v11 = vld [vmem:[#allocation6 + $0x1c8] sm:$0xf]  ;;  %v1540_v32 = vperm.slane %v1538_v18, 0  ;;  %v1545_v45 = vperm.slane %v4271_v10, 0  ;;  %v4299_v48 = vperm.slane %v1101_v23, 1 }
 0x111   : > { %v1129_v20 = vpop.permute.xlu1 %1128  ;;  %v3185_v63 = vld [vmem:[#allocation6 + $0x1c0] sm:$0xf]  ;;  %v3194_v44 = vor.u32 %v3617_v57, %v3193_v11  ;;  %v855_v2 = vpack.c.b16 %v851_v61, %v851_v61  ;;  %v2502_v19 = vshrl.u32 %v2497_v40, 16  ;;  %v4325_v23 = vld [vmem:[#allocation6 + $0x1f0] sm:$0xf0] }
 0x112   : > { %1258 = vst [vmem:[#allocation6 + $0x180] sm:$0x33] %v1256_v21  ;;  %v4269_v52 = vpop.permute.xlu2 %1070  ;;  %v1203_v16 = vpop.permute.xlu0 %1202  ;;  %v3186_v22 = vor.u32 %v3616_v51, %v3185_v63  ;;  %v1146_v38 = vsel %vm1136_vm5, %v1129_v20, %v4152_v56  ;;  %v1021_v21 = vunpack.c.h.b16 %v1016_v33  ;;  %v1020_v63 = vunpack.c.l.b16 %v1016_v33 }
 0x113   : > { %v1206_v26 = vsel %vm1204_vm4, %v4118_v14, %v1203_v16  ;;  %v1207_v49 = vsel %vm1204_vm4, %v1203_v16, %v1197_v28  ;;  %1854 = vmatpush.bf16.msra.mxu1 %v3194_v44  ;;  %v1186_v14 = vunpack.c.l.bf16 %v1174_v15  ;;  %v2496_v28 = vunpack.c.h.b16 %v4277_v24 }
 0x114   : > { %v1246_v59 = vunpack.c.l.bf16 %v1206_v26  ;;  %v1247_v30 = vunpack.c.l.bf16 %v1207_v49  ;;  %1802 = vmatpush.bf16.msra.mxu0 %v3186_v22  ;;  %v1180_v53 = vunpack.c.l.bf16 %v1146_v38  ;;  %v1075_v58 = vsel %vm1072_vm6, %v4269_v52, %v4230_v43  ;;  %v4327_v49 = vld [vmem:[#allocation6 + $0x1d0] sm:$0xf0]  ;;  %v3609_v38 = vld [vmem:[#allocation6 + $0x194] sm:$0xf0] }
 0x115   : > { %v2500_v7 = vpack.c.b16 %v2496_v28, %v2496_v28  ;;  %v860_v27 = vshrl.u32 %v855_v2, 16  ;;  %v1116_v22 = vunpack.c.l.bf16 %v4297_v47  ;;  %v1025_v31 = vpack.c.b16 %v1021_v21, %v1021_v21 }
 0x116   : > { %v1254_v41 = vmul.f32 %v1250_v54, %v1246_v59  ;;  %v1255_v6 = vmul.f32 %v1251_v37, %v1247_v30  ;;  %v4305_v54 = vunpack.c.l.bf16 %v1540_v32  ;;  %v1024_v26 = vpack.c.b16 %v1020_v63, %v1020_v63  ;;  %v4331_v30 = vld [vmem:[#allocation6 + $0x1e4] sm:$0xf] }
 0x117   : > { %371 = vrot.lane.b32.xlu1 %v3972_v17, %s3796_s17  ;;  %1855 = vmatpush.bf16.msra.mxu1 %v3178_v3  ;;  %v1118_v17 = vunpack.c.l.bf16 %v4287_v36  ;;  %v2517_v10 = vshrl.u32 %v2500_v7, 16  ;;  %v4333_v32 = vld [vmem:[#allocation6 + $0x1c4] sm:$0xf]  ;;  %v2503_v28 = vpack.i.b16 %v2502_v19, %v2502_v19  ;;  %v1034_v40 = vshrl.u32 %v1025_v31, 16 }
 0x118   : > { %v1257_v57 = vpack.c.bf16 %v1255_v6, %v1254_v41  ;;  %637 = vrot.lane.b32.xlu2 %v3961_v12, %s3791_s26  ;;  %369 = vrot.lane.b32.xlu0 %v3963_v13, %s3796_s17  ;;  %v866_v13 = vpack.i.b16 %v865_v39, %v865_v39  ;;  %v1117_v39 = vunpack.c.l.bf16 %v4299_v48  ;;  %v4338_v41 = vpack.i.b16 %v860_v27, %v860_v27  ;;  %v4340_v6 = vld [vmem:[#allocation6 + $0x20c] sm:$0xf] }
 0x119   : > { %1803 = vmatpush.bf16.msra.mxu0 %v3170_v0  ;;  %v1135_v37 = vpop.permute.xlu1 %1134  ;;  %v3153_v51 = vld [vmem:[#allocation6 + $0x180] sm:$0xf]  ;;  %v1115_v0 = vunpack.c.l.bf16 %v1075_v58  ;;  %v3206_v33 = vor.u32 %v4331_v30, %v4325_v23  ;;  %v2505_v63 = vperm.slane %v2503_v28, 0  ;;  %v4501_v23 = vld [vmem:[%s5174_s2 + $0x30] sm:$0x11] }
 0x11a   : > { %1259 = vst [vmem:[#allocation6 + $0x188] sm:$0x33] %v1257_v57  ;;  %v1139_v11 = vsel %vm1136_vm5, %v1135_v37, %v1129_v20  ;;  %v4318_v15 = vpop.permute.xlu2 %831  ;;  %v1133_v55 = vpop.permute.xlu0 %1132  ;;  %v3154_v18 = vor.u32 %v3608_v35, %v3153_v51  ;;  %v868_v59 = vperm.slane %v866_v13, 3  ;;  %v1029_v35 = vshrl.u32 %v1024_v26, 16 }
 0x11b   : > { %v1183_v44 = vunpack.c.l.bf16 %v1139_v11  ;;  %v1137_v5 = vsel %vm1136_vm5, %v4152_v56, %v1133_v55  ;;  %v1138_v42 = vsel %vm1136_vm5, %v1133_v55, %v1135_v37  ;;  %v1188_v56 = vmul.f32 %v4215_v4, %v1180_v53  ;;  %v4342_v4 = vld [vmem:[#allocation6 + $0x218] sm:$0xf0]  ;;  %v4367_v11 = vld [vmem:[#allocation6 + $0x1ec] sm:$0xf] }
 0x11c   : > { %v1181_v50 = vunpack.c.l.bf16 %v1137_v5  ;;  %v1182_v16 = vunpack.c.l.bf16 %v1138_v42  ;;  %v2518_v57 = vpack.i.b16 %v2517_v10, %v2517_v10  ;;  %v1017_v37 = vld [vmem:[%s5174_s2 + $0x18] sm:$0x11]  ;;  %v4363_v13 = vunpack.c.l.bf16 %v868_v59  ;;  %v4379_v5 = vld [vmem:[%s5174_s2] sm:$0x88]  ;;  %v4388_v10 = vld [vmem:[#allocation6 + $0x190] sm:$0xf0] }
 0x11d   : > { %v1191_v20 = vmul.f32 %v4254_v1, %v1183_v44  ;;  %1804 = vmatpush.bf16.msra.mxu0 %v3154_v18  ;;  %v1561_v1 = vunpack.c.l.bf16 %v1545_v45  ;;  %v4350_v45 = vmul.f32 %v1119_v60, %v1115_v0  ;;  %v1022_v7 = vunpack.c.l.b16 %v1017_v37  ;;  %v4369_v55 = vld [vmem:[#allocation6 + $0x1f8] sm:$0xf0] }
 0x11e   : > { %v1189_v3 = vmul.f32 %v4265_v46, %v1181_v50  ;;  %v1190_v61 = vmul.f32 %v1186_v14, %v1182_v16  ;;  %v863_v44 = vperm.slane %v4338_v41, 3  ;;  %v1035_v0 = vpack.i.b16 %v1034_v40, %v1034_v40  ;;  %v2450_v16 = vld [vmem:[%s5174_s2 + $0x38] sm:$0x11]  ;;  %v4396_v41 = vld [vmem:[#allocation6 + $0x1cc] sm:$0xf] }
 0x11f   : > { %505 = vrot.lane.b32.xlu1 %v3961_v12, %s3794_s30  ;;  %v4381_v50 = vpack.i.b16 %v1029_v35, %v1029_v35  ;;  %v2520_v31 = vperm.slane %v2518_v57, 0  ;;  %v787_v26 = vunpack.c.l.b16 %v4379_v5  ;;  %v3605_v40 = vld [vmem:[#allocation6 + $0x174] sm:$0xf0]  ;;  %v4402_v35 = vunpack.c.l.bf16 %v2505_v63  ;;  %s3666_s30 = sshll.u32 %s3760_s18, 5 }
 0x120   : > { %v1192_v46 = vpack.c.bf16 %v1189_v3, %v1188_v56  ;;  %v1193_v14 = vpack.c.bf16 %v1191_v20, %v1190_v61  ;;  %437 = vrot.lane.b32.xlu2 %v3961_v12, %s3795_s12  ;;  %569 = vrot.lane.b32.xlu0 %v3961_v12, %s3792_s11  ;;  %v4386_v20 = vld [vmem:[#allocation6 + $0x184] sm:$0xf]  ;;  %v2456_v56 = vunpack.c.h.b16 %v2450_v16  ;;  %v1023_v3 = vunpack.c.h.b16 %v1017_v37  ;;  %s2910_s11 = scalar_lea.vmem [#allocation2], %s3666_s30 }
 0x121   : > { %v4352_v2 = vpop.permute.xlu1 %1508  ;;  %v3161_v53 = vld [vmem:[#allocation6 + $0x188] sm:$0xf]  ;;  %v1037_v37 = vperm.slane %v1035_v0, 0  ;;  %v4412_v63 = vunpack.c.l.bf16 %v863_v44  ;;  %v4419_v16 = vld [vmem:[%s5174_s2] sm:$0x44] }
 0x122   : > { %1194 = vst [vmem:[#allocation6 + $0x160] sm:$0x33] %v1192_v46  ;;  %v4361_v51 = vpop.permute.xlu2 %1000  ;;  %v1507_v25 = vpop.permute.xlu0 %1506  ;;  %v3162_v60 = vor.u32 %v3609_v38, %v3161_v53  ;;  %v4392_v38 = vpack.c.b16 %v1022_v7, %v1022_v7  ;;  %v4398_v46 = vld [vmem:[#allocation6 + $0x1d8] sm:$0xf0]  ;;  %v791_v53 = vpack.c.b16 %v787_v26, %v787_v26 }
 0x123   : > { %1195 = vst [vmem:[#allocation6 + $0x168] sm:$0x33] %v1193_v14  ;;  %v1513_v18 = vsel %vm1512_vm7, %v4192_v9, %v1507_v25  ;;  %v1514_v19 = vsel %vm1512_vm7, %v1507_v25, %v4352_v2  ;;  %v3604_v14 = vld [vmem:[#allocation6 + $0x16c] sm:$0xf0]  ;;  %v1032_v25 = vperm.slane %v4381_v50, 0 }
 0x124   : > { %v1556_v42 = vunpack.c.l.bf16 %v1513_v18  ;;  %v1557_v27 = vunpack.c.l.bf16 %v1514_v19  ;;  %1856 = vmatpush.bf16.msra.mxu1 %v3162_v60  ;;  %v4409_v60 = vld [vmem:[#allocation6 + $0x1a4] sm:$0xf]  ;;  %v1039_v7 = vshrl.u32 %v4392_v38, 16 }
 0x126   : > { %v1564_v61 = vmul.f32 %v4305_v54, %v1556_v42  ;;  %v1565_v59 = vmul.f32 %v1561_v1, %v1557_v27  ;;  %v2460_v54 = vpack.c.b16 %v2456_v56, %v2456_v56  ;;  %v4414_v42 = vunpack.c.l.bf16 %v2520_v31  ;;  %v4437_v1 = vld [vmem:[#allocation6 + $0x198] sm:$0xf0] }
 0x127   : > { %901 = vrot.lane.b32.xlu1 %v3961_v12, %s3793_s14  ;;  %v1027_v27 = vpack.c.b16 %v1023_v3, %v1023_v3  ;;  %v4430_v3 = vld [vmem:[#allocation6 + $0x1b0] sm:$0xf0] }
 0x128   : > { %v1568_v57 = vpack.c.bf16 %v1565_v59, %v1564_v61  ;;  %373 = vrot.lane.b32.xlu0 %v3961_v12, %s3796_s17  ;;  %v2406_v12 = vld [vmem:[%s5174_s2 + $0x28] sm:$0x88]  ;;  %v796_v61 = vpack.i.b16 %v791_v53, %v791_v53  ;;  %v2474_v59 = vpack.i.b16 %v2460_v54, %v2460_v54  ;;  %v4442_v54 = vunpack.c.l.bf16 %v1037_v37  ;;  %v3628_v37 = vld [vmem:[#allocation6 + $0x22c] sm:$0xf0] }
 0x129   : > { %v1069_v18 = vpop.permute.xlu1 %1068  ;;  %v3137_v19 = vld [vmem:[#allocation6 + $0x160] sm:$0xf] }
 0x12a   : > { %1570 = vst [vmem:[#allocation6 + $0x220] sm:$0x33] %v1568_v57  ;;  %v1074_v44 = vsel %vm1072_vm6, %v1069_v18, %v4269_v52  ;;  %v4428_v50 = vpop.permute.xlu2 %765  ;;  %v1067_v31 = vpop.permute.xlu0 %1066  ;;  %v3138_v26 = vor.u32 %v3604_v14, %v3137_v19  ;;  %v3145_v56 = vld [vmem:[#allocation6 + $0x168] sm:$0xf]  ;;  %v4435_v57 = vld [vmem:[#allocation6 + $0x18c] sm:$0xf]  ;;  %v719_v14 = vunpack.c.l.b16 %v4419_v16  ;;  %v2412_v19 = vunpack.c.h.b16 %v2406_v12 }
 0x12b   : > { %v1114_v38 = vunpack.c.l.bf16 %v1074_v44  ;;  %v1073_v28 = vsel %vm1072_vm6, %v1067_v31, %v1069_v18  ;;  %v1082_v21 = vsel %vm1072_vm6, %v4230_v43, %v1067_v31  ;;  %v3146_v0 = vor.u32 %v3605_v40, %v3145_v56  ;;  %v848_v18 = vld [vmem:[%s5174_s2 + $0x8] sm:$0x88] }
 0x12c   : > { %v1112_v52 = vunpack.c.l.bf16 %v1082_v21  ;;  %v1113_v58 = vunpack.c.l.bf16 %v1073_v28  ;;  %1805 = vmatpush.bf16.msra.mxu0 %v3138_v26  ;;  %v1044_v40 = vshrl.u32 %v1027_v27, 16  ;;  %v4453_v12 = vunpack.c.l.bf16 %v1032_v25 }
 0x12d   : > { %v1122_v53 = vmul.f32 %v1118_v17, %v1114_v38  ;;  %1857 = vmatpush.bf16.msra.mxu1 %v3146_v0  ;;  %v3235_v0 = vld [vmem:[#allocation6 + $0x230] sm:$0xf0]  ;;  %v4458_v27 = vperm.slane %v796_v61, 3  ;;  %v4460_v44 = vperm.slane %v2474_v59, 0  ;;  %v1040_v31 = vpack.i.b16 %v1039_v7, %v1039_v7 }
 0x12e   : > { %v1120_v21 = vmul.f32 %v1116_v22, %v1112_v52  ;;  %v1121_v28 = vmul.f32 %v1117_v39, %v1113_v58  ;;  %v723_v22 = vpack.c.b16 %v719_v14, %v719_v14  ;;  %v2416_v26 = vpack.c.b16 %v2412_v19, %v2412_v19 }
 0x12f   : > { %v1125_v17 = vpack.c.bf16 %v4350_v45, %v1122_v53  ;;  %v853_v48 = vunpack.c.l.b16 %v848_v18  ;;  %v4462_v56 = vpack.i.b16 %v1044_v40, %v1044_v40  ;;  %v854_v38 = vunpack.c.h.b16 %v848_v18 }
 0x130   : > { %v1124_v47 = vpack.c.bf16 %v1121_v28, %v1120_v21  ;;  %v2494_v45 = vunpack.c.h.b16 %v4259_v8  ;;  %v2495_v52 = vunpack.c.l.b16 %v4277_v24  ;;  %v728_v53 = vshrl.u32 %v723_v22, 16 }
 0x131   : > { %1127 = vst [vmem:[#allocation6 + $0x148] sm:$0x33] %v1125_v17  ;;  %v830_v39 = vpop.permute.xlu1 %829  ;;  %v3233_v58 = vld [vmem:[#allocation6 + $0x220] sm:$0xf]  ;;  %v3626_v25 = vld [vmem:[#allocation6 + $0x224] sm:$0xf]  ;;  %v857_v28 = vpack.c.b16 %v853_v48, %v853_v48  ;;  %v858_v36 = vpack.c.b16 %v854_v38, %v854_v38 }
 0x132   : > { %1126 = vst [vmem:[#allocation6 + $0x140] sm:$0x33] %v1124_v47  ;;  %v836_v61 = vsel %vm835_vm8, %v830_v39, %v4318_v15  ;;  %v4468_v7 = vpop.permute.xlu2 %697  ;;  %v4470_v59 = vpop.permute.xlu0 %827  ;;  %v3234_v14 = vor.u32 %v3628_v37, %v3233_v58  ;;  %v3238_v19 = vor.u32 %v3626_v25, %v3235_v0  ;;  %v2433_v18 = vshrl.u32 %v2416_v26, 16  ;;  %v4474_v17 = vld [vmem:[#allocation6 + $0x164] sm:$0xf] }
 0x133   : > { %v880_v21 = vunpack.c.l.bf16 %v836_v61  ;;  %v845_v40 = vsel %vm835_vm8, %v4470_v59, %v830_v39  ;;  %v1042_v24 = vperm.slane %v1040_v31, 0  ;;  %v4476_v47 = vld [vmem:[#allocation6 + $0x170] sm:$0xf0]  ;;  %v2498_v43 = vpack.c.b16 %v2494_v45, %v2494_v45  ;;  %v3601_v39 = vld [vmem:[#allocation6 + $0x154] sm:$0xf0] }
 0x134   : > { %v879_v8 = vunpack.c.l.bf16 %v845_v40  ;;  %1820 = vmatpush.bf16.msra.mxu2 %v3234_v14  ;;  %1846 = vmatpush.bf16.msra.mxu3 %v3238_v19  ;;  %v729_v0 = vpack.i.b16 %v728_v53, %v728_v53  ;;  %v2434_v22 = vpack.i.b16 %v2433_v18, %v2433_v18  ;;  %v870_v26 = vshrl.u32 %v857_v28, 16  ;;  %v3600_v61 = vld [vmem:[#allocation6 + $0x14c] sm:$0xf0] }
 0x135   : > { %v888_v37 = vmul.f32 %v4363_v13, %v880_v21  ;;  %v1047_v31 = vperm.slane %v4462_v56, 0  ;;  %v875_v58 = vshrl.u32 %v858_v36, 16  ;;  %v788_v25 = vunpack.c.h.b16 %v4379_v5  ;;  %v3596_v38 = vld [vmem:[#allocation6 + $0x12c] sm:$0xf0] }
 0x136   : > { %v887_v48 = vmul.f32 %v4412_v63, %v879_v8  ;;  %v2499_v62 = vpack.c.b16 %v2495_v52, %v2495_v52  ;;  %v4489_v14 = vunpack.c.l.bf16 %v1042_v24  ;;  %v871_v63 = vpack.i.b16 %v870_v26, %v870_v26 }
 0x137   : > { %v2507_v19 = vshrl.u32 %v2498_v43, 16  ;;  %v731_v53 = vperm.slane %v729_v0, 2  ;;  %v2436_v40 = vperm.slane %v2434_v22, 3  ;;  %v876_v18 = vpack.i.b16 %v875_v58, %v875_v58 }
 0x138   : > { %1826 = vmatpush.bf16.msrb.mxu2 %v3222_v34  ;;  %v891_v34 = vpack.c.bf16 %v888_v37, %v887_v48  ;;  %v3129_v45 = vld [vmem:[#allocation6 + $0x148] sm:$0xf]  ;;  %v2512_v26 = vshrl.u32 %v2499_v62, 16  ;;  %v792_v43 = vpack.c.b16 %v788_v25, %v788_v25  ;;  %v4504_v30 = vmul.f32 %v4402_v35, %v880_v21 }
 0x139   : > { %v999_v5 = vpop.permute.xlu1 %998  ;;  %v3121_v36 = vld [vmem:[#allocation6 + $0x140] sm:$0xf]  ;;  %v3130_v56 = vor.u32 %v3601_v39, %v3129_v45  ;;  %v1055_v22 = vunpack.c.l.bf16 %v1047_v31  ;;  %v4508_v48 = vmul.f32 %v4414_v42, %v879_v8  ;;  %v873_v58 = vperm.slane %v871_v63, 3  ;;  %v4518_v35 = vld [vmem:[%s5174_s2 + $0x28] sm:$0x88] }
 0x13a   : > { %893 = vst [vmem:[#allocation6 + $0xe0] sm:$0x33] %v891_v34  ;;  %v1005_v52 = vsel %vm1004_vm9, %v999_v5, %v4361_v51  ;;  %v4496_v28 = vpop.permute.xlu2 %633  ;;  %v997_v24 = vpop.permute.xlu0 %996  ;;  %v3122_v37 = vor.u32 %v3600_v61, %v3121_v36  ;;  %v2508_v25 = vpack.i.b16 %v2507_v19, %v2507_v19  ;;  %v4513_v61 = vld [vmem:[%s5174_s2] sm:$0x44]  ;;  %v4523_v21 = vld [vmem:[%s5173_s1 + $0x8] sm:$0xff]  ;;  %v5183_v8 = vor.u32 %v4333_v32, %v4327_v49 }
 0x13b   : > { %v1014_v0 = vsel %vm1004_vm9, %v997_v24, %v999_v5  ;;  %1858 = vmatpush.bf16.msra.mxu1 %v3130_v56  ;;  %v878_v31 = vperm.slane %v876_v18, 3  ;;  %v2513_v62 = vpack.i.b16 %v2512_v26, %v2512_v26  ;;  %v2453_v34 = vunpack.c.l.b16 %v4501_v23 }
 0x13c   : > { %1827 = vmatpush.bf16.msrb.mxu2 %v3206_v33  ;;  %v1049_v33 = vunpack.c.l.bf16 %v1005_v52  ;;  %v1048_v39 = vunpack.c.l.bf16 %v1014_v0  ;;  %1806 = vmatpush.bf16.msra.mxu0 %v3122_v37  ;;  %v4531_v63 = vunpack.c.l.bf16 %v731_v53  ;;  %v4533_v19 = vunpack.c.l.bf16 %v2436_v40 }
 0x13d   : > { %v800_v5 = vpack.i.b16 %v792_v43, %v792_v43  ;;  %v2457_v36 = vpack.c.b16 %v2453_v34, %v2453_v34  ;;  %v655_v56 = vunpack.c.l.b16 %v4513_v61  ;;  %v1612_v52 = vunpack.c.h.b16 %v4523_v21 }
 0x13e   : > { %v1057_v42 = vmul.f32 %v4442_v54, %v1049_v33  ;;  %v1056_v45 = vmul.f32 %v4453_v12, %v1048_v39  ;;  %v2372_v54 = vunpack.c.h.b16 %v4518_v35  ;;  %v4538_v32 = vunpack.c.l.bf16 %v873_v58  ;;  %v4543_v12 = vld [vmem:[%s5174_s2 + $0x20] sm:$0x88] }
 0x13f   : > { %v2510_v18 = vperm.slane %v2508_v25, 0  ;;  %v5184_v53 = vor.u32 %v4409_v60, %v4430_v3  ;;  %v4550_v37 = vunpack.c.l.bf16 %v878_v31  ;;  %v2515_v26 = vperm.slane %v2513_v62, 0  ;;  %v3598_v25 = vld [vmem:[#allocation6 + $0x144] sm:$0xf]  ;;  %v3123_v60 = vld [vmem:[#allocation6 + $0x150] sm:$0xf0] }
 0x140   : > { %1828 = vmatpush.bf16.msrb.mxu2 %v5183_v8  ;;  %v1060_v49 = vpack.c.bf16 %v1057_v42, %v1056_v45  ;;  %v2462_v43 = vpack.i.b16 %v2457_v36, %v2457_v36  ;;  %v4552_v33 = vpack.c.b16 %v1612_v52, %v1612_v52  ;;  %v659_v3 = vpack.c.b16 %v655_v56, %v655_v56 }
 0x141   : > { %v4548_v40 = vpop.permute.xlu1 %763  ;;  %v2376_v42 = vpack.c.b16 %v2372_v54, %v2372_v54  ;;  %v720_v8 = vunpack.c.h.b16 %v4419_v16  ;;  %v4563_v34 = vperm.slane %v800_v5, 3  ;;  %v2409_v45 = vunpack.c.l.b16 %v4543_v12 }
 0x142   : > { %1062 = vst [vmem:[#allocation6 + $0x120] sm:$0x33] %v1060_v49  ;;  %v781_v0 = vsel %vm771_vm10, %v4548_v40, %v4428_v50  ;;  %v4557_v39 = vpop.permute.xlu2 %563  ;;  %v1003_v58 = vpop.permute.xlu0 %1002  ;;  %3247 = vmatmul.msk.bf16.vlgmr.msra.gmra.mxu2 %vm1796_vm11, %v4552_v33  ;;  %3248 = vmatmul.msk.bf16.vlgmr.msra.gmra.mxu3 %vm1796_vm11, %v4552_v33  ;;  %v2522_v52 = vunpack.c.l.bf16 %v2510_v18  ;;  %v5185_v16 = vor.u32 %v4386_v20, %v4388_v10  ;;  %v4576_v5 = vperm.slane %v2462_v43, 0 }
 0x143   : > { %v1006_v31 = vsel %vm1004_vm9, %v4361_v51, %v1003_v58  ;;  %v1007_v62 = vsel %vm1004_vm9, %v1003_v58, %v997_v24  ;;  %v811_v36 = vunpack.c.l.bf16 %v781_v0  ;;  %v1525_v51 = vld [vmem:[%s5174_s2 + $0x28] sm:$0x11]  ;;  %v2523_v24 = vunpack.c.l.bf16 %v2515_v26  ;;  %v4580_v58 = vld [vmem:[#allocation6 + $0xec] sm:$0xf0] }
 0x144   : > { %1829 = vmatpush.bf16.msrb.mxu2 %v5184_v53  ;;  %v1050_v56 = vunpack.c.l.bf16 %v1006_v31  ;;  %v1051_v54 = vunpack.c.l.bf16 %v1007_v62  ;;  %v3126_v49 = vor.u32 %v3598_v25, %v3123_v60  ;;  %v4578_v53 = vld [vmem:[#allocation6 + $0xe0] sm:$0xf]  ;;  %v724_v0 = vpack.c.b16 %v720_v8, %v720_v8 }
 0x145   : > { %v664_v62 = vpack.i.b16 %v659_v3, %v659_v3  ;;  %v2390_v29 = vpack.i.b16 %v2376_v42, %v2376_v42  ;;  %v816_v13 = vunpack.c.l.bf16 %v4563_v34  ;;  %v2413_v10 = vpack.c.b16 %v2409_v45, %v2409_v45 }
 0x146   : > { %v1058_v31 = vmul.f32 %v4489_v14, %v1050_v56  ;;  %v1059_v18 = vmul.f32 %v1055_v22, %v1051_v54  ;;  %v733_v20 = vshrl.u32 %v724_v0, 16  ;;  %v1530_v26 = vunpack.c.l.b16 %v1525_v51 }
 0x147   : > { %v5186_v43 = vunpack.c.l.bf16 %v4458_v27  ;;  %v5187_v60 = vunpack.c.l.bf16 %v4460_v44  ;;  %v3366_v14 = vor.u32 %v4580_v58, %v4578_v53  ;;  %v5188_v22 = vor.u32 %v4474_v17, %v4476_v47 }
 0x148   : > { %1830 = vmatpush.bf16.msrb.mxu2 %v5185_v16  ;;  %v1061_v8 = vpack.c.bf16 %v1059_v18, %v1058_v31  ;;  %v734_v34 = vpack.i.b16 %v733_v20, %v733_v20  ;;  %v1531_v45 = vunpack.c.h.b16 %v1525_v51  ;;  %v1534_v27 = vpack.c.b16 %v1530_v26, %v1530_v26  ;;  %v3107_v20 = vld [vmem:[#allocation6 + $0x130] sm:$0xf0] }
 0x149   : > { %v4586_v25 = vmul.f32 %v5186_v43, %v811_v36  ;;  %v4590_v16 = vmul.f32 %v5187_v60, %v811_v36  ;;  %v4597_v3 = vpop.permute.xlu1 %695  ;;  %v3105_v42 = vld [vmem:[#allocation6 + $0x120] sm:$0xf]  ;;  %v656_v56 = vunpack.c.h.b16 %v4513_v61  ;;  %v2477_v36 = vunpack.c.l.bf16 %v4576_v5 }
 0x14a   : > { %1063 = vst [vmem:[#allocation6 + $0x128] sm:$0x33] %v1061_v8  ;;  %v834_v44 = vpop.permute.xlu2 %833  ;;  %v4601_v54 = vpop.permute.xlu0 %767  ;;  %v3106_v0 = vor.u32 %v3596_v38, %v3105_v42  ;;  %v4603_v53 = vperm.slane %v664_v62, 2  ;;  %v4605_v58 = vperm.slane %v2390_v29, 3  ;;  %v2418_v51 = vshrl.u32 %v2413_v10, 16 }
 0x14b   : > { %v837_v17 = vsel %vm835_vm8, %v4318_v15, %v834_v44  ;;  %v838_v47 = vsel %vm835_vm8, %v834_v44, %v4470_v59  ;;  %v772_v61 = vsel %vm771_vm10, %v4428_v50, %v4601_v54  ;;  %v713_v31 = vsel %vm703_vm12, %v4597_v3, %v4468_v7  ;;  %v3594_v29 = vld [vmem:[#allocation6 + $0x124] sm:$0xf] }
 0x14c   : > { %1831 = vmatpush.bf16.msrb.mxu2 %v5188_v22  ;;  %v881_v38 = vunpack.c.l.bf16 %v837_v17  ;;  %v882_v18 = vunpack.c.l.bf16 %v838_v47  ;;  %v812_v62 = vunpack.c.l.bf16 %v772_v61  ;;  %1807 = vmatpush.bf16.msra.mxu0 %v3106_v0  ;;  %v736_v15 = vperm.slane %v734_v34, 2  ;;  %v3597_v0 = vld [vmem:[#allocation6 + $0x134] sm:$0xf0] }
 0x14d   : > { %v1535_v26 = vpack.c.b16 %v1531_v45, %v1531_v45  ;;  %v1547_v43 = vshrl.u32 %v1534_v27, 16  ;;  %v660_v59 = vpack.c.b16 %v656_v56, %v656_v56  ;;  %v683_v8 = vunpack.c.l.bf16 %v4603_v53 }
 0x14e   : > { %v889_v60 = vmul.f32 %v4538_v32, %v881_v38  ;;  %v890_v50 = vmul.f32 %v4550_v37, %v882_v18  ;;  %v2526_v10 = vmul.f32 %v2522_v52, %v881_v38  ;;  %v747_v22 = vunpack.c.l.bf16 %v713_v31  ;;  %v583_v38 = vld [vmem:[%s5174_s2] sm:$0x22] }
 0x14f   : > { %v820_v42 = vmul.f32 %v816_v13, %v812_v62  ;;  %v3110_v44 = vor.u32 %v3594_v29, %v3107_v20  ;;  %v4620_v17 = vpack.i.b16 %v2418_v51, %v2418_v51  ;;  %v4627_v45 = vmul.f32 %v2523_v24, %v882_v18 }
 0x150   : > { %1832 = vmatpush.bf16.msrb.mxu2 %v3126_v49  ;;  %v4625_v49 = vld [vmem:[%s5174_s2 + $0x20] sm:$0x88]  ;;  %v892_v34 = vpack.c.bf16 %v890_v50, %v889_v60  ;;  %v2529_v32 = vpack.c.bf16 %v2526_v10, %v4504_v30  ;;  %v1548_v37 = vpack.i.b16 %v1547_v43, %v1547_v43  ;;  %v752_v13 = vunpack.c.l.bf16 %v736_v15  ;;  %v2321_v15 = vld [vmem:[%s5174_s2 + $0x20] sm:$0x44] }
 0x151   : > { %v823_v52 = vpack.c.bf16 %v820_v42, %v4586_v25  ;;  %v4631_v27 = vpop.permute.xlu1 %631  ;;  %v3113_v56 = vld [vmem:[#allocation6 + $0x128] sm:$0xf]  ;;  %v1552_v53 = vshrl.u32 %v1535_v26, 16  ;;  %v668_v47 = vpack.i.b16 %v660_v59, %v660_v59  ;;  %v2369_v31 = vunpack.c.l.b16 %v4625_v49  ;;  %v4656_v26 = vld [vmem:[#allocation6 + $0xe4] sm:$0xf] }
 0x152   : > { %894 = vst [vmem:[#allocation6 + $0xe8] sm:$0x33] %v892_v34  ;;  %v4636_v61 = vsel %vm639_vm13, %v4631_v27, %v4496_v28  ;;  %v4638_v24 = vpop.permute.xlu2 %899  ;;  %v4640_v30 = vpop.permute.xlu0 %699  ;;  %v3114_v51 = vor.u32 %v3597_v0, %v3113_v56  ;;  %v1550_v25 = vperm.slane %v1548_v37, 0  ;;  %v755_v43 = vmul.f32 %v4531_v63, %v747_v22 }
 0x153   : > { %825 = vst [vmem:[#allocation6 + $0xc0] sm:$0x33] %v823_v52  ;;  %v5179_v29 = vunpack.c.l.bf16 %v4636_v61  ;;  %v4651_v20 = vsel %vm703_vm12, %v4468_v7, %v4640_v30  ;;  %v4660_v59 = vmul.f32 %v4533_v19, %v747_v22  ;;  %v670_v50 = vperm.slane %v668_v47, 2  ;;  %v2322_v7 = vld [vmem:[%s5174_s2 + $0x28] sm:$0x44] }
 0x154   : > { %1833 = vmatpush.bf16.msrb.mxu2 %v3110_v44  ;;  %v5178_v60 = vunpack.c.l.bf16 %v4651_v20  ;;  %1859 = vmatpush.bf16.msra.mxu1 %v3114_v51  ;;  %2531 = vst [vmem:[#allocation6 + $0xe0] sm:$0x33] %v2529_v32  ;;  %v4670_v42 = vmul.f32 %v2477_v36, %v812_v62  ;;  %v2421_v63 = vperm.slane %v4620_v17, 3  ;;  %v1562_v44 = vunpack.c.l.bf16 %v1550_v25  ;;  %v4678_v32 = vld [vmem:[%s5174_s2 + $0x10] sm:$0x11] }
 0x155   : > { %5189 = vst [vmem:[#allocation7_spill] sm:$0xff] %v4660_v59  ;;  %v2373_v0 = vpack.c.b16 %v2369_v31, %v2369_v31  ;;  %v587_v34 = vunpack.c.l.b16 %v583_v38  ;;  %v687_v37 = vmul.f32 %v683_v8, %v5179_v29  ;;  %v588_v5 = vunpack.c.h.b16 %v583_v38 }
 0x156   : > { %v756_v22 = vmul.f32 %v752_v13, %v5178_v60  ;;  %v2325_v36 = vunpack.c.l.b16 %v2321_v15  ;;  %v2328_v62 = vunpack.c.h.b16 %v2322_v7  ;;  %v684_v56 = vunpack.c.l.bf16 %v670_v50 }
 0x157   : > { %v591_v47 = vpack.c.b16 %v587_v34, %v587_v34  ;;  %v592_v51 = vpack.c.b16 %v588_v5, %v588_v5  ;;  %v2378_v15 = vpack.i.b16 %v2373_v0, %v2373_v0 }
 0x158   : > { %2093 = vmatpush.bf16.msra.mxu2 %v3366_v14  ;;  %v1553_v14 = vpack.i.b16 %v1552_v53, %v1552_v53  ;;  %v759_v52 = vpack.c.bf16 %v756_v22, %v755_v43  ;;  %v3584_v53 = vld [vmem:[#allocation6 + $0xcc] sm:$0xf0]  ;;  %v2329_v25 = vpack.c.b16 %v2325_v36, %v2325_v36  ;;  %v2332_v31 = vpack.c.b16 %v2328_v62, %v2328_v62 }
 0x159   : > { %v1511_v13 = vpop.permute.xlu1 %1510  ;;  %v596_v7 = vshrl.u32 %v591_v47, 16  ;;  %v2533_v47 = vld [vmem:[%s5174_s2 + $0x30] sm:$0x22] }
 0x15a   : > { %v1555_v19 = vperm.slane %v1553_v14, 0  ;;  %v920_v14 = vunpack.c.h.b16 %v4678_v32  ;;  %761 = vst [vmem:[#allocation6 + $0xa0] sm:$0x33] %v759_v52  ;;  %v1515_v10 = vsel %vm1512_vm7, %v4352_v2, %v1511_v13  ;;  %v1522_v8 = vsel %vm1512_vm7, %v1511_v13, %v4192_v9  ;;  %v4687_v38 = vpop.permute.xlu2 %503  ;;  %v4689_v43 = vpop.permute.xlu0 %635  ;;  %v3349_v50 = vld [vmem:[#allocation6 + $0xc0] sm:$0xf] }
 0x15b   : > { %v1559_v22 = vunpack.c.l.bf16 %v1522_v8  ;;  %v640_v34 = vsel %vm639_vm13, %v4496_v28, %v4689_v43  ;;  %v3350_v5 = vor.u32 %v3584_v53, %v3349_v50  ;;  %v597_v62 = vpack.i.b16 %v596_v7, %v596_v7  ;;  %v3580_v50 = vld [vmem:[#allocation6 + $0xac] sm:$0xf0] }
 0x15c   : > { %v1563_v17 = vunpack.c.l.bf16 %v1555_v19  ;;  %v1558_v19 = vunpack.c.l.bf16 %v1515_v10  ;;  %v680_v36 = vunpack.c.l.bf16 %v640_v34  ;;  %v601_v2 = vshrl.u32 %v592_v51, 16 }
 0x15d   : > { %v2334_v52 = vshrl.u32 %v2329_v25, 16  ;;  %2094 = vmatpush.bf16.msra.mxu2 %v3350_v5  ;;  %v2349_v13 = vshrl.u32 %v2332_v31, 16  ;;  %v924_v0 = vpack.c.b16 %v920_v14, %v920_v14  ;;  %v2380_v10 = vperm.slane %v2378_v15, 3  ;;  %v4700_v25 = vld [vmem:[%s5174_s2 + $0x38] sm:$0x22] }
 0x15e   : > { %v1566_v60 = vmul.f32 %v1562_v44, %v1558_v19  ;;  %v1567_v9 = vmul.f32 %v1563_v17, %v1559_v22  ;;  %v688_v8 = vmul.f32 %v684_v56, %v680_v36  ;;  %v599_v18 = vperm.slane %v597_v62, 1 }
 0x15f   : > { %v602_v29 = vpack.i.b16 %v601_v2, %v601_v2  ;;  %v2335_v28 = vpack.i.b16 %v2334_v52, %v2334_v52  ;;  %v2350_v53 = vpack.i.b16 %v2349_v13, %v2349_v13  ;;  %v932_v7 = vpack.i.b16 %v924_v0, %v924_v0 }
 0x160   : > { %v1569_v59 = vpack.c.bf16 %v1567_v9, %v1566_v60  ;;  %v691_v51 = vpack.c.bf16 %v688_v8, %v687_v37  ;;  %v2537_v17 = vunpack.c.l.b16 %v2533_v47  ;;  %v5190_v31 = vunpack.c.l.bf16 %v4636_v61 }
 0x161   : > { %v604_v44 = vperm.slane %v602_v29, 1  ;;  %v5191_v56 = vunpack.c.l.bf16 %v4605_v58  ;;  %v2437_v60 = vunpack.c.l.bf16 %v2421_v63  ;;  %v4708_v15 = vpop.permute.xlu1 %567  ;;  %v2337_v19 = vperm.slane %v2335_v28, 2  ;;  %v3333_v37 = vld [vmem:[#allocation6 + $0xa0] sm:$0xf] }
 0x162   : > { %1571 = vst [vmem:[#allocation6 + $0x228] sm:$0x33] %v1569_v59  ;;  %v919_v29 = vunpack.c.l.b16 %v4678_v32  ;;  %v2393_v22 = vunpack.c.l.bf16 %v2380_v10  ;;  %v4711_v34 = vpop.permute.xlu2 %433  ;;  %v619_v5 = vunpack.c.l.bf16 %v599_v18  ;;  %v566_v2 = vpop.permute.xlu0 %565  ;;  %v3334_v61 = vor.u32 %v3580_v50, %v3333_v37 }
 0x163   : > { %v4706_v14 = vmul.f32 %v5191_v56, %v5190_v31  ;;  %693 = vst [vmem:[#allocation6 + $0x80] sm:$0x33] %v691_v51  ;;  %v620_v62 = vunpack.c.l.bf16 %v604_v44  ;;  %v2352_v52 = vperm.slane %v2350_v53, 2  ;;  %v572_v58 = vsel %vm571_vm14, %v566_v2, %v4708_v15  ;;  %v4726_v53 = vld [vmem:[%s5174_s2] sm:$0x22] }
 0x164   : > { %v581_v59 = vsel %vm571_vm14, %v4557_v39, %v566_v2  ;;  %v934_v63 = vperm.slane %v932_v7, 0  ;;  %v616_v13 = vunpack.c.l.bf16 %v572_v58  ;;  %2095 = vmatpush.bf16.msra.mxu2 %v3334_v61  ;;  %v2541_v32 = vpack.c.b16 %v2537_v17, %v2537_v17  ;;  %v3629_v44 = vld [vmem:[#allocation6 + $0x234] sm:$0xf0]  ;;  %v3367_v17 = vld [vmem:[#allocation6 + $0xf0] sm:$0xf0] }
 0x165   : > { %v615_v9 = vunpack.c.l.bf16 %v581_v59  ;;  %v2540_v0 = vunpack.c.h.b16 %v4700_v25  ;;  %v5192_v47 = vunpack.c.l.bf16 %v4651_v20  ;;  %v2353_v10 = vunpack.c.l.bf16 %v2337_v19  ;;  %v3576_v19 = vld [vmem:[#allocation6 + $0x8c] sm:$0xf0] }
 0x166   : > { %v923_v8 = vpack.c.b16 %v919_v29, %v919_v29  ;;  %v1611_v28 = vunpack.c.l.b16 %v4523_v21  ;;  %v4728_v50 = vmul.f32 %v2393_v22, %v680_v36  ;;  %v624_v51 = vmul.f32 %v620_v62, %v616_v13  ;;  %v4738_v22 = vld [vmem:[%s5174_s2 + $0x20] sm:$0x44] }
 0x167   : > { %v4720_v18 = vmul.f32 %v2437_v60, %v5192_v47  ;;  %v623_v7 = vmul.f32 %v619_v5, %v615_v9  ;;  %v2356_v31 = vunpack.c.l.bf16 %v2352_v52  ;;  %v948_v20 = vunpack.c.l.bf16 %v934_v63  ;;  %v3243_v60 = vld [vmem:[#allocation6 + $0x238] sm:$0xf0] }
 0x168   : > { %v928_v56 = vpack.i.b16 %v923_v8, %v923_v8  ;;  %v4730_v37 = vpack.c.b16 %v1611_v28, %v1611_v28  ;;  %v2546_v29 = vpack.i.b16 %v2541_v32, %v2541_v32  ;;  %v4732_v2 = vpack.c.b16 %v2540_v0, %v2540_v0  ;;  %v652_v0 = vld [vmem:[%s5174_s2 + $0x8] sm:$0x44] }
 0x169   : > { %v627_v21 = vpack.c.bf16 %v624_v51, %v623_v7  ;;  %v3241_v61 = vld [vmem:[#allocation6 + $0x228] sm:$0xf]  ;;  %v3627_v58 = vld [vmem:[#allocation6 + $0x22c] sm:$0xf]  ;;  %v524_v36 = vunpack.c.h.b16 %v4726_v53  ;;  %v4740_v5 = vmul.f32 %v2353_v10, %v616_v13  ;;  %v898_v62 = vpop.permute.xlu1 %897  ;;  %v3370_v32 = vor.u32 %v4656_v26, %v3367_v17 }
 0x16a   : > { %v930_v52 = vperm.slane %v928_v56, 0  ;;  %v3242_v59 = vor.u32 %v3629_v44, %v3241_v61  ;;  %v3317_v63 = vld [vmem:[#allocation6 + $0x80] sm:$0xf]  ;;  %1808 = vmatmul.bf16.vlgmr.msra.gmra.mxu0 %v4730_v37  ;;  %1860 = vmatmul.bf16.vlgmr.msra.gmra.mxu1 %v4730_v37  ;;  %v4750_v47 = vsel %vm903_vm15, %v898_v62, %v4638_v24  ;;  %v4752_v13 = vpop.permute.xlu2 %360  ;;  %v4754_v10 = vpop.permute.xlu0 %895  ;;  %v3246_v8 = vor.u32 %v3627_v58, %v3243_v60  ;;  %v3582_v56 = vld [vmem:[#allocation6 + $0xc4] sm:$0xf] }
 0x16b   : > { %629 = vst [vmem:[#allocation6 + $0x60] sm:$0x33] %v627_v21  ;;  %v3318_v28 = vor.u32 %v3576_v19, %v3317_v63  ;;  %v528_v7 = vpack.c.b16 %v524_v36, %v524_v36  ;;  %v4756_v51 = vmul.f32 %v2356_v31, %v615_v9  ;;  %v944_v26 = vunpack.c.l.bf16 %v4750_v47  ;;  %v3351_v21 = vld [vmem:[#allocation6 + $0xd0] sm:$0xf0]  ;;  %1834 = vmatmul.bf16.vlgmr.msrb.gmra.mxu2 %v4730_v37 }
 0x16c   : > { %5193 = vst [vmem:[#allocation8_spill] sm:$0xff] %v4754_v10  ;;  %v947_v44 = vunpack.c.l.bf16 %v930_v52  ;;  %v4761_v17 = vsel %vm903_vm15, %v4754_v10, %v898_v62  ;;  %1872 = vmatpush.bf16.msrb.mxu3 %v3242_v59  ;;  %v4764_v61 = vperm.slane %v2546_v29, 1  ;;  %1898 = vmatpush.bf16.msrb.mxu0 %v3246_v8  ;;  %v2285_v9 = vunpack.c.l.b16 %v4738_v22 }
 0x16d   : > { %5194 = vst [vmem:[#allocation9_spill] sm:$0xff] %v4756_v51  ;;  %v5180_v60 = vunpack.c.l.bf16 %v4761_v17  ;;  %2096 = vmatpush.bf16.msra.mxu2 %v3318_v28  ;;  %v657_v31 = vunpack.c.l.b16 %v652_v0  ;;  %v952_v19 = vmul.f32 %v948_v20, %v944_v26  ;;  %v5196_v58 = vor.u32 %v4340_v6, %v4342_v4  ;;  %v4782_v4 = vld [vmem:[%s5174_s2 + $0x28] sm:$0x44] }
 0x16e   : > { %5195 = vst [vmem:[#allocation10_spill] sm:$0xff] %v4761_v17  ;;  %v536_v36 = vpack.i.b16 %v528_v7, %v528_v7  ;;  %v658_v62 = vunpack.c.h.b16 %v652_v0  ;;  %v2370_v29 = vunpack.c.h.b16 %v4625_v49  ;;  %v3354_v59 = vor.u32 %v3582_v56, %v3351_v21 }
 0x16f   : > { %v951_v52 = vmul.f32 %v947_v44, %v5180_v60  ;;  %v2289_v63 = vpack.c.b16 %v2285_v9, %v2285_v9  ;;  %3249 = vmatmul.msk.bf16.vlgmr.msrb.gmra.mxu3 %vm1796_vm11, %v4552_v33  ;;  %v661_v8 = vpack.c.b16 %v657_v31, %v657_v31  ;;  %v2371_v28 = vunpack.c.l.b16 %v4518_v35 }
 0x170   : > { %1878 = vmatpush.bf16.msra.mxu3 %v5196_v58  ;;  %2119 = vmatpush.bf16.msra.mxu0 %v3370_v32  ;;  %v662_v20 = vpack.c.b16 %v658_v62, %v658_v62  ;;  %v2374_v6 = vpack.c.b16 %v2370_v29, %v2370_v29  ;;  %v2558_v49 = vpack.i.b16 %v4732_v2, %v4732_v2  ;;  %v523_v7 = vunpack.c.l.b16 %v4726_v53 }
 0x171   : > { %v955_v32 = vpack.c.bf16 %v952_v19, %v951_v52  ;;  %v2294_v0 = vpack.i.b16 %v2289_v63, %v2289_v63  ;;  %v5197_v44 = vor.u32 %v4367_v11, %v4369_v55  ;;  %v538_v56 = vperm.slane %v536_v36, 1  ;;  %v502_v35 = vpop.permute.xlu1 %501 }
 0x172   : > { %v672_v21 = vpack.i.b16 %v661_v8, %v661_v8  ;;  %v676_v9 = vpack.i.b16 %v662_v20, %v662_v20  ;;  %v2375_v31 = vpack.c.b16 %v2371_v28, %v2371_v28  ;;  %v2561_v58 = vunpack.c.l.bf16 %v4764_v61  ;;  %v638_v62 = vpop.permute.xlu2 %637  ;;  %v4802_v8 = vpop.permute.xlu0 %499 }
 0x173   : > { %957 = vst [vmem:[#allocation6 + $0x100] sm:$0x33] %v955_v32  ;;  %v4793_v2 = vsel %vm507_vm0, %v502_v35, %v4687_v38  ;;  %v2382_v19 = vpack.i.b16 %v2374_v6, %v2374_v6  ;;  %v2288_v53 = vunpack.c.h.b16 %v4782_v4  ;;  %v527_v52 = vpack.c.b16 %v523_v7, %v523_v7 }
 0x174   : > { %1879 = vmatpush.bf16.msra.mxu3 %v5197_v44  ;;  %2120 = vmatpush.bf16.msra.mxu0 %v3354_v59  ;;  %v674_v29 = vperm.slane %v672_v21, 2  ;;  %v678_v11 = vperm.slane %v676_v9, 2  ;;  %v2386_v55 = vpack.i.b16 %v2375_v31, %v2375_v31  ;;  %v2296_v36 = vperm.slane %v2294_v0, 2  ;;  %v3572_v44 = vld [vmem:[#allocation6 + $0x6c] sm:$0xf0] }
 0x175   : > { %v2384_v59 = vperm.slane %v2382_v19, 3  ;;  %v641_v63 = vsel %vm639_vm13, %v4689_v43, %v638_v62  ;;  %v4800_v61 = vsel %vm639_vm13, %v638_v62, %v4631_v27  ;;  %v4804_v20 = vperm.slane %v2558_v49, 1  ;;  %v3301_v27 = vld [vmem:[#allocation6 + $0x60] sm:$0xf]  ;;  %v3578_v31 = vld [vmem:[#allocation6 + $0xa4] sm:$0xf] }
 0x176   : > { %v552_v28 = vunpack.c.l.bf16 %v538_v56  ;;  %v685_v6 = vunpack.c.l.bf16 %v674_v29  ;;  %v686_v32 = vunpack.c.l.bf16 %v678_v11  ;;  %v5198_v7 = vor.u32 %v4396_v41, %v4398_v46  ;;  %v3335_v19 = vld [vmem:[#allocation6 + $0xb0] sm:$0xf0]  ;;  %v3611_v29 = vld [vmem:[#allocation6 + $0x1ac] sm:$0xf]  ;;  %v3179_v11 = vld [vmem:[#allocation6 + $0x1b8] sm:$0xf0] }
 0x177   : > { %v548_v0 = vunpack.c.l.bf16 %v4793_v2  ;;  %v2394_v21 = vunpack.c.l.bf16 %v2384_v59  ;;  %v681_v43 = vunpack.c.l.bf16 %v641_v63  ;;  %v682_v9 = vunpack.c.l.bf16 %v4800_v61  ;;  %v4818_v59 = vld [vmem:[%s5174_s2] sm:$0x11] }
 0x178   : > { %1880 = vmatpush.bf16.msra.mxu3 %v5198_v7  ;;  %v2388_v62 = vperm.slane %v2386_v55, 3  ;;  %v532_v49 = vpack.i.b16 %v527_v52, %v527_v52  ;;  %v2292_v60 = vpack.c.b16 %v2288_v53, %v2288_v53  ;;  %v4813_v56 = vsel %vm507_vm0, %v4802_v8, %v502_v35  ;;  %v2238_v35 = vld [vmem:[%s5174_s2 + $0x28] sm:$0x22]  ;;  %v4827_v52 = vld [vmem:[%s5174_s2 + $0x8] sm:$0x11] }
 0x179   : > { %v2309_v41 = vunpack.c.l.bf16 %v2296_v36  ;;  %v689_v46 = vmul.f32 %v685_v6, %v681_v43  ;;  %v690_v7 = vmul.f32 %v686_v32, %v682_v9  ;;  %v2398_v2 = vmul.f32 %v2394_v21, %v681_v43  ;;  %v3319_v55 = vld [vmem:[#allocation6 + $0x90] sm:$0xf0] }
 0x17a   : > { %v534_v63 = vperm.slane %v532_v49, 1  ;;  %v2306_v61 = vpack.i.b16 %v2292_v60, %v2292_v60  ;;  %v3302_v53 = vor.u32 %v3572_v44, %v3301_v27  ;;  %3250 = vmatmul.msk.bf16.vlgmr.msrb.gmra.mxu0 %vm1796_vm11, %v4552_v33  ;;  %v3338_v32 = vor.u32 %v3578_v31, %v3335_v19  ;;  %v3574_v49 = vld [vmem:[#allocation6 + $0x84] sm:$0xf] }
 0x17b   : > { %v692_v36 = vpack.c.bf16 %v690_v7, %v689_v46  ;;  %v2401_v6 = vpack.c.bf16 %v2398_v2, %v4728_v50  ;;  %v3182_v60 = vor.u32 %v3611_v29, %v3179_v11  ;;  %v556_v21 = vmul.f32 %v552_v28, %v548_v0  ;;  %v784_v7 = vld [vmem:[%s5174_s2 + $0x8] sm:$0x88] }
 0x17c   : > { %v2395_v43 = vunpack.c.l.bf16 %v2388_v62  ;;  %v551_v44 = vunpack.c.l.bf16 %v534_v63  ;;  %v2308_v27 = vperm.slane %v2306_v61, 2  ;;  %2097 = vmatpush.bf16.msra.mxu2 %v3302_v53  ;;  %v4834_v17 = vmul.f32 %v2561_v58, %v944_v26  ;;  %2121 = vmatpush.bf16.msra.mxu0 %v3338_v32  ;;  %v432_v62 = vpop.permute.xlu1 %431  ;;  %v4854_v32 = vpop.permute.xlu2 %437 }
 0x17d   : > { %694 = vst [vmem:[#allocation6 + $0x88] sm:$0x33] %v692_v36  ;;  %1881 = vmatpush.bf16.msra.mxu3 %v3182_v60  ;;  %v455_v33 = vunpack.c.l.b16 %v4818_v59  ;;  %v2244_v46 = vunpack.c.h.b16 %v2238_v35  ;;  %v458_v50 = vunpack.c.h.b16 %v4827_v52  ;;  %v4838_v31 = vmul.f32 %v2309_v41, %v548_v0 }
 0x17e   : > { %5199 = vst [vmem:[#allocation11_spill] sm:$0xff] %v4834_v17  ;;  %v5200_v28 = vunpack.c.l.bf16 %v4813_v56  ;;  %v2243_v29 = vunpack.c.l.b16 %v2238_v35  ;;  %v3322_v47 = vor.u32 %v3574_v49, %v3319_v55  ;;  %v4845_v2 = vmul.f32 %v2395_v43, %v682_v9  ;;  %v3729_v49 = vld [vmem:[%s5174_s2 + $0x38] sm:$0x11] }
 0x17f   : > { %2403 = vst [vmem:[#allocation6 + $0x80] sm:$0x33] %v2401_v6  ;;  %v459_v26 = vpack.c.b16 %v455_v33, %v455_v33  ;;  %v2248_v58 = vpack.c.b16 %v2244_v46, %v2244_v46  ;;  %v462_v11 = vpack.c.b16 %v458_v50, %v458_v50  ;;  %v2312_v63 = vunpack.c.l.bf16 %v2308_v27 }
 0x180   : > { %v555_v19 = vmul.f32 %v551_v44, %v5200_v28  ;;  %v2247_v41 = vpack.c.b16 %v2243_v29, %v2243_v29  ;;  %2122 = vmatpush.bf16.msra.mxu0 %v3322_v47  ;;  %v4849_v36 = vsel %vm439_vm1, %v432_v62, %v4711_v34  ;;  %v5201_v35 = vor.u32 %v4435_v57, %v4437_v1 }
 0x181   : > { %v464_v61 = vshrl.u32 %v459_v26, 16  ;;  %v2265_v53 = vshrl.u32 %v2248_v58, 16  ;;  %v479_v55 = vshrl.u32 %v462_v11, 16  ;;  %v789_v9 = vunpack.c.l.b16 %v784_v7 }
 0x182   : > { %v559_v0 = vpack.c.bf16 %v556_v21, %v555_v19  ;;  %1882 = vmatpush.bf16.msra.mxu3 %v5201_v35  ;;  %v2260_v6 = vshrl.u32 %v2247_v41, 16  ;;  %v790_v60 = vunpack.c.h.b16 %v784_v7  ;;  %v2454_v21 = vunpack.c.h.b16 %v4501_v23  ;;  %v4871_v35 = vld [vmem:[#allocation6 + $0xec] sm:$0xf]  ;;  %v3590_v7 = vld [vmem:[#allocation6 + $0x104] sm:$0xf] }
 0x183   : > { %v465_v43 = vpack.i.b16 %v464_v61, %v464_v61  ;;  %v2266_v44 = vpack.i.b16 %v2265_v53, %v2265_v53  ;;  %v480_v27 = vpack.i.b16 %v479_v55, %v479_v55  ;;  %v2455_v33 = vunpack.c.l.b16 %v3729_v49  ;;  %v3592_v55 = vld [vmem:[#allocation6 + $0x10c] sm:$0xf0]  ;;  %v3603_v49 = vld [vmem:[#allocation6 + $0x16c] sm:$0xf] }
 0x184   : > { %561 = vst [vmem:[#allocation6 + $0x40] sm:$0x33] %v559_v0  ;;  %v2261_v46 = vpack.i.b16 %v2260_v6, %v2260_v6  ;;  %v793_v50 = vpack.c.b16 %v789_v9, %v789_v9  ;;  %v794_v1 = vpack.c.b16 %v790_v60, %v790_v60  ;;  %v2458_v57 = vpack.c.b16 %v2454_v21, %v2454_v21 }
 0x185   : > { %v467_v28 = vperm.slane %v465_v43, 0  ;;  %v2268_v19 = vperm.slane %v2266_v44, 1  ;;  %v4862_v29 = vsel %vm439_vm1, %v4854_v32, %v432_v62  ;;  %v2459_v47 = vpack.c.b16 %v2455_v33, %v2455_v33  ;;  %v4873_v62 = vld [vmem:[#allocation6 + $0xe8] sm:$0xf]  ;;  %v770_v43 = vpop.permute.xlu0 %769  ;;  %v3381_v44 = vld [vmem:[#allocation6 + $0x100] sm:$0xf] }
 0x186   : > { %v482_v23 = vperm.slane %v480_v27, 0  ;;  %v804_v26 = vpack.i.b16 %v793_v50, %v793_v50  ;;  %v808_v58 = vpack.i.b16 %v794_v1, %v794_v1  ;;  %v2466_v11 = vpack.i.b16 %v2458_v57, %v2458_v57  ;;  %v3375_v27 = vld [vmem:[#allocation6 + $0xf8] sm:$0xf0]  ;;  %v3570_v57 = vld [vmem:[#allocation6 + $0x64] sm:$0xf] }
 0x187   : > { %v5202_v0 = vunpack.c.l.bf16 %v4813_v56  ;;  %v2470_v53 = vpack.i.b16 %v2459_v47, %v2459_v47  ;;  %v2263_v6 = vperm.slane %v2261_v46, 1  ;;  %v3147_v33 = vld [vmem:[#allocation6 + $0x178] sm:$0xf0]  ;;  %v4875_v56 = vunpack.c.l.bf16 %v467_v28  ;;  %v3303_v47 = vld [vmem:[#allocation6 + $0x70] sm:$0xf0]  ;;  %v4883_v46 = vld [vmem:[%s5173_s1] sm:$0xff] }
 0x188   : > { %v806_v9 = vperm.slane %v804_v26, 3  ;;  %v810_v60 = vperm.slane %v808_v58, 3  ;;  %v2468_v21 = vperm.slane %v2466_v11, 0  ;;  %v4885_v26 = vunpack.c.l.bf16 %v482_v23  ;;  %v3383_v28 = vld [vmem:[#allocation6 + $0x110] sm:$0xf0] }
 0x189   : > { %v4868_v41 = vmul.f32 %v2312_v63, %v5202_v0  ;;  %v4877_v63 = vunpack.c.l.bf16 %v2268_v19  ;;  %v2472_v1 = vperm.slane %v2470_v53, 0  ;;  %v5203_v19 = vpack.c.bf16 %v4508_v48, %v4627_v45 }
 0x18a   : > { %v817_v58 = vunpack.c.l.bf16 %v806_v9  ;;  %v818_v11 = vunpack.c.l.bf16 %v810_v60  ;;  %v2478_v0 = vunpack.c.l.bf16 %v2468_v21  ;;  %v773_v53 = vsel %vm771_vm10, %v4601_v54, %v770_v43  ;;  %v716_v21 = vld [vmem:[%s5174_s2 + $0x8] sm:$0x44] }
 0x18b   : > { %2532 = vst [vmem:[#allocation6 + $0xe8] sm:$0x33] %v5203_v19  ;;  %v2479_v50 = vunpack.c.l.bf16 %v2472_v1  ;;  %v774_v61 = vsel %vm771_vm10, %v770_v43, %v4548_v40  ;;  %v3382_v17 = vor.u32 %v3592_v55, %v3381_v44  ;;  %v4894_v51 = vunpack.c.l.bf16 %v2263_v6  ;;  %v702_v6 = vpop.permute.xlu1 %701 }
 0x18c   : > { %v813_v23 = vunpack.c.l.bf16 %v773_v53  ;;  %v814_v9 = vunpack.c.l.bf16 %v774_v61  ;;  %v3306_v60 = vor.u32 %v3570_v57, %v3303_v47  ;;  %v3386_v48 = vor.u32 %v3590_v7, %v3383_v28 }
 0x18d   : > { %2113 = vmatpush.bf16.msrb.mxu1 %v3382_v17  ;;  %v1906_v45 = vunpack.c.h.b16 %v4883_v46  ;;  %v3378_v1 = vor.u32 %v4871_v35, %v3375_v27  ;;  %v3150_v54 = vor.u32 %v3603_v49, %v3147_v33  ;;  %v721_v43 = vunpack.c.l.b16 %v716_v21  ;;  %v3730_v27 = vld [vmem:[%s5174_s2 + $0x28] sm:$0x88] }
 0x18e   : > { %v821_v19 = vmul.f32 %v817_v58, %v813_v23  ;;  %v822_v10 = vmul.f32 %v818_v11, %v814_v9  ;;  %v2482_v40 = vmul.f32 %v2478_v0, %v813_v23  ;;  %v2483_v55 = vmul.f32 %v2479_v50, %v814_v9  ;;  %2123 = vmatpush.bf16.msra.mxu0 %v3306_v60 }
 0x18f   : > { %v4901_v61 = vpack.c.b16 %v1906_v45, %v1906_v45  ;;  %1883 = vmatpush.bf16.msra.mxu3 %v3150_v54  ;;  %v722_v44 = vunpack.c.h.b16 %v716_v21  ;;  %v2410_v17 = vunpack.c.h.b16 %v4543_v12  ;;  %v2411_v49 = vunpack.c.l.b16 %v3730_v27  ;;  %v2237_v12 = vld [vmem:[%s5174_s2 + $0x20] sm:$0x22] }
 0x190   : > { %v824_v7 = vpack.c.bf16 %v822_v10, %v821_v19  ;;  %v2485_v57 = vpack.c.bf16 %v2482_v40, %v4670_v42  ;;  %v2486_v35 = vpack.c.bf16 %v4590_v16, %v2483_v55  ;;  %v725_v33 = vpack.c.b16 %v721_v43, %v721_v43 }
 0x191   : > { %2139 = vmatpush.bf16.msra.mxu1 %v3386_v48  ;;  %v726_v50 = vpack.c.b16 %v722_v44, %v722_v44  ;;  %v2414_v47 = vpack.c.b16 %v2410_v17, %v2410_v17  ;;  %v705_v58 = vsel %vm703_vm12, %v4640_v30, %v702_v6  ;;  %v2415_v16 = vpack.c.b16 %v2411_v49, %v2411_v49  ;;  %v436_v17 = vpop.permute.xlu0 %435 }
 0x192   : > { %3395 = vmatmul.msk.bf16.vlgmr.msrb.gmra.mxu1 %vm1796_vm11, %v4901_v61  ;;  %826 = vst [vmem:[#allocation6 + $0xc8] sm:$0x33] %v824_v7  ;;  %v706_v42 = vsel %vm703_vm12, %v702_v6, %v4597_v3  ;;  %v749_v10 = vunpack.c.l.bf16 %v705_v58  ;;  %v456_v11 = vunpack.c.h.b16 %v4818_v59  ;;  %v738_v0 = vshrl.u32 %v725_v33, 16 }
 0x193   : > { %2487 = vst [vmem:[#allocation6 + $0xc0] sm:$0x33] %v2485_v57  ;;  %v743_v28 = vshrl.u32 %v726_v50, 16  ;;  %v2423_v53 = vshrl.u32 %v2414_v47, 16  ;;  %v750_v23 = vunpack.c.l.bf16 %v706_v42  ;;  %v2428_v9 = vshrl.u32 %v2415_v16, 16 }
 0x194   : > { %v457_v30 = vunpack.c.l.b16 %v4827_v52  ;;  %v460_v60 = vpack.c.b16 %v456_v11, %v456_v11  ;;  %v2241_v21 = vunpack.c.l.b16 %v2237_v12  ;;  %v739_v48 = vpack.i.b16 %v738_v0, %v738_v0 }
 0x195   : > { %2171 = vmatpush.bf16.msrb.mxu1 %v3378_v1  ;;  %v744_v45 = vpack.i.b16 %v743_v28, %v743_v28  ;;  %v2424_v1 = vpack.i.b16 %v2423_v53, %v2423_v53  ;;  %v2242_v54 = vunpack.c.h.b16 %v2237_v12  ;;  %v2429_v19 = vpack.i.b16 %v2428_v9, %v2428_v9 }
 0x196   : > { %v461_v40 = vpack.c.b16 %v457_v30, %v457_v30  ;;  %v469_v3 = vshrl.u32 %v460_v60, 16  ;;  %v2245_v55 = vpack.c.b16 %v2241_v21, %v2241_v21  ;;  %v741_v6 = vperm.slane %v739_v48, 2  ;;  %v3599_v60 = vld [vmem:[#allocation6 + $0x14c] sm:$0xf]  ;;  %v3131_v21 = vld [vmem:[#allocation6 + $0x158] sm:$0xf0] }
 0x197   : > { %v746_v59 = vperm.slane %v744_v45, 2  ;;  %v2426_v43 = vperm.slane %v2424_v1, 3  ;;  %v2246_v44 = vpack.c.b16 %v2242_v54, %v2242_v54  ;;  %v2431_v7 = vperm.slane %v2429_v19, 3  ;;  %v3285_v19 = vld [vmem:[#allocation6 + $0x40] sm:$0xf] }
 0x198   : > { %v470_v57 = vpack.i.b16 %v469_v3, %v469_v3  ;;  %v474_v27 = vshrl.u32 %v461_v40, 16  ;;  %v2250_v49 = vshrl.u32 %v2245_v55, 16  ;;  %v753_v52 = vunpack.c.l.bf16 %v741_v6  ;;  %v3568_v40 = vld [vmem:[#allocation6 + $0x4c] sm:$0xf0] }
 0x199   : > { %v754_v33 = vunpack.c.l.bf16 %v746_v59  ;;  %v2438_v50 = vunpack.c.l.bf16 %v2426_v43  ;;  %v2255_v47 = vshrl.u32 %v2246_v44, 16  ;;  %v4920_v58 = vld [vmem:[#allocation6 + $0xcc] sm:$0xf]  ;;  %v4922_v12 = vld [vmem:[#allocation6 + $0xc8] sm:$0xf]  ;;  %v2439_v16 = vunpack.c.l.bf16 %v2431_v7 }
 0x19a   : > { %v472_v42 = vperm.slane %v470_v57, 0  ;;  %v475_v11 = vpack.i.b16 %v474_v27, %v474_v27  ;;  %v2251_v0 = vpack.i.b16 %v2250_v49, %v2250_v49  ;;  %2488 = vst [vmem:[#allocation6 + $0xc8] sm:$0x33] %v2486_v35  ;;  %v757_v28 = vmul.f32 %v753_v52, %v749_v10  ;;  %v3566_v59 = vld [vmem:[#allocation6 + $0x44] sm:$0xf] }
 0x19b   : > { %v758_v53 = vmul.f32 %v754_v33, %v750_v23  ;;  %v2442_v9 = vmul.f32 %v2438_v50, %v749_v10  ;;  %v2256_v30 = vpack.i.b16 %v2255_v47, %v2255_v47  ;;  %v4924_v48 = vmul.f32 %v2439_v16, %v750_v23  ;;  %v3287_v43 = vld [vmem:[#allocation6 + $0x50] sm:$0xf0] }
 0x19c   : > { %v477_v45 = vperm.slane %v475_v11, 0  ;;  %v488_v1 = vunpack.c.l.bf16 %v472_v42  ;;  %v2253_v54 = vperm.slane %v2251_v0, 1  ;;  %v440_v35 = vsel %vm439_vm1, %v4711_v34, %v436_v17  ;;  %v3115_v42 = vld [vmem:[#allocation6 + $0x138] sm:$0xf0]  ;;  %v4960_v11 = vld [vmem:[%s5174_s2 + $0x28] sm:$0x22] }
 0x19d   : > { %v760_v3 = vpack.c.bf16 %v758_v53, %v757_v28  ;;  %v2445_v55 = vpack.c.bf16 %v2442_v9, %v4720_v18  ;;  %v2258_v6 = vperm.slane %v2256_v30, 1  ;;  %v5204_v10 = vunpack.c.l.bf16 %v4849_v36  ;;  %v3595_v18 = vld [vmem:[#allocation6 + $0x12c] sm:$0xf]  ;;  %v387_v36 = vld [vmem:[%s5174_s2] sm:$0x11]  ;;  %v370_v30 = vpop.permute.xlu0 %369 }
 0x19e   : > { %v489_v57 = vunpack.c.l.bf16 %v477_v45  ;;  %v441_v27 = vsel %vm439_vm1, %v436_v17, %v4854_v32  ;;  %v5206_v49 = vunpack.c.l.bf16 %v4862_v29  ;;  %v484_v52 = vunpack.c.l.bf16 %v440_v35  ;;  %v4962_v29 = vpop.permute.xlu1 %371  ;;  %v3359_v45 = vld [vmem:[#allocation6 + $0xd8] sm:$0xf0] }
 0x19f   : > { %v491_v44 = vmul.f32 %v4875_v56, %v5204_v10  ;;  %v5205_v23 = vmov %v5204_v10  ;;  %762 = vst [vmem:[#allocation6 + $0xa8] sm:$0x33] %v760_v3  ;;  %v485_v33 = vunpack.c.l.bf16 %v441_v27  ;;  %v3286_v50 = vor.u32 %v3568_v40, %v3285_v19  ;;  %v4948_v56 = vld [vmem:[%s5174_s2 + $0x20] sm:$0x22]  ;;  %v4965_v19 = vld [vmem:[#allocation6 + $0x88] sm:$0xf] }
 0x1a0   : > { %v4935_v7 = vmul.f32 %v4877_v63, %v5205_v23  ;;  %v494_v34 = vmul.f32 %v4885_v26, %v5206_v49  ;;  %v5207_v32 = vmov %v5206_v49  ;;  %v5208_v26 = vld [vmem:[#allocation7_spill] sm:$0xff]  ;;  %2447 = vst [vmem:[#allocation6 + $0xa0] sm:$0x33] %v2445_v55  ;;  %v3290_v47 = vor.u32 %v3566_v59, %v3287_v43  ;;  %v4968_v55 = vld [vmem:[#allocation6 + $0x8c] sm:$0xf] }
 0x1a1   : > { %v4953_v63 = vmul.f32 %v4894_v51, %v5207_v32  ;;  %v2446_v17 = vpack.c.bf16 %v5208_v26, %v4924_v48  ;;  %v3134_v16 = vor.u32 %v3599_v60, %v3131_v21  ;;  %v2269_v0 = vunpack.c.l.bf16 %v2253_v54  ;;  %2098 = vmatpush.bf16.msra.mxu2 %v3286_v50  ;;  %v3589_v51 = vld [vmem:[#allocation6 + $0xf4] sm:$0xf0]  ;;  %v520_v10 = vld [vmem:[%s5174_s2 + $0x8] sm:$0x22] }
 0x1a2   : > { %v2270_v28 = vunpack.c.l.bf16 %v2258_v6  ;;  %v492_v53 = vmul.f32 %v488_v1, %v484_v52  ;;  %v493_v9 = vmul.f32 %v489_v57, %v485_v33  ;;  %2124 = vmatpush.bf16.msra.mxu0 %v3290_v47  ;;  %v391_v48 = vunpack.c.l.b16 %v387_v36  ;;  %3396 = vmatmul.msk.bf16.vlgmr.msra.gmra.mxu1 %vm1796_vm11, %v4901_v61 }
 0x1a3   : > { %1884 = vmatpush.bf16.msra.mxu3 %v3134_v16  ;;  %v392_v60 = vunpack.c.h.b16 %v387_v36  ;;  %v2201_v21 = vunpack.c.l.b16 %v4948_v56  ;;  %v3118_v3 = vor.u32 %v3595_v18, %v3115_v42  ;;  %v2204_v1 = vunpack.c.h.b16 %v4960_v11  ;;  %v3585_v18 = vld [vmem:[#allocation6 + $0xd4] sm:$0xf0] }
 0x1a4   : > { %v495_v40 = vpack.c.bf16 %v492_v53, %v491_v44  ;;  %v496_v54 = vpack.c.bf16 %v494_v34, %v493_v9  ;;  %v3374_v6 = vor.u32 %v3589_v51, %v4873_v62  ;;  %v395_v35 = vpack.c.b16 %v391_v48, %v391_v48 }
 0x1a5   : > { %v396_v59 = vpack.c.b16 %v392_v60, %v392_v60  ;;  %v4975_v43 = vsel %vm375_vm2, %v370_v30, %v4962_v29  ;;  %v5209_v44 = vpack.c.bf16 %v4706_v14, %v4845_v2  ;;  %v2273_v23 = vmul.f32 %v2269_v0, %v484_v52 }
 0x1a6   : > { %497 = vst [vmem:[#allocation6 + $0x20] sm:$0x33] %v495_v40  ;;  %v2274_v57 = vmul.f32 %v2270_v28, %v485_v33  ;;  %v4985_v62 = vsel %vm375_vm2, %v4752_v13, %v370_v30  ;;  %v3362_v27 = vor.u32 %v4920_v58, %v3359_v45  ;;  %v2564_v49 = vunpack.c.l.bf16 %v4804_v20  ;;  %v4991_v14 = vld [vmem:[#allocation6 + $0xa8] sm:$0xf]  ;;  %v4993_v2 = vld [vmem:[#allocation6 + $0xac] sm:$0xf] }
 0x1a7   : > { %2404 = vst [vmem:[#allocation6 + $0x88] sm:$0x33] %v5209_v44  ;;  %1885 = vmatpush.bf16.msra.mxu3 %v3118_v3  ;;  %v400_v34 = vpack.i.b16 %v395_v35, %v395_v35  ;;  %v404_v50 = vpack.i.b16 %v396_v59, %v396_v59  ;;  %v4989_v36 = vpack.c.b16 %v2201_v21, %v2201_v21  ;;  %v416_v33 = vunpack.c.l.bf16 %v4975_v43  ;;  %v584_v44 = vld [vmem:[%s5174_s2 + $0x8] sm:$0x22]  ;;  %v3658_v43 = vld [vmem:[#allocation6 + $0xe4] sm:$0xf] }
 0x1a8   : > { %498 = vst [vmem:[#allocation6 + $0x28] sm:$0x33] %v496_v54  ;;  %v4995_v52 = vpack.c.b16 %v2204_v1, %v2204_v1  ;;  %2172 = vmatpush.bf16.msrb.mxu1 %v3362_v27  ;;  %v525_v58 = vunpack.c.l.b16 %v520_v10  ;;  %v526_v32 = vunpack.c.h.b16 %v520_v10  ;;  %v415_v16 = vunpack.c.l.bf16 %v4985_v62  ;;  %v3565_v20 = vld [vmem:[#allocation6 + $0x34] sm:$0xf0]  ;;  %v3484_v62 = vld [vmem:[#allocation6 + $0xb0] sm:$0xf0] }
 0x1a9   : > { %2448 = vst [vmem:[#allocation6 + $0xa8] sm:$0x33] %v2446_v17  ;;  %v402_v26 = vperm.slane %v400_v34, 0  ;;  %v406_v47 = vperm.slane %v404_v50, 0  ;;  %v2286_v42 = vunpack.c.h.b16 %v4738_v22  ;;  %v3358_v0 = vor.u32 %v3585_v18, %v4922_v12  ;;  %v506_v22 = vpop.permute.xlu1 %505 }
 0x1aa   : > { %v529_v28 = vpack.c.b16 %v525_v58, %v525_v58  ;;  %v530_v53 = vpack.c.b16 %v526_v32, %v526_v32  ;;  %v2287_v9 = vunpack.c.l.b16 %v4782_v4  ;;  %1886 = vmatmul.bf16.vlgmr.msra.gmra.mxu3 %v4730_v37  ;;  %v2278_v51 = vpack.c.bf16 %v4935_v7, %v4953_v63  ;;  %v3733_v7 = vld [vmem:[%s5174_s2 + $0x30] sm:$0x22] }
 0x1ab   : > { %2145 = vmatpush.bf16.msrb.mxu3 %v3374_v6  ;;  %v419_v30 = vunpack.c.l.bf16 %v402_v26  ;;  %v420_v48 = vunpack.c.l.bf16 %v406_v47  ;;  %v2290_v17 = vpack.c.b16 %v2286_v42, %v2286_v42  ;;  %v2277_v60 = vpack.c.bf16 %v2274_v57, %v2273_v23 }
 0x1ac   : > { %v540_v21 = vpack.i.b16 %v529_v28, %v529_v28  ;;  %v544_v45 = vpack.i.b16 %v530_v53, %v530_v53  ;;  %v2291_v40 = vpack.c.b16 %v2287_v9, %v2287_v9  ;;  %v2210_v12 = vpack.i.b16 %v4989_v36, %v4989_v36  ;;  %v3731_v9 = vld [vmem:[%s5174_s2 + $0x20] sm:$0x44] }
 0x1ad   : > { %v423_v4 = vmul.f32 %v419_v30, %v415_v16  ;;  %v424_v37 = vmul.f32 %v420_v48, %v416_v33  ;;  %v2298_v54 = vpack.i.b16 %v2290_v17, %v2290_v17  ;;  %v5011_v3 = vld [vmem:[#allocation6 + $0x20] sm:$0xf]  ;;  %v5013_v1 = vld [vmem:[#allocation6 + $0x24] sm:$0xf]  ;;  %v2222_v6 = vpack.i.b16 %v4995_v52, %v4995_v52  ;;  %v5213_v52 = vld [vmem:[#allocation10_spill] sm:$0xff] }
 0x1ae   : > { %v542_v35 = vperm.slane %v540_v21, 1  ;;  %v546_v59 = vperm.slane %v544_v45, 1  ;;  %v2302_v10 = vpack.i.b16 %v2291_v40, %v2291_v40  ;;  %2279 = vst [vmem:[#allocation6 + $0x20] sm:$0x33] %v2277_v60  ;;  %v509_v27 = vsel %vm507_vm0, %v4687_v38, %v506_v22 }
 0x1af   : > { %2146 = vmatpush.bf16.msrb.mxu3 %v3358_v0  ;;  %v427_v23 = vpack.c.bf16 %v424_v37, %v423_v4  ;;  %v2300_v57 = vperm.slane %v2298_v54, 2  ;;  %v510_v18 = vsel %vm507_vm0, %v506_v22, %v4802_v8  ;;  %v549_v58 = vunpack.c.l.bf16 %v509_v27  ;;  %v570_v0 = vpop.permute.xlu0 %569  ;;  %v3732_v8 = vld [vmem:[%s5174_s2 + $0x28] sm:$0x44]  ;;  %v3564_v37 = vld [vmem:[#allocation6 + $0x2c] sm:$0xf0] }
 0x1b0   : > { %v553_v34 = vunpack.c.l.bf16 %v542_v35  ;;  %v554_v50 = vunpack.c.l.bf16 %v546_v59  ;;  %v2304_v36 = vperm.slane %v2302_v10, 2  ;;  %v550_v26 = vunpack.c.l.bf16 %v510_v18  ;;  %v3271_v54 = vld [vmem:[#allocation6 + $0x30] sm:$0xf0] }
 0x1b1   : > { %429 = vst [vmem:[#allocation6] sm:$0x33] %v427_v23  ;;  %v2310_v32 = vunpack.c.l.bf16 %v2300_v57  ;;  %v589_v47 = vunpack.c.l.b16 %v584_v44  ;;  %v590_v42 = vunpack.c.h.b16 %v584_v44  ;;  %v2326_v38 = vunpack.c.h.b16 %v3731_v9  ;;  %v3581_v23 = vld [vmem:[#allocation6 + $0xb4] sm:$0xf0]  ;;  %v3343_v57 = vld [vmem:[#allocation6 + $0xb8] sm:$0xf0] }
 0x1b2   : > { %v2311_v28 = vunpack.c.l.bf16 %v2304_v36  ;;  %v557_v53 = vmul.f32 %v553_v34, %v549_v58  ;;  %v2327_v30 = vunpack.c.l.b16 %v3732_v8  ;;  %v558_v48 = vmul.f32 %v554_v50, %v550_v26  ;;  %v5041_v50 = vld [vmem:[#allocation6 + $0x28] sm:$0xf] }
 0x1b3   : > { %v2314_v17 = vmul.f32 %v2310_v32, %v549_v58  ;;  %v593_v60 = vpack.c.b16 %v589_v47, %v589_v47  ;;  %v594_v21 = vpack.c.b16 %v590_v42, %v590_v42  ;;  %v5030_v45 = vperm.slane %v2210_v12, 1  ;;  %v3577_v47 = vld [vmem:[#allocation6 + $0x94] sm:$0xf0] }
 0x1b4   : > { %v2330_v40 = vpack.c.b16 %v2326_v38, %v2326_v38  ;;  %v2331_v22 = vpack.c.b16 %v2327_v30, %v2327_v30  ;;  %v573_v4 = vsel %vm571_vm14, %v4708_v15, %v570_v0  ;;  %v560_v35 = vpack.c.bf16 %v558_v48, %v557_v53  ;;  %v5043_v15 = vld [vmem:[#allocation6 + $0x2c] sm:$0xf]  ;;  %v3327_v30 = vld [vmem:[#allocation6 + $0x98] sm:$0xf0] }
 0x1b5   : > { %v2317_v59 = vpack.c.bf16 %v2314_v17, %v4838_v31  ;;  %v606_v10 = vshrl.u32 %v593_v60, 16  ;;  %v611_v44 = vshrl.u32 %v594_v21, 16  ;;  %v5035_v27 = vmul.f32 %v2311_v28, %v550_v26  ;;  %2280 = vst [vmem:[#allocation6 + $0x28] sm:$0x33] %v2278_v51 }
 0x1b6   : > { %v2339_v18 = vshrl.u32 %v2330_v40, 16  ;;  %v2344_v34 = vshrl.u32 %v2331_v22, 16  ;;  %v5039_v12 = vsel %vm571_vm14, %v570_v0, %v4557_v39  ;;  %562 = vst [vmem:[#allocation6 + $0x48] sm:$0x33] %v560_v35  ;;  %v617_v31 = vunpack.c.l.bf16 %v573_v4  ;;  %v916_v39 = vld [vmem:[%s5174_s2 + $0x18] sm:$0x11] }
 0x1b7   : > { %v607_v36 = vpack.i.b16 %v606_v10, %v606_v10  ;;  %v612_v58 = vpack.i.b16 %v611_v44, %v611_v44  ;;  %v618_v32 = vunpack.c.l.bf16 %v5039_v12  ;;  %2319 = vst [vmem:[#allocation6 + $0x40] sm:$0x33] %v2317_v59  ;;  %v3270_v28 = vor.u32 %v3564_v37, %v5011_v3 }
 0x1b8   : > { %v2340_v26 = vpack.i.b16 %v2339_v18, %v2339_v18  ;;  %v2345_v42 = vpack.i.b16 %v2344_v34, %v2344_v34  ;;  %v3274_v53 = vor.u32 %v5013_v1, %v3271_v54  ;;  %v3342_v38 = vor.u32 %v3581_v23, %v4991_v14 }
 0x1b9   : > { %v609_v0 = vperm.slane %v607_v36, 1  ;;  %v614_v9 = vperm.slane %v612_v58, 1  ;;  %v3346_v8 = vor.u32 %v4993_v2, %v3343_v57  ;;  %v2318_v3 = vpack.c.bf16 %v4868_v41, %v5035_v27  ;;  %2099 = vmatpush.bf16.msra.mxu2 %v3270_v28  ;;  %v5210_v28 = vld [vmem:[#allocation8_spill] sm:$0xff] }
 0x1ba   : > { %v2342_v48 = vperm.slane %v2340_v26, 2  ;;  %v2347_v1 = vperm.slane %v2345_v42, 2  ;;  %2125 = vmatpush.bf16.msra.mxu0 %v3274_v53  ;;  %v3326_v17 = vor.u32 %v3577_v47, %v4965_v19  ;;  %2147 = vmatpush.bf16.msrb.mxu3 %v3342_v38  ;;  %v921_v14 = vunpack.c.l.b16 %v916_v39  ;;  %v388_v19 = vld [vmem:[%s5174_s2 + $0x8] sm:$0x11] }
 0x1bb   : > { %v621_v60 = vunpack.c.l.bf16 %v609_v0  ;;  %v622_v21 = vunpack.c.l.bf16 %v614_v9  ;;  %2173 = vmatpush.bf16.msrb.mxu1 %v3346_v8  ;;  %v922_v2 = vunpack.c.h.b16 %v916_v39  ;;  %v3330_v22 = vor.u32 %v4968_v55, %v3327_v30  ;;  %v902_v55 = vpop.permute.xlu1 %901 }
 0x1bc   : > { %v2354_v40 = vunpack.c.l.bf16 %v2342_v48  ;;  %v2538_v41 = vunpack.c.h.b16 %v3733_v7  ;;  %v2539_v63 = vunpack.c.l.b16 %v4700_v25  ;;  %v925_v37 = vpack.c.b16 %v921_v14, %v921_v14 }
 0x1bd   : > { %v625_v51 = vmul.f32 %v621_v60, %v617_v31  ;;  %v626_v4 = vmul.f32 %v622_v21, %v618_v32  ;;  %v926_v54 = vpack.c.b16 %v922_v2, %v922_v2  ;;  %v2355_v35 = vunpack.c.l.bf16 %v2347_v1  ;;  %v5067_v23 = vld [vmem:[#allocation6 + $0x48] sm:$0xf]  ;;  %v5069_v57 = vld [vmem:[#allocation6 + $0x4c] sm:$0xf]  ;;  %v374_v21 = vpop.permute.xlu0 %373 }
 0x1be   : > { %v2358_v59 = vmul.f32 %v2354_v40, %v617_v31  ;;  %v2542_v10 = vpack.c.b16 %v2538_v41, %v2538_v41  ;;  %v2543_v44 = vpack.c.b16 %v2539_v63, %v2539_v63  ;;  %2148 = vmatpush.bf16.msrb.mxu3 %v3326_v17  ;;  %v936_v25 = vpack.i.b16 %v925_v37, %v925_v37 }
 0x1bf   : > { %v628_v27 = vpack.c.bf16 %v626_v4, %v625_v51  ;;  %2174 = vmatpush.bf16.msrb.mxu1 %v3330_v22  ;;  %v940_v18 = vpack.i.b16 %v926_v54, %v926_v54  ;;  %v393_v34 = vunpack.c.l.b16 %v388_v19  ;;  %v2225_v12 = vunpack.c.l.bf16 %v5030_v45  ;;  %2320 = vst [vmem:[#allocation6 + $0x48] sm:$0x33] %v2318_v3  ;;  %v3560_v51 = vld [vmem:[#allocation6 + $0xc] sm:$0xf0]  ;;  %v3255_v4 = vld [vmem:[#allocation6 + $0x10] sm:$0xf0] }
 0x1c0   : > { %v2361_v36 = vpack.c.bf16 %v2358_v59, %v4740_v5  ;;  %v2550_v58 = vpack.i.b16 %v2542_v10, %v2542_v10  ;;  %v2554_v47 = vpack.i.b16 %v2543_v44, %v2543_v44  ;;  %v938_v31 = vperm.slane %v936_v25, 0  ;;  %v5212_v10 = vld [vmem:[#allocation11_spill] sm:$0xff] }
 0x1c1   : > { %630 = vst [vmem:[#allocation6 + $0x68] sm:$0x33] %v628_v27  ;;  %v942_v26 = vperm.slane %v940_v18, 0  ;;  %v905_v42 = vsel %vm903_vm15, %v4638_v24, %v902_v55  ;;  %v906_v53 = vsel %vm903_vm15, %v902_v55, %v5210_v28  ;;  %v2359_v39 = vmul.f32 %v2355_v35, %v618_v32  ;;  %v5211_v32 = vld [vmem:[#allocation9_spill] sm:$0xff]  ;;  %v3253_v35 = vld [vmem:[#allocation6] sm:$0xf] }
 0x1c2   : > { %2363 = vst [vmem:[#allocation6 + $0x60] sm:$0x33] %v2361_v36  ;;  %v2552_v0 = vperm.slane %v2550_v58, 1  ;;  %v945_v9 = vunpack.c.l.bf16 %v905_v42  ;;  %v946_v38 = vunpack.c.l.bf16 %v906_v53  ;;  %v949_v8 = vunpack.c.l.bf16 %v938_v31  ;;  %v3558_v25 = vld [vmem:[#allocation6 + $0x4] sm:$0xf] }
 0x1c3   : > { %v950_v30 = vunpack.c.l.bf16 %v942_v26  ;;  %v394_v5 = vunpack.c.h.b16 %v388_v19  ;;  %v397_v48 = vpack.c.b16 %v393_v34, %v393_v34  ;;  %v2556_v1 = vperm.slane %v2554_v47, 1  ;;  %v3311_v26 = vld [vmem:[#allocation6 + $0x78] sm:$0xf0] }
 0x1c4   : > { %v2562_v3 = vunpack.c.l.bf16 %v2552_v0  ;;  %v2202_v17 = vunpack.c.h.b16 %v4948_v56  ;;  %v2203_v60 = vunpack.c.l.b16 %v4960_v11  ;;  %v953_v24 = vmul.f32 %v949_v8, %v945_v9  ;;  %v3573_v11 = vld [vmem:[#allocation6 + $0x74] sm:$0xf0] }
 0x1c5   : > { %v954_v14 = vmul.f32 %v950_v30, %v946_v38  ;;  %v398_v2 = vpack.c.b16 %v394_v5, %v394_v5  ;;  %v408_v40 = vpack.i.b16 %v397_v48, %v397_v48  ;;  %v2362_v22 = vpack.c.bf16 %v5211_v32, %v2359_v39 }
 0x1c6   : > { %v2566_v7 = vmul.f32 %v2562_v3, %v945_v9  ;;  %v2206_v41 = vpack.c.b16 %v2202_v17, %v2202_v17  ;;  %v2207_v63 = vpack.c.b16 %v2203_v60, %v2203_v60  ;;  %v377_v56 = vsel %vm375_vm2, %v4962_v29, %v374_v21  ;;  %v3569_v60 = vld [vmem:[#allocation6 + $0x54] sm:$0xf0] }
 0x1c7   : > { %v956_v19 = vpack.c.bf16 %v954_v14, %v953_v24  ;;  %v410_v37 = vperm.slane %v408_v40, 0  ;;  %v412_v54 = vpack.i.b16 %v398_v2, %v398_v2  ;;  %v2563_v59 = vunpack.c.l.bf16 %v2556_v1  ;;  %v3593_v14 = vld [vmem:[#allocation6 + $0x114] sm:$0xf0]  ;;  %v3391_v2 = vld [vmem:[#allocation6 + $0x118] sm:$0xf0] }
 0x1c8   : > { %v2569_v44 = vpack.c.bf16 %v2566_v7, %v5212_v10  ;;  %v2214_v55 = vpack.i.b16 %v2206_v41, %v2206_v41  ;;  %v2218_v27 = vpack.i.b16 %v2207_v63, %v2207_v63  ;;  %v3309_v18 = vld [vmem:[#allocation6 + $0x68] sm:$0xf]  ;;  %v3571_v34 = vld [vmem:[#allocation6 + $0x6c] sm:$0xf]  ;;  %v378_v47 = vsel %vm375_vm2, %v374_v21, %v4752_v13  ;;  %v3295_v21 = vld [vmem:[#allocation6 + $0x58] sm:$0xf0] }
 0x1c9   : > { %958 = vst [vmem:[#allocation6 + $0x108] sm:$0x33] %v956_v19  ;;  %v414_v36 = vperm.slane %v412_v54, 0  ;;  %v421_v58 = vunpack.c.l.bf16 %v410_v37  ;;  %v417_v31 = vunpack.c.l.bf16 %v377_v56  ;;  %v418_v28 = vunpack.c.l.bf16 %v378_v47  ;;  %v3514_v40 = vld [vmem:[#allocation6 + $0xe0] sm:$0xf] }
 0x1ca   : > { %2571 = vst [vmem:[#allocation6 + $0x100] sm:$0x33] %v2569_v44  ;;  %v2216_v29 = vperm.slane %v2214_v55, 1  ;;  %v2220_v42 = vperm.slane %v2218_v27, 1  ;;  %v3254_v53 = vor.u32 %v3560_v51, %v3253_v35  ;;  %v3258_v9 = vor.u32 %v3558_v25, %v3255_v4  ;;  %v3660_v7 = vld [vmem:[#allocation6 + $0xec] sm:$0xf0] }
 0x1cb   : > { %v422_v39 = vunpack.c.l.bf16 %v414_v36  ;;  %v425_v0 = vmul.f32 %v421_v58, %v417_v31  ;;  %v1905_v8 = vunpack.c.l.b16 %v4883_v46  ;;  %2364 = vst [vmem:[#allocation6 + $0x68] sm:$0x33] %v2362_v22  ;;  %v3310_v5 = vor.u32 %v3573_v11, %v3309_v18  ;;  %v3516_v41 = vld [vmem:[#allocation6 + $0xf0] sm:$0xf0]  ;;  %v3279_v37 = vld [vmem:[#allocation6 + $0x38] sm:$0xf0] }
 0x1cc   : > { %v2226_v30 = vunpack.c.l.bf16 %v2216_v29  ;;  %2100 = vmatpush.bf16.msra.mxu2 %v3254_v53  ;;  %v3314_v48 = vor.u32 %v3571_v34, %v3311_v26  ;;  %v2224_v13 = vperm.slane %v2222_v6, 1  ;;  %v2567_v1 = vmul.f32 %v2563_v59, %v946_v38  ;;  %2126 = vmatpush.bf16.msra.mxu0 %v3258_v9  ;;  %v3498_v11 = vld [vmem:[#allocation6 + $0xc0] sm:$0xf]  ;;  %v3656_v59 = vld [vmem:[#allocation6 + $0xcc] sm:$0xf0] }
 0x1cd   : > { %v426_v3 = vmul.f32 %v422_v39, %v418_v28  ;;  %v5089_v17 = vpack.c.b16 %v1905_v8, %v1905_v8  ;;  %v2229_v46 = vmul.f32 %v2225_v12, %v416_v33  ;;  %2149 = vmatpush.bf16.msrb.mxu3 %v3310_v5  ;;  %v5214_v6 = vunpack.c.l.bf16 %v5213_v52  ;;  %v3561_v25 = vld [vmem:[#allocation6 + $0x14] sm:$0xf0]  ;;  %v3263_v18 = vld [vmem:[#allocation6 + $0x18] sm:$0xf0]  ;;  %v3664_v34 = vld [vmem:[#allocation6 + $0x10c] sm:$0xf0] }
 0x1ce   : > { %v2230_v24 = vmul.f32 %v2226_v30, %v417_v31  ;;  %2175 = vmatpush.bf16.msrb.mxu1 %v3314_v48  ;;  %v2227_v32 = vunpack.c.l.bf16 %v2220_v42  ;;  %v3294_v33 = vor.u32 %v3569_v60, %v5067_v23  ;;  %v3298_v12 = vor.u32 %v5069_v57, %v3295_v21  ;;  %v3654_v23 = vld [vmem:[#allocation6 + $0xc4] sm:$0xf]  ;;  %v3500_v57 = vld [vmem:[#allocation6 + $0xd0] sm:$0xf0]  ;;  %v3482_v31 = vld [vmem:[#allocation6 + $0xa0] sm:$0xf] }
 0x1cf   : > { %v2568_v38 = vmul.f32 %v2564_v49, %v5214_v6  ;;  %v428_v22 = vpack.c.bf16 %v426_v3, %v425_v0  ;;  %2101 = vmatmul.bf16.vlgmr.msra.gmra.mxu2 %v5089_v17  ;;  %2127 = vmatmul.bf16.vlgmr.msra.gmra.mxu0 %v5089_v17  ;;  %v2228_v4 = vunpack.c.l.bf16 %v2224_v13  ;;  %v3515_v56 = vor.u32 %v3660_v7, %v3514_v40  ;;  %v3532_v47 = vld [vmem:[#allocation6 + $0x110] sm:$0xf0]  ;;  %v3652_v26 = vld [vmem:[#allocation6 + $0xac] sm:$0xf0]  ;;  %v3522_v8 = vld [vmem:[#allocation6 + $0xe8] sm:$0xf] }
 0x1d0   : > { %v2233_v45 = vpack.c.bf16 %v2230_v24, %v2229_v46  ;;  %v3389_v63 = vld [vmem:[#allocation6 + $0x108] sm:$0xf]  ;;  %v3591_v51 = vld [vmem:[#allocation6 + $0x10c] sm:$0xf]  ;;  %v3519_v35 = vor.u32 %v3658_v43, %v3516_v41  ;;  %v2231_v10 = vmul.f32 %v2227_v32, %v418_v28  ;;  %v3278_v44 = vor.u32 %v3565_v20, %v5041_v50  ;;  %v3650_v28 = vld [vmem:[#allocation6 + $0xa4] sm:$0xf] }
 0x1d1   : > { %v2570_v19 = vpack.c.bf16 %v2568_v38, %v2567_v1  ;;  %430 = vst [vmem:[#allocation6 + $0x8] sm:$0x33] %v428_v22  ;;  %v3390_v49 = vor.u32 %v3593_v14, %v3389_v63  ;;  %v3394_v54 = vor.u32 %v3591_v51, %v3391_v2  ;;  %2150 = vmatpush.bf16.msrb.mxu3 %v3294_v33  ;;  %v3530_v42 = vld [vmem:[#allocation6 + $0x100] sm:$0xf]  ;;  %v3662_v50 = vld [vmem:[#allocation6 + $0x104] sm:$0xf] }
 0x1d2   : > { %2235 = vst [vmem:[#allocation6] sm:$0x33] %v2233_v45  ;;  %2176 = vmatpush.bf16.msrb.mxu1 %v3298_v12  ;;  %v3282_v55 = vor.u32 %v5043_v15, %v3279_v37  ;;  %v2232_v27 = vmul.f32 %v2228_v4, %v415_v16  ;;  %v3499_v36 = vor.u32 %v3656_v59, %v3498_v11  ;;  %v3661_v30 = vld [vmem:[#allocation6 + $0xf4] sm:$0xf0]  ;;  %v3659_v5 = vld [vmem:[#allocation6 + $0xec] sm:$0xf]  ;;  %v5118_v11 = vpop.f32.mrf.mxu3 }
 0x1d3   : > { %2165 = vmatpush.bf16.msrb.mxu2 %v3390_v49  ;;  %2191 = vmatpush.bf16.msrb.mxu0 %v3394_v54  ;;  %2572 = vst [vmem:[#allocation6 + $0x108] sm:$0x33] %v2570_v19  ;;  %v3503_v58 = vor.u32 %v3654_v23, %v3500_v57  ;;  %v3531_v0 = vor.u32 %v3664_v34, %v3530_v42  ;;  %v3524_v48 = vld [vmem:[#allocation6 + $0xf8] sm:$0xf0]  ;;  %v3466_v3 = vld [vmem:[#allocation6 + $0x80] sm:$0xf] }
 0x1d4   : > { %v2234_v29 = vpack.c.bf16 %v2232_v27, %v2231_v10  ;;  %v3535_v9 = vor.u32 %v3662_v50, %v3532_v47  ;;  %v3483_v13 = vor.u32 %v3652_v26, %v3482_v31  ;;  %v3487_v1 = vor.u32 %v3650_v28, %v3484_v62  ;;  %v3648_v60 = vld [vmem:[#allocation6 + $0x8c] sm:$0xf0]  ;;  %v3646_v21 = vld [vmem:[#allocation6 + $0x84] sm:$0xf]  ;;  %v3468_v46 = vld [vmem:[#allocation6 + $0x90] sm:$0xf0] }
 0x1d5   : > { %2151 = vmatpush.bf16.msrb.mxu3 %v3278_v44  ;;  %v3523_v24 = vor.u32 %v3661_v30, %v3522_v8  ;;  %v3527_v14 = vor.u32 %v3659_v5, %v3524_v48  ;;  %v3506_v2 = vld [vmem:[#allocation6 + $0xc8] sm:$0xf]  ;;  %v3657_v40 = vld [vmem:[#allocation6 + $0xd4] sm:$0xf0]  ;;  %v3655_v52 = vld [vmem:[#allocation6 + $0xcc] sm:$0xf]  ;;  %v3467_v38 = vor.u32 %v3648_v60, %v3466_v3  ;;  %v3471_v32 = vor.u32 %v3646_v21, %v3468_v46 }
 0x1d6   : > { %2177 = vmatpush.bf16.msrb.mxu1 %v3282_v55  ;;  %v3508_v6 = vld [vmem:[#allocation6 + $0xd8] sm:$0xf0]  ;;  %v3644_v22 = vld [vmem:[#allocation6 + $0x6c] sm:$0xf0]  ;;  %v3450_v7 = vld [vmem:[#allocation6 + $0x60] sm:$0xf] }
 0x1d7   : > { %2800 = vmatpush.bf16.msra.mxu2 %v3515_v56  ;;  %2826 = vmatpush.bf16.msra.mxu0 %v3519_v35  ;;  %v3642_v43 = vld [vmem:[#allocation6 + $0x64] sm:$0xf]  ;;  %v3452_v41 = vld [vmem:[#allocation6 + $0x70] sm:$0xf0]  ;;  %v3511_v45 = vor.u32 %v3655_v52, %v3508_v6  ;;  %v3490_v33 = vld [vmem:[#allocation6 + $0xa8] sm:$0xf]  ;;  %v3451_v4 = vor.u32 %v3644_v22, %v3450_v7  ;;  %v1822_v35 = vpop.f32.mrf.mxu2 }
 0x1d8   : > { %v3261_v15 = vld [vmem:[#allocation6 + $0x8] sm:$0xf]  ;;  %v3559_v53 = vld [vmem:[#allocation6 + $0xc] sm:$0xf]  ;;  %v3653_v12 = vld [vmem:[#allocation6 + $0xb4] sm:$0xf0]  ;;  %v3455_v19 = vor.u32 %v3642_v43, %v3452_v41 }
 0x1d9   : > { %v3262_v16 = vor.u32 %v3561_v25, %v3261_v15  ;;  %v3266_v39 = vor.u32 %v3559_v53, %v3263_v18  ;;  %2236 = vst [vmem:[#allocation6 + $0x8] sm:$0x33] %v2234_v29  ;;  %v3651_v63 = vld [vmem:[#allocation6 + $0xac] sm:$0xf]  ;;  %v3492_v51 = vld [vmem:[#allocation6 + $0xb8] sm:$0xf0]  ;;  %v3491_v56 = vor.u32 %v3653_v12, %v3490_v33 }
 0x1da   : > { %v3434_v20 = vld [vmem:[#allocation6 + $0x40] sm:$0xf]  ;;  %v5116_v49 = vld [vmem:[%s5173_s1 + $0x10] sm:$0xff]  ;;  %v3638_v37 = vld [vmem:[#allocation6 + $0x44] sm:$0xf]  ;;  %v3495_v59 = vor.u32 %v3651_v63, %v3492_v51  ;;  %v1850_v46 = vpop.f32.mrf.mxu3 }
 0x1db   : > { %2801 = vmatpush.bf16.msra.mxu2 %v3499_v36  ;;  %2827 = vmatpush.bf16.msra.mxu0 %v3503_v58  ;;  %v3436_v54 = vld [vmem:[#allocation6 + $0x50] sm:$0xf0]  ;;  %v3474_v10 = vld [vmem:[#allocation6 + $0x88] sm:$0xf]  ;;  %v3649_v23 = vld [vmem:[#allocation6 + $0x94] sm:$0xf0]  ;;  %v2613_v57 = vunpack.c.h.b16 %v5116_v49  ;;  %v2612_v48 = vunpack.c.l.b16 %v5116_v49 }
 0x1dc   : > { %2152 = vmatpush.bf16.msrb.mxu3 %v3262_v16  ;;  %2178 = vmatpush.bf16.msrb.mxu1 %v3266_v39  ;;  %v3647_v44 = vld [vmem:[#allocation6 + $0x8c] sm:$0xf]  ;;  %v3476_v55 = vld [vmem:[#allocation6 + $0x98] sm:$0xf0]  ;;  %v3439_v25 = vor.u32 %v3638_v37, %v3436_v54  ;;  %v3418_v18 = vld [vmem:[#allocation6 + $0x20] sm:$0xf]  ;;  %v3475_v26 = vor.u32 %v3649_v23, %v3474_v10 }
 0x1dd   : > { %v3636_v34 = vld [vmem:[#allocation6 + $0x2c] sm:$0xf0]  ;;  %v3634_v36 = vld [vmem:[#allocation6 + $0x24] sm:$0xf]  ;;  %v3420_v58 = vld [vmem:[#allocation6 + $0x30] sm:$0xf0]  ;;  %v3479_v42 = vor.u32 %v3647_v44, %v3476_v55  ;;  %v5125_v50 = vpack.c.b16 %v2613_v57, %v2613_v57  ;;  %v2614_v7 = vpack.c.b16 %v2612_v48, %v2612_v48 }
 0x1de   : > { %v3458_v28 = vld [vmem:[#allocation6 + $0x68] sm:$0xf]  ;;  %v3645_v15 = vld [vmem:[#allocation6 + $0x74] sm:$0xf0]  ;;  %v3460_v53 = vld [vmem:[#allocation6 + $0x78] sm:$0xf0]  ;;  %v3419_v16 = vor.u32 %v3636_v34, %v3418_v18  ;;  %v3423_v39 = vor.u32 %v3634_v36, %v3420_v58 }
 0x1df   : > { %2802 = vmatpush.bf16.msra.mxu2 %v3483_v13  ;;  %2828 = vmatpush.bf16.msra.mxu0 %v3487_v1  ;;  %v3643_v62 = vld [vmem:[#allocation6 + $0x6c] sm:$0xf]  ;;  %v3402_v8 = vld [vmem:[#allocation6] sm:$0xf]  ;;  %v3630_v30 = vld [vmem:[#allocation6 + $0x4] sm:$0xf]  ;;  %v3459_v13 = vor.u32 %v3645_v15, %v3458_v28  ;;  %v1824_v21 = vpop.f32.mrf.mxu2 }
 0x1e0   : > { %2820 = vmatpush.bf16.msra.mxu3 %v3531_v0  ;;  %2846 = vmatpush.bf16.msra.mxu1 %v3535_v9  ;;  %v3632_v0 = vld [vmem:[#allocation6 + $0xc] sm:$0xf0]  ;;  %v3404_v9 = vld [vmem:[#allocation6 + $0x10] sm:$0xf0]  ;;  %v3665_v5 = vld [vmem:[#allocation6 + $0x114] sm:$0xf0] }
 0x1e1   : > { %2153 = vmatmul.bf16.vlgmr.msrb.gmra.mxu3 %v5089_v17  ;;  %2179 = vmatmul.bf16.vlgmr.msrb.gmra.mxu1 %v5089_v17  ;;  %v3507_v17 = vor.u32 %v3657_v40, %v3506_v2  ;;  %v3538_v1 = vld [vmem:[#allocation6 + $0x108] sm:$0xf]  ;;  %v3663_v3 = vld [vmem:[#allocation6 + $0x10c] sm:$0xf]  ;;  %v3540_v60 = vld [vmem:[#allocation6 + $0x118] sm:$0xf0]  ;;  %v3403_v6 = vor.u32 %v3632_v0, %v3402_v8 }
 0x1e2   : > { %3397 = vmatmul.msk.bf16.vlgmr.msrb.gmra.mxu2 %vm1796_vm11, %v4901_v61  ;;  %3398 = vmatmul.msk.bf16.vlgmr.msrb.gmra.mxu0 %vm1796_vm11, %v4901_v61  ;;  %v3640_v61 = vld [vmem:[#allocation6 + $0x4c] sm:$0xf0]  ;;  %v3641_v2 = vld [vmem:[#allocation6 + $0x54] sm:$0xf0]  ;;  %v3639_v40 = vld [vmem:[#allocation6 + $0x4c] sm:$0xf]  ;;  %v3543_v22 = vor.u32 %v3663_v3, %v3540_v60 }
 0x1e3   : > { %2803 = vmatpush.bf16.msra.mxu2 %v3467_v38  ;;  %2829 = vmatpush.bf16.msra.mxu0 %v3471_v32  ;;  %v3435_v27 = vor.u32 %v3640_v61, %v3434_v20  ;;  %v3444_v52 = vld [vmem:[#allocation6 + $0x58] sm:$0xf0]  ;;  %v3407_v38 = vor.u32 %v3630_v30, %v3404_v9  ;;  %v3539_v32 = vor.u32 %v3665_v5, %v3538_v1  ;;  %v3426_v33 = vld [vmem:[#allocation6 + $0x28] sm:$0xf]  ;;  %v3637_v12 = vld [vmem:[#allocation6 + $0x34] sm:$0xf0] }
 0x1e4   : > { %2852 = vmatpush.bf16.msrb.mxu3 %v3523_v24  ;;  %2878 = vmatpush.bf16.msrb.mxu1 %v3527_v14  ;;  %v3463_v24 = vor.u32 %v3643_v62, %v3460_v53  ;;  %v3442_v14 = vld [vmem:[#allocation6 + $0x48] sm:$0xf]  ;;  %v3635_v63 = vld [vmem:[#allocation6 + $0x2c] sm:$0xf]  ;;  %v3428_v51 = vld [vmem:[#allocation6 + $0x38] sm:$0xf0] }
 0x1e5   : > { %v3431_v49 = vor.u32 %v3635_v63, %v3428_v51  ;;  %v3410_v61 = vld [vmem:[#allocation6 + $0x8] sm:$0xf]  ;;  %v3633_v37 = vld [vmem:[#allocation6 + $0x14] sm:$0xf0] }
 0x1e6   : > { %v3411_v23 = vor.u32 %v3633_v37, %v3410_v61 }
 0x1e7   : > { %2804 = vmatpush.bf16.msra.mxu2 %v3451_v4  ;;  %2830 = vmatpush.bf16.msra.mxu0 %v3455_v19  ;;  %v1809_v47 = vpop.f32.mrf.mxu0  ;;  %v5121_v31 = vpop.f32.mrf.mxu1  ;;  %v3427_v4 = vor.u32 %v3637_v12, %v3426_v33 }
 0x1e8   : > { %2853 = vmatpush.bf16.msrb.mxu3 %v3507_v17  ;;  %2879 = vmatpush.bf16.msrb.mxu1 %v3511_v45  ;;  %v5123_v29 = vadd.f32 %v1822_v35, %v1809_v47  ;;  %v3443_v17 = vor.u32 %v3641_v2, %v3442_v14  ;;  %v3447_v45 = vor.u32 %v3639_v40, %v3444_v52  ;;  %v3631_v35 = vld [vmem:[#allocation6 + $0xc] sm:$0xf] }
 0x1eb   : > { %2805 = vmatpush.bf16.msra.mxu2 %v3435_v27  ;;  %2831 = vmatpush.bf16.msra.mxu0 %v3439_v25 }
 0x1ec   : > { %2854 = vmatpush.bf16.msrb.mxu3 %v3491_v56  ;;  %2880 = vmatpush.bf16.msrb.mxu1 %v3495_v59  ;;  %v3412_v59 = vld [vmem:[#allocation6 + $0x18] sm:$0xf0] }
 0x1ed   : > { %v3415_v57 = vor.u32 %v3631_v35, %v3412_v59 }
 0x1ee   : > { %v1835_v19 = vpop.f32.mrf.mxu2 }
 0x1ef   : > { %2806 = vmatpush.bf16.msra.mxu2 %v3419_v16  ;;  %2832 = vmatpush.bf16.msra.mxu0 %v3423_v39  ;;  %v1811_v43 = vpop.f32.mrf.mxu0  ;;  %v1863_v41 = vpop.f32.mrf.mxu1  ;;  %v1849_v54 = vadd.f32 %v5118_v11, %v1835_v19 }
 0x1f0   : > { %2855 = vmatpush.bf16.msrb.mxu3 %v3475_v26  ;;  %2881 = vmatpush.bf16.msrb.mxu1 %v3479_v42 }
 0x1f1   : > { %3544 = vmatmul.msk.bf16.vlgmr.msra.gmra.mxu3 %vm1796_vm11, %v5125_v50  ;;  %3545 = vmatmul.msk.bf16.vlgmr.msra.gmra.mxu1 %vm1796_vm11, %v5125_v50 }
 0x1f2   : > { %v1874_v20 = vpop.f32.mrf.mxu3 }
 0x1f3   : > { %2807 = vmatpush.bf16.msra.mxu2 %v3403_v6  ;;  %2833 = vmatpush.bf16.msra.mxu0 %v3407_v38  ;;  %v1875_v56 = vadd.f32 %v1874_v20, %v5121_v31 }
 0x1f4   : > { %2856 = vmatpush.bf16.msrb.mxu3 %v3459_v13  ;;  %2882 = vmatpush.bf16.msrb.mxu1 %v3463_v24 }
 0x1f6   : > { %2808 = vmatmul.bf16.vlgmr.msra.gmra.mxu2 %v2614_v7  ;;  %2834 = vmatmul.bf16.vlgmr.msra.gmra.mxu0 %v2614_v7  ;;  %v1837_v55 = vpop.f32.mrf.mxu2 }
 0x1f7   : > { %2872 = vmatpush.bf16.msrb.mxu2 %v3539_v32  ;;  %2898 = vmatpush.bf16.msrb.mxu0 %v3543_v22  ;;  %v1900_v10 = vpop.f32.mrf.mxu0 }
 0x1f8   : > { %2857 = vmatpush.bf16.msrb.mxu3 %v3443_v17  ;;  %2883 = vmatpush.bf16.msrb.mxu1 %v3447_v45 }
 0x1fa   : > { %v1876_v44 = vpop.f32.mrf.mxu3 }
 0x1fc   : > { %2858 = vmatpush.bf16.msrb.mxu3 %v3427_v4  ;;  %2884 = vmatpush.bf16.msrb.mxu1 %v3431_v49 }
 0x1ff   : > { %v1902_v27 = vpop.f32.mrf.mxu0 }
 0x200   : > { %2859 = vmatpush.bf16.msrb.mxu3 %v3411_v23  ;;  %2885 = vmatpush.bf16.msrb.mxu1 %v3415_v57 }
 0x203   : > { %2860 = vmatmul.bf16.vlgmr.msrb.gmra.mxu3 %v2614_v7  ;;  %2886 = vmatmul.bf16.vlgmr.msrb.gmra.mxu1 %v2614_v7 }
 0x206   : > { %3546 = vmatmul.msk.bf16.vlgmr.msrb.gmra.mxu2 %vm1796_vm11, %v5125_v50  ;;  %3547 = vmatmul.msk.bf16.vlgmr.msrb.gmra.mxu0 %vm1796_vm11, %v5125_v50 }
 0x20f   : > { %v2115_v11 = vpop.f32.mrf.mxu1 }
 0x217   : > { %v2117_v25 = vpop.f32.mrf.mxu1 }
 0x21f   : > { %v2141_v18 = vpop.f32.mrf.mxu1 }
 0x227   : > { %v2143_v58 = vpop.f32.mrf.mxu1 }
 0x22d   : > { %v1887_v34 = vpop.f32.mrf.mxu3 }
 0x22e   : > { %v1901_v36 = vadd.f32 %v1900_v10, %v1887_v34 }
 0x235   : > { %v1889_v47 = vpop.f32.mrf.mxu3 }
 0x24c   : > { %v2128_v31 = vpop.f32.mrf.mxu0 }
 0x24d   : > { %v2129_v26 = vadd.f32 %v2128_v31, %v1849_v54 }
 0x24f   : > { %v2142_v42 = vadd.f32 %v2141_v18, %v2129_v26 }
 0x252   : > { %v2102_v28 = vpop.f32.mrf.mxu2 }
 0x253   : > { %v2103_v15 = vadd.f32 %v2102_v28, %v5123_v29 }
 0x254   : > { %v2130_v62 = vpop.f32.mrf.mxu0 }
 0x255   : > { %v2116_v53 = vadd.f32 %v2115_v11, %v2103_v15 }
 0x25a   : > { %v2104_v16 = vpop.f32.mrf.mxu2 }
 0x25e   : > { %v2180_v39 = vpop.f32.mrf.mxu1 }
 0x25f   : > { %v2193_v0 = vpop.f32.mrf.mxu0  ;;  %v2181_v6 = vadd.f32 %v2180_v39, %v1901_v36 }
 0x261   : > { %v2194_v7 = vadd.f32 %v2193_v0, %v2181_v6 }
 0x264   : > { %v2154_v50 = vpop.f32.mrf.mxu3 }
 0x265   : > { %v2167_v9 = vpop.f32.mrf.mxu2  ;;  %v2155_v41 = vadd.f32 %v2154_v50, %v1875_v56 }
 0x266   : > { %v2182_v8 = vpop.f32.mrf.mxu1 }
 0x267   : > { %v2195_v30 = vpop.f32.mrf.mxu0  ;;  %v2168_v12 = vadd.f32 %v2167_v9, %v2155_v41 }
 0x26c   : > { %v2156_v5 = vpop.f32.mrf.mxu3 }
 0x26d   : > { %v2169_v48 = vpop.f32.mrf.mxu2 }
 0x26e   : > { %v2848_v13 = vpop.f32.mrf.mxu1 }
 0x273   : > { %v2835_v3 = vpop.f32.mrf.mxu0 }
 0x274   : > { %v2822_v1 = vpop.f32.mrf.mxu3  ;;  %v2849_v60 = vadd.f32 %v2848_v13, %v2835_v3 }
 0x276   : > { %v2850_v21 = vpop.f32.mrf.mxu1  ;;  %v2905_v46 = vadd.f32 %v2849_v60, %v2142_v42 }
 0x278   : > { %2912 = vst [vmem:[%s2910_s11 + $0x8] sm:$0xff] %v2905_v46 }
 0x279   : > { %v2809_v29 = vpop.f32.mrf.mxu2 }
 0x27a   : > { %v2823_v24 = vadd.f32 %v2822_v1, %v2809_v29 }
 0x27b   : > { %v2837_v40 = vpop.f32.mrf.mxu0 }
 0x27c   : > { %v2824_v14 = vpop.f32.mrf.mxu3  ;;  %v2904_v2 = vadd.f32 %v2823_v24, %v2116_v53 }
 0x27e   : > { %2911 = vst [vmem:[%s2910_s11] sm:$0xff] %v2904_v2 }
 0x280   : > { %v2887_v52 = vpop.f32.mrf.mxu1 }
 0x281   : > { %v2811_v38 = vpop.f32.mrf.mxu2 }
 0x283   : > { %v2900_v22 = vpop.f32.mrf.mxu0 }
 0x284   : > { %v2901_v43 = vadd.f32 %v2900_v22, %v2887_v52 }
 0x286   : > { %v2861_v32 = vpop.f32.mrf.mxu3  ;;  %v2907_v45 = vadd.f32 %v2901_v43, %v2194_v7 }
 0x288   : > { %v2889_v17 = vpop.f32.mrf.mxu1  ;;  %2914 = vst [vmem:[%s2910_s11 + $0x18] sm:$0xff] %v2907_v45 }
 0x289   : > { %v2874_v33 = vpop.f32.mrf.mxu2 }
 0x28a   : > { %v2875_v63 = vadd.f32 %v2874_v33, %v2861_v32 }
 0x28b   : > { %v2902_v19 = vpop.f32.mrf.mxu0 }
 0x28c   : > { %v2906_v4 = vadd.f32 %v2875_v63, %v2168_v12 }
 0x28d   : > { %2917 = sbr.rel (%p3101_p8) target bundleno = 783 (0x30f), region = 52 }
 0x28e   : > { %v2863_v51 = vpop.f32.mrf.mxu3  ;;  %2913 = vst [vmem:[%s2910_s11 + $0x10] sm:$0xff] %v2906_v4 }
 0x291   : > { %v2876_v20 = vpop.f32.mrf.mxu2 }
 0x292   : > { %v2918_v49 = vadd.f32 %v2905_v46, %v2904_v2 }
 0x294   : > { %v2919_v61 = vadd.f32 %v2918_v49, %v2906_v4 }
 0x296   : > { %v2920_v37 = vadd.f32 %v2919_v61, %v2907_v45 }
 0x298   : > { %2921 = vadd.xlane.f32.xlu0 %v2920_v37 }
 0x30b   : > { %v2922_v54 = vpop.xlane.xlu0 %2921 }
 0x30c   : > { %v2923_v56 = vmul.f32 0.001953125, %v2922_v54 }
 0x30e   : > { %2924 = vst.msk [vmem:[#allocation5] sm:$0xff] %vm1204_vm4, %v2923_v56 }
 0x30f PF: > { %v3797_v59 = vmov 0   ;;  %v2936_v10 = vadd.f32 %v2905_v46, %v2904_v2  ;;  %v2935_v42 = vld [vmem:[#allocation3] sm:$0xff]  ;;  %v2943_v53 = vld [vmem:[#allocation4] sm:$0xff] }
 0x310   : > { %3734 = vset.pattern.permute.xlu0 %v3797_v59 }
 0x311   : > { %v2937_v23 = vadd.f32 %v2936_v10, %v2906_v4 }
 0x313   : > { %v2938_v57 = vadd.f32 %v2937_v23, %v2907_v45 }
 0x315   : > { %v2925_v35 = vld [vmem:[#allocation5] sm:$0xff] }
 0x316   : > { %2928 = vperm.xlu0 %3734, %v2925_v35  }
 0x340   : > { %2939 = vadd.xlane.f32.xlu0 %v2938_v57 }
 0x388   : > { %v2929_v44 = vpop.permute.xlu0 %2928 }
 0x389   : > { %v2931_v55 = vsub.f32 %v2904_v2, %v2929_v44  ;;  %v2932_v27 = vsub.f32 %v2905_v46, %v2929_v44  ;;  %v2933_v11 = vsub.f32 %v2906_v4, %v2929_v44  ;;  %v2934_v25 = vsub.f32 %v2907_v45, %v2929_v44 }
 0x38b   : > { %v2944_v18 = vmul.f32 %v2931_v55, %v2931_v55  ;;  %v2945_v34 = vmul.f32 %v2932_v27, %v2932_v27  ;;  %v2946_v36 = vmul.f32 %v2933_v11, %v2933_v11  ;;  %v2947_v47 = vmul.f32 %v2934_v25, %v2934_v25 }
 0x38d   : > { %v2948_v58 = vadd.f32 %v2945_v34, %v2944_v18 }
 0x38f   : > { %v2949_v31 = vadd.f32 %v2948_v58, %v2946_v36 }
 0x391   : > { %v2950_v26 = vadd.f32 %v2949_v31, %v2947_v47 }
 0x393   : > { %2951 = vadd.xlane.f32.xlu1 %v2950_v26 }
 0x3b3   : > { %v2940_v28 = vpop.xlane.xlu0 %2939 }
 0x3b4   : > { %v2941_v15 = vadd.f32 %v2940_v28, %v2935_v42 }
 0x3b6   : > { %2942 = vst.msk [vmem:[#allocation3] sm:$0xff] %vm1204_vm4, %v2941_v15 }
 0x406   : > { %v2952_v62 = vpop.xlane.xlu1 %2951 }
 0x407   : > { %v2953_v16 = vadd.f32 %v2952_v62, %v2943_v53 }
 0x409   : > { %2954 = vst.msk [vmem:[#allocation4] sm:$0xff] %vm1204_vm4, %v2953_v16 }
 0x40a PF: > { %p3551_p9 = scmp.ne.s32.totalorder %s3764_s19, 1 }
 0x40b   : > { %s3667_s14 = sshll.u32 (!%p3551_p9), %s3760_s18, 5 }
 0x40c   : > { %2958 = sbr.rel (%p3551_p9) target bundleno = 1205 (0x4b5), region = 56  ;;  %s2986_s12 = scalar_lea.vmem (!%p3551_p9), [#allocation2], %s3667_s14 }
 0x411   : > { %v2959_v39 = vld [vmem:[#allocation3] sm:$0xff]  ;;  %v2961_v0 = vld [vmem:[#allocation5] sm:$0xff]  ;;  %v2963_v50 = vld [vmem:[#allocation4] sm:$0xff]  ;;  %v3798_v9 = vmov 0  }
 0x412   : > { %3735 = vset.pattern.permute.xlu0 %v3798_v9  ;;  %v2960_v8 = vmul.f32 0.0009765625, %v2959_v39  ;;  %v2964_v5 = vmul.f32 0.0009765625, %v2963_v50  ;;  %v2968_v14 = vld [vmem:[%s5175_s3] sm:$0xff]  ;;  %v2988_v43 = vld [vmem:[%s2986_s12 + $0x8] sm:$0xff]  ;;  %v2989_v41 = vld [vmem:[%s2986_s12 + $0x10] sm:$0xff] }
 0x413   : > { %v2981_v38 = vld [vmem:[%s5176_s4] sm:$0xff]  ;;  %v2990_v17 = vld [vmem:[%s2986_s12 + $0x18] sm:$0xff] }
 0x414   : > { %v2962_v30 = vsub.f32 %v2960_v8, %v2961_v0  ;;  %v2987_v7 = vld [vmem:[%s2986_s12] sm:$0xff] }
 0x416   : > { %v2965_v48 = vmul.f32 %v2962_v30, %v2962_v30 }
 0x418   : > { %v2966_v13 = vsub.f32 %v2964_v5, %v2965_v48 }
 0x41a   : > { %v2967_v1 = vmax.f32 %v2966_v13, 0.0 }
 0x41c   : > { %v2969_v3 = vadd.f32 1e-05, %v2967_v1 }
 0x41e   : > { %3736 = vrsqrt.f32 %v2969_v3  ;;  %vm2976_vm3 = vweird.f32 %v2969_v3 }
 0x424   : > { %v3737_v60 = vpop.eup %3736 }
 0x425   : > { %v2971_v21 = vmul.f32 %v3737_v60, %v2969_v3  ;;  %vm2977_vm4 = vweird.f32 %v3737_v60 }
 0x426   : > { %vm2978_vm5 = vmor %vm2976_vm3, %vm2977_vm4 }
 0x427   : > { %v2972_v46 = vmul.f32 %v3737_v60, %v2971_v21 }
 0x429   : > { %v2973_v29 = vmul.f32 0.5, %v2972_v46 }
 0x42b   : > { %v2974_v24 = vsub.f32 1.5, %v2973_v29 }
 0x42d   : > { %v2975_v2 = vmul.f32 %v3737_v60, %v2974_v24 }
 0x42f   : > { %v2979_v40 = vsel %vm2978_vm5, %v3737_v60, %v2975_v2 }
 0x430   : > { %v2980_v52 = vmul.f32 %v2979_v40, %v2968_v14 }
 0x432   : > { %2993 = vperm.xlu0 %3735, %v2980_v52   ;;  %v2982_v6 = vmul.f32 %v2980_v52, %v2960_v8 }
 0x434   : > { %v2983_v32 = vsub.f32 %v2981_v38, %v2982_v6 }
 0x43a   : > { %3002 = vperm.xlu0 %3735, %v2983_v32  }
 0x4a4   : > { %v2994_v22 = vpop.permute.xlu0 %2993 }
 0x4a5   : > { %v2996_v45 = vmul.f32 %v2994_v22, %v2987_v7  ;;  %v2997_v33 = vmul.f32 %v2994_v22, %v2988_v43  ;;  %v2998_v12 = vmul.f32 %v2994_v22, %v2989_v41  ;;  %v2999_v63 = vmul.f32 %v2994_v22, %v2990_v17 }
 0x4ac   : > { %v3003_v51 = vpop.permute.xlu0 %3002 }
 0x4ad   : > { %v3005_v4 = vadd.f32 %v3003_v51, %v2996_v45  ;;  %v3006_v19 = vadd.f32 %v3003_v51, %v2997_v33  ;;  %v3007_v20 = vadd.f32 %v3003_v51, %v2998_v12  ;;  %v3008_v49 = vadd.f32 %v3003_v51, %v2999_v63 }
 0x4af   : > { %v3009_v61 = vmax.f32 %v3005_v4, 0.0  ;;  %v3010_v37 = vmax.f32 %v3006_v19, 0.0  ;;  %v3011_v54 = vmax.f32 %v3007_v20, 0.0  ;;  %v3012_v56 = vmax.f32 %v3008_v49, 0.0 }
 0x4b1   : > { %3013 = vst [vmem:[%s3870_s7] sm:$0xff] %v3009_v61 }
 0x4b2   : > { %3014 = vst [vmem:[%s3870_s7 + $0x8] sm:$0xff] %v3010_v37 }
 0x4b3   : > { %3015 = vst [vmem:[%s3870_s7 + $0x10] sm:$0xff] %v3011_v54 }
 0x4b4   : > { %3016 = vst [vmem:[%s3870_s7 + $0x18] sm:$0xff] %v3012_v56 }
 0x4b5 PF: > { %s15_s22 = sadd.s32 1, %s3776_s22   ;;  %s5215_s18 = smov %s3768_s20 }
 0x4b6   : > { %p12_p10 = scmp.ge.s32.totalorder %s15_s22, 6   ;;  %s5216_s19 = smov %s3772_s21 }
 0x4b7   : > { %s5217_s20 = smov %s5220_s23  ;;  %s5218_s21 = smov %s5224_s24 }
 0x4b8   :  { %14 = sbr.rel (!%p12_p10) target bundleno = 3 (0x3), region = 91 }

</bundles_post_ra>
